<compile_context>
chip_gen: v7x
topology: tpu7x:2x2x1
jax: 0.10.0
libtpu: 0.0.40
codegen_flags: <defaults>
</compile_context>

<pallas_src>
import functools

import jax
import jax.numpy as jnp
from jax import lax
from jax.experimental import pallas as pl
from jax.experimental.pallas import tpu as pltpu

LN_EPS = 1e-5                        # torch.nn.LayerNorm default
INV_SQRT2 = 0.7071067811865475
GELU_TANH_C0 = 0.7978845608028654    # sqrt(2/pi)
GELU_TANH_C1 = 0.044715


def _round_up(x: int, m: int) -> int:
    return (x + m - 1) // m * m


def _vmem_cap_bytes() -> int:
    try:
        return int(pltpu.get_tpu_info().vmem_capacity_bytes)
    except Exception:
        return 64 * 1024 * 1024      # conservative: v7x per-TensorCore VMEM


def _default_pointwise_dtype(matmul_dtype):
    """bf16 pointwise math only where the VPU/EUP support it (v6e/v7x); f32 otherwise."""
    if jnp.dtype(matmul_dtype) == jnp.dtype(jnp.float32):
        return jnp.dtype(jnp.float32)          # exact path stays f32 end to end
    try:
        kind = jax.devices()[0].device_kind.lower()
    except Exception:
        kind = ""
    if any(tag in kind for tag in ("v6", "v7", "tpu7", "trillium")):
        return jnp.dtype(jnp.bfloat16)
    return jnp.dtype(jnp.float32)              # v5e and older: no bf16 VPU/EUP


def _gelu(x, mode):
    if mode == "erf":
        # Exact GELU (matches torch nn.GELU() default).  VALU polynomial; use only when
        # bitwise-faithful semantics matter.
        return 0.5 * x * (1.0 + lax.erf(x * INV_SQRT2))
    # tanh approximation (torch GELU(approximate='tanh')): one EUP op, VALU stays free.
    return 0.5 * x * (1.0 + jnp.tanh(GELU_TANH_C0 * (x + GELU_TANH_C1 * x * x * x)))


def _generator_kernel(noise_ref, w1_ref, b1_ref, gamma_ref, beta_ref,
                      w2_ref, b2_ref, out_ref, *, gelu_mode, pointwise_dtype):
    md = w1_ref.dtype
    pw = pointwise_dtype

    # Linear 1 on the MXU (operands in md, f32 accumulation).  astype is a no-op when the
    # wrapper already delivered the noise tile in md.
    h = jnp.dot(noise_ref[...].astype(md), w1_ref[...],
                preferred_element_type=jnp.float32) + b1_ref[...]       # (TB, H) f32

    # LayerNorm statistics in f32.
    mean = jnp.mean(h, axis=-1, keepdims=True)
    centered = h - mean
    var = jnp.mean(centered * centered, axis=-1, keepdims=True)
    hn = centered * lax.rsqrt(var + LN_EPS)

    # Affine + GELU in pointwise dtype (bf16 on v6e/v7x, f32 on v5e / exact path).
    hn = hn.astype(pw) * gamma_ref[...].astype(pw) + beta_ref[...].astype(pw)
    g = _gelu(hn, gelu_mode)

    # Linear 2 on the MXU, f32 accumulation + f32 bias.
    out = jnp.dot(g.astype(md), w2_ref[...],
                  preferred_element_type=jnp.float32) + b2_ref[...]     # (TB, Np) f32
    out_ref[...] = out.astype(out_ref.dtype)


def prepare_params(params, *, matmul_dtype=jnp.bfloat16):
    """One-time layout plumbing (hoisted out of the per-call path): cast matmul operands,
    pad K / output features to lane multiples, reshape vectors to (1, .).  Returns
    (prepared_params, output_size)."""
    w1, b1, gamma, beta, w2, b2 = params
    md = jnp.dtype(matmul_dtype)
    noise_size, hidden = w1.shape
    output_size = w2.shape[1]
    assert hidden % 128 == 0, f"hidden ({hidden}) must be a multiple of 128 (lane width)"

    k_pad = _round_up(noise_size, 128)          # lane-dense first matmul K
    n_pad = _round_up(output_size, 128)         # lane-dense output writeback

    w1_p = jnp.zeros((k_pad, hidden), md).at[:noise_size, :].set(w1.astype(md))
    w2_p = jnp.zeros((hidden, n_pad), md).at[:, :output_size].set(w2.astype(md))
    b1_2d = b1.reshape(1, hidden).astype(jnp.float32)
    gamma_2d = gamma.reshape(1, hidden).astype(jnp.float32)
    beta_2d = beta.reshape(1, hidden).astype(jnp.float32)
    b2_2d = jnp.zeros((1, n_pad), jnp.float32).at[0, :output_size].set(b2.astype(jnp.float32))
    return (w1_p, b1_2d, gamma_2d, beta_2d, w2_p, b2_2d), output_size


@functools.partial(
    jax.jit,
    static_argnames=("output_size", "batch_tile", "pointwise_dtype", "gelu",
                     "out_dtype", "vmem_cap_bytes"))
def generator_forward_prepared(noise, prep, *, output_size, batch_tile=512,
                               pointwise_dtype=jnp.dtype(jnp.float32), gelu="tanh",
                               out_dtype=jnp.dtype(jnp.float32),
                               vmem_cap_bytes=64 * 1024 * 1024):
    """noise: [B, noise_size] f32, prep from prepare_params() -> [B, output_size]."""
    w1, b1, gamma, beta, w2, b2 = prep
    B, noise_size = noise.shape
    k_pad, hidden = w1.shape
    n_pad = w2.shape[1]
    md = w1.dtype

    # Batch tile: sublane aligned, large enough to fill MXU passes, but always >= 2 grid
    # steps when B > 8 so both v7x TensorCores get work ("parallel" semantics).
    bt = min(batch_tile, _round_up(B, 8))
    if B > 8:
        bt = min(bt, _round_up((B + 1) // 2, 8))
    bt = max(8, _round_up(bt, 8))
    B_pad = _round_up(B, bt)
    grid = (B_pad // bt,)

    # Only copy the noise when padding is actually required (batch or K not aligned);
    # the padded copy is also cast to md so the kernel-side DMA is half-width.
    if (B_pad != B) or (k_pad != noise_size):
        noise_in = jnp.zeros((B_pad, k_pad), md).at[:B, :noise_size].set(noise.astype(md))
    else:
        noise_in = noise            # cast to md happens in-kernel (no extra HBM copy)

    # Static VMEM budget (weights + I/O tiles double-buffered by the pipeline), capped at
    # 75% of physical VMEM (v7x: 64 MiB), no artificial floor beyond 4 MiB.
    out_dt = jnp.dtype(out_dtype)
    pw_dt = jnp.dtype(pointwise_dtype)
    weight_bytes = (k_pad * hidden + hidden * n_pad) * md.itemsize + (3 * hidden + n_pad) * 4
    io_bytes = bt * k_pad * noise_in.dtype.itemsize + bt * n_pad * out_dt.itemsize
    inter_bytes = bt * hidden * (4 * 4 + 2 * pw_dt.itemsize) + 2 * bt * n_pad * 4
    vmem_limit = int(1.4 * (2 * weight_bytes + 2 * io_bytes + inter_bytes)) + (1 << 20)
    vmem_limit = max(vmem_limit, 4 * 1024 * 1024)
    vmem_limit = min(vmem_limit, int(0.75 * vmem_cap_bytes))

    full = lambda i: (0, 0)   # grid-invariant (whole-array) blocks
    kernel = functools.partial(_generator_kernel, gelu_mode=gelu, pointwise_dtype=pw_dt)

    out_p = pl.pallas_call(
        kernel,
        out_shape=jax.ShapeDtypeStruct((B_pad, n_pad), out_dt),
        grid_spec=pltpu.PrefetchScalarGridSpec(
            num_scalar_prefetch=0,
            grid=grid,
            in_specs=[
                pl.BlockSpec((bt, k_pad), lambda i: (i, 0)),   # noise tile
                pl.BlockSpec((k_pad, hidden), full),           # W1
                pl.BlockSpec((1, hidden), full),               # b1
                pl.BlockSpec((1, hidden), full),               # gamma
                pl.BlockSpec((1, hidden), full),               # beta
                pl.BlockSpec((hidden, n_pad), full),           # W2
                pl.BlockSpec((1, n_pad), full),                # b2
            ],
            out_specs=pl.BlockSpec((bt, n_pad), lambda i: (i, 0)),
        ),
        compiler_params=pltpu.CompilerParams(
            dimension_semantics=("parallel",),
            vmem_limit_bytes=vmem_limit),
    )(noise_in, w1, b1, gamma, beta, w2, b2)

    return out_p[:B, :output_size]


def generator_forward(noise, params, *, batch_tile=512, matmul_dtype=jnp.bfloat16,
                      pointwise_dtype=None, gelu="tanh", out_dtype=jnp.float32):
    """Convenience wrapper: prepares params (prefer caching prepare_params() yourself)."""
    prep, output_size = prepare_params(params, matmul_dtype=matmul_dtype)
    if pointwise_dtype is None:
        pointwise_dtype = _default_pointwise_dtype(matmul_dtype)
    return generator_forward_prepared(
        noise, prep, output_size=output_size, batch_tile=batch_tile,
        pointwise_dtype=jnp.dtype(pointwise_dtype), gelu=gelu,
        out_dtype=jnp.dtype(out_dtype), vmem_cap_bytes=_vmem_cap_bytes())


def init_generator_params(key, noise_size, hidden, output_size):
    """nn.Linear default init (U(+/- 1/sqrt(fan_in))), nn.LayerNorm default (gamma=1, beta=0).
    Weights stored [in, out] so the kernel computes x @ W + b."""
    k1, k2, k3, k4 = jax.random.split(key, 4)
    lim1 = 1.0 / jnp.sqrt(noise_size)
    lim2 = 1.0 / jnp.sqrt(hidden)
    w1 = jax.random.uniform(k1, (noise_size, hidden), jnp.float32, -lim1, lim1)
    b1 = jax.random.uniform(k2, (hidden,), jnp.float32, -lim1, lim1)
    gamma = jnp.ones((hidden,), jnp.float32)
    beta = jnp.zeros((hidden,), jnp.float32)
    w2 = jax.random.uniform(k3, (hidden, output_size), jnp.float32, -lim2, lim2)
    b2 = jax.random.uniform(k4, (output_size,), jnp.float32, -lim2, lim2)
    return (w1, b1, gamma, beta, w2, b2)


def generator_reference(noise, params, *, matmul_dtype=jnp.float32, gelu="erf"):
    """Pure-JAX reference.  matmul_dtype mirrors the kernel's MXU operand dtype; gelu mirrors
    the kernel's GELU flavor.  Pointwise math is f32 (the kernel's bf16-pointwise fast path is
    only checked against this at a loose tolerance)."""
    w1, b1, gamma, beta, w2, b2 = params
    md = jnp.dtype(matmul_dtype)
    h = jnp.dot(noise.astype(md), w1.astype(md),
                preferred_element_type=jnp.float32,
                precision=lax.Precision.HIGHEST) + b1
    mean = jnp.mean(h, axis=-1, keepdims=True)
    var = jnp.mean((h - mean) ** 2, axis=-1, keepdims=True)
    hn = (h - mean) * lax.rsqrt(var + LN_EPS)
    hn = hn * gamma + beta
    if gelu == "erf":
        g = 0.5 * hn * (1.0 + lax.erf(hn * INV_SQRT2))
    else:
        g = 0.5 * hn * (1.0 + jnp.tanh(GELU_TANH_C0 * (hn + GELU_TANH_C1 * hn ** 3)))
    return jnp.dot(g.astype(md), w2.astype(md),
                   preferred_element_type=jnp.float32,
                   precision=lax.Precision.HIGHEST) + b2


if __name__ == "__main__":
    # Module-consistent shapes: noise_size=100 (not 128-aligned -> exercises padding),
    # hidden=256, output=256, batch 512 -> 2 parallel grid steps of 256 rows.
    B, NOISE, HIDDEN, OUT = 512, 100, 256, 256

    key = jax.random.PRNGKey(0)
    k_noise, k_params = jax.random.split(key)
    noise = jax.random.normal(k_noise, (B, NOISE), dtype=jnp.float32)
    params = init_generator_params(k_params, NOISE, HIDDEN, OUT)

    # Fast path: bf16 MXU operands, tanh-GELU on the EUP, bf16 pointwise on v6e/v7x
    # (f32 on v5e), f32 accumulation/output.  Param prep hoisted & reusable across calls.
    prep_fast, out_size = prepare_params(params, matmul_dtype=jnp.bfloat16)
    pw_fast = _default_pointwise_dtype(jnp.bfloat16)
    out_fast = jax.block_until_ready(generator_forward_prepared(
        noise, prep_fast, output_size=out_size, batch_tile=512,
        pointwise_dtype=pw_fast, gelu="tanh", out_dtype=jnp.dtype(jnp.float32),
        vmem_cap_bytes=_vmem_cap_bytes()))

    # Exact path: f32 MXU operands, exact erf GELU, f32 pointwise (matches nn.GELU() up to
    # the MXU's default f32 matmul decomposition / accumulation order).
    out_exact = jax.block_until_ready(generator_forward(
        noise, params, batch_tile=512, matmul_dtype=jnp.float32, gelu="erf"))

    assert out_fast.shape == (B, OUT), out_fast.shape
    assert out_exact.shape == (B, OUT), out_exact.shape

    ref_exact = generator_reference(noise, params, matmul_dtype=jnp.float32, gelu="erf")
    ref_fast = generator_reference(noise, params, matmul_dtype=jnp.bfloat16, gelu="tanh")

    err_exact = float(jnp.max(jnp.abs(out_exact - ref_exact)))
    assert jnp.allclose(out_exact, ref_exact, atol=2e-3, rtol=2e-3), err_exact

    err_fast = float(jnp.max(jnp.abs(out_fast - ref_fast)))
    assert jnp.allclose(out_fast, ref_fast, atol=5e-2, rtol=5e-2), err_fast

    # Sanity: fast path stays close to the exact f32/erf reference.
    assert jnp.allclose(out_fast, ref_exact, atol=1.5e-1, rtol=1.5e-1)

    print("KERNEL_OK")
</pallas_src>

<mosaic_0001>
module attributes {stable_mosaic.version = 11 : i64} {
  func.func @_generator_kernel(%arg0: i32, %arg1: memref<256x128xbf16, #tpu.memory_space<vmem>>, %arg2: memref<128x256xbf16, #tpu.memory_space<vmem>>, %arg3: memref<1x256xf32, #tpu.memory_space<vmem>>, %arg4: memref<1x256xf32, #tpu.memory_space<vmem>>, %arg5: memref<1x256xf32, #tpu.memory_space<vmem>>, %arg6: memref<256x256xbf16, #tpu.memory_space<vmem>>, %arg7: memref<1x256xf32, #tpu.memory_space<vmem>>, %arg8: memref<256x256xf32, #tpu.memory_space<vmem>>) attributes {dimension_semantics = [#tpu.dimension_semantics<parallel>], iteration_bounds = array<i64: 2>, scalar_prefetch = 0 : i64, scratch_operands = 0 : i64, tpu.core_type = #tpu.core_type<tc>, window_params = [{transform_indices = @transform_0, window_bounds = array<i64: 256, 128>}, {pipeline_mode = #tpu.pipeline_mode<synchronous>, transform_indices = @transform_1, window_bounds = array<i64: 128, 256>}, {pipeline_mode = #tpu.pipeline_mode<synchronous>, transform_indices = @transform_2, window_bounds = array<i64: 1, 256>}, {pipeline_mode = #tpu.pipeline_mode<synchronous>, transform_indices = @transform_3, window_bounds = array<i64: 1, 256>}, {pipeline_mode = #tpu.pipeline_mode<synchronous>, transform_indices = @transform_4, window_bounds = array<i64: 1, 256>}, {pipeline_mode = #tpu.pipeline_mode<synchronous>, transform_indices = @transform_5, window_bounds = array<i64: 256, 256>}, {pipeline_mode = #tpu.pipeline_mode<synchronous>, transform_indices = @transform_6, window_bounds = array<i64: 1, 256>}, {transform_indices = @transform_7, window_bounds = array<i64: 256, 256>}]} {
    %c0 = arith.constant 0 : index
    %c0_0 = arith.constant 0 : index
    %0 = vector.load %arg1[%c0, %c0_0] : memref<256x128xbf16, #tpu.memory_space<vmem>>, vector<256x128xbf16>
    %c0_1 = arith.constant 0 : index
    %c0_2 = arith.constant 0 : index
    %1 = vector.load %arg2[%c0_1, %c0_2] : memref<128x256xbf16, #tpu.memory_space<vmem>>, vector<128x256xbf16>
    %cst = arith.constant dense<0.000000e+00> : vector<256x256xf32>
    %2 = tpu.matmul %0, %1, %cst {dimension_numbers = #tpu.dot_dimension_numbers<[1], [0], [0], [1], [0, 0, 1, 1], [], []>} : vector<256x128xbf16>, vector<128x256xbf16>, vector<256x256xf32> -> vector<256x256xf32>
    %c0_3 = arith.constant 0 : index
    %c0_4 = arith.constant 0 : index
    %3 = vector.load %arg3[%c0_3, %c0_4] : memref<1x256xf32, #tpu.memory_space<vmem>>, vector<1x256xf32>
    %4 = vector.broadcast %3 : vector<1x256xf32> to vector<256x256xf32>
    %5 = arith.addf %2, %4 : vector<256x256xf32>
    %cst_5 = arith.constant dense<0.000000e+00> : vector<256xf32>
    %6 = vector.multi_reduction <add>, %5, %cst_5 [1] : vector<256x256xf32> to vector<256xf32>
    %7 = vector.shape_cast %6 : vector<256xf32> to vector<256x1xf32>
    %cst_6 = arith.constant 2.560000e+02 : f32
    %8 = vector.broadcast %cst_6 : f32 to vector<256x1xf32>
    %9 = arith.divf %7, %8 : vector<256x1xf32>
    %10 = vector.broadcast %9 : vector<256x1xf32> to vector<256x256xf32>
    %11 = arith.subf %5, %10 : vector<256x256xf32>
    %12 = arith.mulf %11, %11 : vector<256x256xf32>
    %cst_7 = arith.constant dense<0.000000e+00> : vector<256xf32>
    %13 = vector.multi_reduction <add>, %12, %cst_7 [1] : vector<256x256xf32> to vector<256xf32>
    %14 = vector.shape_cast %13 : vector<256xf32> to vector<256x1xf32>
    %cst_8 = arith.constant 2.560000e+02 : f32
    %15 = vector.broadcast %cst_8 : f32 to vector<256x1xf32>
    %16 = arith.divf %14, %15 : vector<256x1xf32>
    %cst_9 = arith.constant 9.99999974E-6 : f32
    %17 = vector.broadcast %cst_9 : f32 to vector<256x1xf32>
    %18 = arith.addf %16, %17 : vector<256x1xf32>
    %19 = math.rsqrt %18 : vector<256x1xf32>
    %20 = vector.broadcast %19 : vector<256x1xf32> to vector<256x256xf32>
    %21 = arith.mulf %11, %20 : vector<256x256xf32>
    %c0_10 = arith.constant 0 : index
    %c0_11 = arith.constant 0 : index
    %22 = vector.load %arg4[%c0_10, %c0_11] : memref<1x256xf32, #tpu.memory_space<vmem>>, vector<1x256xf32>
    %23 = vector.broadcast %22 : vector<1x256xf32> to vector<256x256xf32>
    %24 = arith.mulf %21, %23 : vector<256x256xf32>
    %c0_12 = arith.constant 0 : index
    %c0_13 = arith.constant 0 : index
    %25 = vector.load %arg5[%c0_12, %c0_13] : memref<1x256xf32, #tpu.memory_space<vmem>>, vector<1x256xf32>
    %26 = vector.broadcast %25 : vector<1x256xf32> to vector<256x256xf32>
    %27 = arith.addf %24, %26 : vector<256x256xf32>
    %cst_14 = arith.constant 5.000000e-01 : f32
    %28 = vector.broadcast %cst_14 : f32 to vector<256x256xf32>
    %29 = arith.mulf %28, %27 : vector<256x256xf32>
    %cst_15 = arith.constant 4.471500e-02 : f32
    %30 = vector.broadcast %cst_15 : f32 to vector<256x256xf32>
    %31 = arith.mulf %30, %27 : vector<256x256xf32>
    %32 = arith.mulf %31, %27 : vector<256x256xf32>
    %33 = arith.mulf %32, %27 : vector<256x256xf32>
    %34 = arith.addf %27, %33 : vector<256x256xf32>
    %cst_16 = arith.constant 0.797884583 : f32
    %35 = vector.broadcast %cst_16 : f32 to vector<256x256xf32>
    %36 = arith.mulf %35, %34 : vector<256x256xf32>
    %37 = math.tanh %36 : vector<256x256xf32>
    %cst_17 = arith.constant 1.000000e+00 : f32
    %38 = vector.broadcast %cst_17 : f32 to vector<256x256xf32>
    %39 = arith.addf %38, %37 : vector<256x256xf32>
    %40 = arith.mulf %29, %39 : vector<256x256xf32>
    %41 = arith.truncf %40 : vector<256x256xf32> to vector<256x256xbf16>
    %c0_18 = arith.constant 0 : index
    %c0_19 = arith.constant 0 : index
    %42 = vector.load %arg6[%c0_18, %c0_19] : memref<256x256xbf16, #tpu.memory_space<vmem>>, vector<256x256xbf16>
    %cst_20 = arith.constant dense<0.000000e+00> : vector<256x256xf32>
    %43 = tpu.matmul %41, %42, %cst_20 {dimension_numbers = #tpu.dot_dimension_numbers<[1], [0], [0], [1], [0, 0, 1, 1], [], []>} : vector<256x256xbf16>, vector<256x256xbf16>, vector<256x256xf32> -> vector<256x256xf32>
    %c0_21 = arith.constant 0 : index
    %c0_22 = arith.constant 0 : index
    %44 = vector.load %arg7[%c0_21, %c0_22] : memref<1x256xf32, #tpu.memory_space<vmem>>, vector<1x256xf32>
    %45 = vector.broadcast %44 : vector<1x256xf32> to vector<256x256xf32>
    %46 = arith.addf %43, %45 : vector<256x256xf32>
    %c0_23 = arith.constant 0 : index
    %c0_24 = arith.constant 0 : index
    %47 = vector.load %arg8[%c0_23, %c0_24] : memref<256x256xf32, #tpu.memory_space<vmem>>, vector<256x256xf32>
    tpu.vector_store %arg8[%c0_23, %c0_24], %46 {strides = array<i32>} : memref<256x256xf32, #tpu.memory_space<vmem>>, vector<256x256xf32>,
    return
  }
  func.func @transform_0(%arg0: i32) -> (i32, i32) {
    %c0_i32 = arith.constant 0 : i32
    %c0_i32_0 = arith.constant 0 : i32
    return %arg0, %c0_i32 : i32, i32
  }
  func.func @transform_1(%arg0: i32) -> (i32, i32) {
    %c0_i32 = arith.constant 0 : i32
    %c0_i32_0 = arith.constant 0 : i32
    %c0_i32_1 = arith.constant 0 : i32
    return %c0_i32, %c0_i32_0 : i32, i32
  }
  func.func @transform_2(%arg0: i32) -> (i32, i32) {
    %c0_i32 = arith.constant 0 : i32
    %c0_i32_0 = arith.constant 0 : i32
    %c0_i32_1 = arith.constant 0 : i32
    return %c0_i32, %c0_i32_0 : i32, i32
  }
  func.func @transform_3(%arg0: i32) -> (i32, i32) {
    %c0_i32 = arith.constant 0 : i32
    %c0_i32_0 = arith.constant 0 : i32
    %c0_i32_1 = arith.constant 0 : i32
    return %c0_i32, %c0_i32_0 : i32, i32
  }
  func.func @transform_4(%arg0: i32) -> (i32, i32) {
    %c0_i32 = arith.constant 0 : i32
    %c0_i32_0 = arith.constant 0 : i32
    %c0_i32_1 = arith.constant 0 : i32
    return %c0_i32, %c0_i32_0 : i32, i32
  }
  func.func @transform_5(%arg0: i32) -> (i32, i32) {
    %c0_i32 = arith.constant 0 : i32
    %c0_i32_0 = arith.constant 0 : i32
    %c0_i32_1 = arith.constant 0 : i32
    return %c0_i32, %c0_i32_0 : i32, i32
  }
  func.func @transform_6(%arg0: i32) -> (i32, i32) {
    %c0_i32 = arith.constant 0 : i32
    %c0_i32_0 = arith.constant 0 : i32
    %c0_i32_1 = arith.constant 0 : i32
    return %c0_i32, %c0_i32_0 : i32, i32
  }
  func.func @transform_7(%arg0: i32) -> (i32, i32) {
    %c0_i32 = arith.constant 0 : i32
    %c0_i32_0 = arith.constant 0 : i32
    return %arg0, %c0_i32 : i32, i32
  }
}

</mosaic_0001>

<bundles_post_ra>
// kernel: generator_forward_prepared.1
= control target key start
LH: loop header
LB: loop body
LE: loop exit
PB: predicated region body
PF: predicated region fallthrough
CT: control target
= control target key end

     0   :  { %12 = vsyncpa [#allocation3], 0  ;;  %s4857_s0 = inlined_call_operand.vmem [shape: bf16[512,128], index: 0, kind: input, shape index: {}]   ;;  %s4858_s1 = inlined_call_operand.vmem [shape: bf16[128,256], index: 1, kind: input, shape index: {}]   ;;  %s4859_s2 = inlined_call_operand.vmem [shape: f32[1,256], index: 2, kind: input, shape index: {}]   ;;  %s4860_s3 = inlined_call_operand.vmem [shape: f32[1,256], index: 3, kind: input, shape index: {}]   ;;  %s4861_s4 = inlined_call_operand.vmem [shape: f32[1,256], index: 4, kind: input, shape index: {}]   ;;  %s4862_s5 = inlined_call_operand.vmem [shape: bf16[256,256], index: 5, kind: input, shape index: {}]   ;;  %s4863_s6 = inlined_call_operand.vmem [shape: f32[1,256], index: 6, kind: input, shape index: {}]   ;;  %s4864_s7 = inlined_call_operand.hbm [shape: f32[512,256], index: 7, kind: output, shape index: {}]  }
   0x1   :  { %14 = vsyncpa [#allocation3 + $0x1], 0  ;;  %s3062_s24 = smov 0   ;;  %s3064_s25 = smov 0  }
   0x2   :  { %s3066_s26 = smov 0   ;;  %s3068_s27 = smov 0  }
   0x3 LB: > { %s3083_s28 = sadd.s32 4294967295, %s3016_s27   ;;  %s2521_s29 = sadd.s32 4294967294, %s3016_s27   ;;  %s3016_s27 = sphi %s3068_s27, %s5005_s27   ;;  %s3012_s26 = sphi %s3066_s26, %s5004_s26   ;;  %s3008_s25 = sphi %s3064_s25, %s5003_s25   ;;  %s3004_s24 = sphi %s3062_s24, %s5002_s24  }
   0x4   : > { %s3087_s30 = sadd.s32 1, %s3016_s27   ;;  %s179_s8 = sadd.s32 1, %s3012_s26 }
   0x5   : > { %s176_s9 = ssub.s32 %s3016_s27, %s3087_s30  ;;  %p189_p0 = scmp.ne.s32.totalorder %s3012_s26, %s3008_s25 }
   0x6   : > { %p177_p1 = scmp.eq.s32.totalorder %s176_s9, 0  ;;  %p190_p2 = scmp.eq.s32.totalorder %s3083_s28, 1 }
   0x7   : > { %p195_p3 = scmp.ne.s32.totalorder %s3008_s25, %s3004_s24  ;;  %p196_p4 = scmp.eq.s32.totalorder %s2521_s29, 1 }
   0x8   : > { %s3098_s10 = scalar_select %p177_p1, %s3012_s26, %s179_s8  }
   0x9   : > { %p3100_p5 = por %p190_p2, %p189_p0  ;;  %p3104_p6 = por %p196_p4, %p195_p3 }
   0xa   : > { %p2524_p7 = scmp.ge.s32.totalorder %s3016_s27, 1  ;;  %p241_p8 = scmp.lt.s32.totalorder %s3016_s27, 3 }
   0xc   : > { %p242_p9 = pnand %p2524_p7, %p241_p8 }
   0xe   : > { %245 = sbr.rel (%p242_p9) target bundleno = 1068 (0x42c), region = 48 }
  0x15   : > { %v2674_v0 = vld [vmem:[%s4858_s1 + $0x4] ss:$8 sps:$4 sm:$0xff]   ;;  %s2526_s15 = sshll.u32 %s3083_s28, 5  ;;  %v2676_v1 = vld [vmem:[%s4858_s1] ss:$8 sps:$4 sm:$0xff]   ;;  %v3018_v2 = vmov 0   ;;  %v331_v36 = vlaneseq }
  0x16   : > { %549 = vmatprep.mubr.bf16.mxu0 %v3018_v2  ;;  %p274_p10 = scmp.lt.s32.totalorder %s2526_s15, 63  ;;  %517 = vmatprep.subr.bf16.mxu0 %v2674_v0  ;;  %v2677_v3 = vld [vmem:[%s4858_s1 + $0x14] ss:$8 sps:$4 sm:$0xff]   ;;  %v2679_v4 = vld [vmem:[%s4858_s1 + $0x10] ss:$8 sps:$4 sm:$0xff]   ;;  %s2599_s13 = sshll.u32 %s3083_s28, 13 }
  0x17   : > { %518 = vmatpush1.bf16.msra.mxu0 %v2676_v1  ;;  %v2680_v5 = vld [vmem:[%s4858_s1 + $0x24] ss:$8 sps:$4 sm:$0xff]   ;;  %v2682_v6 = vld [vmem:[%s4858_s1 + $0x20] ss:$8 sps:$4 sm:$0xff]   ;;  %v2683_v7 = vld [vmem:[%s4858_s1 + $0x34] ss:$8 sps:$4 sm:$0xff]   ;;  %s4806_s19 = scalar_lea.hbm %s4864_s7, %s2599_s13 }
  0x18   : > { %s5007_s15 = smov (!%p274_p10, %s2526_s15), 63  ;;  %519 = vmatprep.subr.bf16.mxu0 %v2677_v3  ;;  %v2685_v8 = vld [vmem:[%s4858_s1 + $0x30] ss:$8 sps:$4 sm:$0xff]   ;;  %v2686_v9 = vld [vmem:[%s4858_s1 + $0x44] ss:$8 sps:$4 sm:$0xff]   ;;  %v332_v38 = vshrl.u32 %v331_v36, 7 }
  0x19   : > { %s2527_s29 = sshll.u32 %s5007_s15, 2  ;;  %v2688_v10 = vld [vmem:[%s4858_s1 + $0x40] ss:$8 sps:$4 sm:$0xff]   ;;  %v2689_v11 = vld [vmem:[%s4858_s1 + $0x54] ss:$8 sps:$4 sm:$0xff]   ;;  %s3019_s15 = smov [#allocation2]  }
  0x1a   : > { %s3136_s18 = scalar_lea.vmem %s4857_s0, %s2527_s29  ;;  %v2691_v12 = vld [vmem:[%s4858_s1 + $0x50] ss:$8 sps:$4 sm:$0xff]   ;;  %v2692_v13 = vld [vmem:[%s4858_s1 + $0x64] ss:$8 sps:$4 sm:$0xff]   ;;  %v2694_v14 = vld [vmem:[%s4858_s1 + $0x60] ss:$8 sps:$4 sm:$0xff]  }
  0x1b   : > { %520 = vmatpush1.bf16.msra.mxu0 %v2679_v4  ;;  %v2695_v15 = vld [vmem:[%s4858_s1 + $0x74] ss:$8 sps:$4 sm:$0xff]   ;;  %v2697_v16 = vld [vmem:[%s4858_s1 + $0x70] ss:$8 sps:$4 sm:$0xff]   ;;  %v2698_v17 = vld [vmem:[%s3136_s18] sm:$0xff]   ;;  %v3210_v42 = vsub.s32 0, %v332_v38 }
  0x1c   : > { %521 = vmatprep.subr.bf16.mxu0 %v2680_v5  ;;  %v2699_v18 = vld [vmem:[%s3136_s18 + $0x8] sm:$0xff]   ;;  %v2700_v19 = vld [vmem:[%s3136_s18 + $0x10] sm:$0xff]   ;;  %v2701_v20 = vld [vmem:[%s3136_s18 + $0x18] sm:$0xff]   ;;  %v3217_v45 = vsub.s32 1, %v332_v38  ;;  %s2958_s21 = sshll.u32 %s3019_s15, 4  ;;  %s2959_s21 = int_to_ptr.vmem [resolvable:$false] %s2958_s21 }
  0x1d   : > { %v2702_v21 = vld [vmem:[%s3136_s18 + $0x20] sm:$0xff]   ;;  %v2703_v22 = vld [vmem:[%s3136_s18 + $0x28] sm:$0xff]   ;;  %v2704_v23 = vld [vmem:[%s3136_s18 + $0x30] sm:$0xff]   ;;  %4914 = vst [vmem:[#allocation5_spill] sm:$0xff] %v3210_v42  ;;  %s2960_s22 = scalar_lea.vmem %s2959_s21, 16384 }
  0x1e   : > { %v2705_v24 = vld [vmem:[%s3136_s18 + $0x38] sm:$0xff]   ;;  %v2706_v25 = vld [vmem:[%s3136_s18 + $0x40] sm:$0xff]   ;;  %v2707_v26 = vld [vmem:[%s3136_s18 + $0x48] sm:$0xff]   ;;  %4915 = vst [vmem:[#allocation6_spill] sm:$0xff] %v3217_v45 }
  0x1f   : > { %522 = vmatpush1.bf16.msra.mxu0 %v2682_v6  ;;  %v2708_v27 = vld [vmem:[%s3136_s18 + $0x50] sm:$0xff]   ;;  %v2709_v28 = vld [vmem:[%s3136_s18 + $0x58] sm:$0xff]   ;;  %v2710_v29 = vld [vmem:[%s3136_s18 + $0x60] sm:$0xff]  }
  0x20   : > { %523 = vmatprep.subr.bf16.mxu0 %v2683_v7  ;;  %v2711_v30 = vld [vmem:[%s3136_s18 + $0x68] sm:$0xff]   ;;  %v2712_v31 = vld [vmem:[%s3136_s18 + $0x70] sm:$0xff]   ;;  %v2713_v32 = vld [vmem:[%s3136_s18 + $0x78] sm:$0xff]   ;;  %s270_s18 = sand.u32 1, %s3008_s25  }
  0x21   : > { %v329_v44 = vld [vmem:[%s4859_s2] sm:$0x3]  ;;  %s2525_s29 = sshll.u32 %s270_s18, 9  ;;  %s4816_s28 = scalar_lea.sflag [#allocation3], %s270_s18 }
  0x22   : > { %v3220_v46 = vrot.slane %v329_v44, %v3210_v42  ;;  %v3223_v47 = vrot.slane %v329_v44, %v3217_v45  ;;  %s4677_s9 = scalar_lea.vmem [#allocation2], %s2525_s29 }
  0x23   : > { %524 = vmatpush1.bf16.msra.mxu0 %v2685_v8  ;;  %s2459_s14 = sshll.u32 %s4677_s9, 4  ;;  %s4808_s14 = int_to_ptr.vmem [resolvable:$true] %s2459_s14 }
  0x24   : > { %525 = vmatprep.subr.bf16.mxu0 %v2686_v9  ;;  %s2954_s20 = scalar_lea.vmem %s4808_s14, 8192  ;;  %p2961_p0 = scmp.lt.s32.totalorder %s4808_s14, %s2959_s21 }
  0x25   : > { %p2955_p11 = scmp.ne.s32.totalorder %s4808_s14, %s2954_s20  ;;  %p2962_p1 = scmp.lt.s32.totalorder %s2960_s22, %s2954_s20 }
  0x27   : > { %526 = vmatpush1.bf16.msra.mxu0 %v2688_v10  ;;  %p2956_p12 = pnand %p2955_p11, %p3100_p5  ;;  %p2963_p2 = por %p2962_p1, %p2961_p0 }
  0x28   : > { %527 = vmatprep.subr.bf16.mxu0 %v2689_v11 }
  0x29   : > { %p2957_p13 = pneg %p2956_p12 }
  0x2b   : > { %528 = vmatpush1.bf16.msra.mxu0 %v2691_v12  ;;  %p2964_p3 = pnand %p2963_p2, %p2957_p13 }
  0x2c   : > { %529 = vmatprep.subr.bf16.mxu0 %v2692_v13 }
  0x2f   : > { %530 = vmatpush1.bf16.msra.mxu0 %v2694_v14 }
  0x30   : > { %531 = vmatprep.subr.bf16.mxu0 %v2695_v15 }
  0x33   : > { %532 = vmatpush1.bf16.msra.mxu0 %v2697_v16 }
  0x36   : > { %550 = vmatmul.mubr.bf16.vlgmr.msra.gmra.mrb[0].mxu0 %v2698_v17 }
  0x37   : > { %559 = vmatprep.mubr.bf16.mxu0 %v3018_v2 }
  0x3e   : > { %560 = vmatmul.mubr.bf16.gmra.mrb[4].mxu0 %v2699_v18 }
  0x3f   : > { %569 = vmatprep.mubr.bf16.mxu0 %v3018_v2 }
  0x46   : > { %570 = vmatmul.mubr.bf16.gmra.mrb[8].mxu0 %v2700_v19 }
  0x47   : > { %579 = vmatprep.mubr.bf16.mxu0 %v3018_v2 }
  0x4e   : > { %580 = vmatmul.mubr.bf16.gmra.mrb[12].mxu0 %v2701_v20 }
  0x4f   : > { %589 = vmatprep.mubr.bf16.mxu0 %v3018_v2 }
  0x56   : > { %590 = vmatmul.mubr.bf16.gmra.mrb[16].mxu0 %v2702_v21 }
  0x57   : > { %599 = vmatprep.mubr.bf16.mxu0 %v3018_v2 }
  0x5e   : > { %600 = vmatmul.mubr.bf16.gmra.mrb[20].mxu0 %v2703_v22 }
  0x5f   : > { %609 = vmatprep.mubr.bf16.mxu0 %v3018_v2 }
  0x66   : > { %610 = vmatmul.mubr.bf16.gmra.mrb[24].mxu0 %v2704_v23 }
  0x67   : > { %619 = vmatprep.mubr.bf16.mxu0 %v3018_v2 }
  0x6e   : > { %620 = vmatmul.mubr.bf16.gmra.mrb[28].mxu0 %v2705_v24 }
  0x6f   : > { %629 = vmatprep.mubr.bf16.mxu0 %v3018_v2 }
  0x76   : > { %630 = vmatmul.mubr.bf16.gmra.mrb[32].mxu0 %v2706_v25 }
  0x77   : > { %639 = vmatprep.mubr.bf16.mxu0 %v3018_v2 }
  0x7e   : > { %640 = vmatmul.mubr.bf16.gmra.mrb[36].mxu0 %v2707_v26 }
  0x7f   : > { %649 = vmatprep.mubr.bf16.mxu0 %v3018_v2 }
  0x86   : > { %650 = vmatmul.mubr.bf16.gmra.mrb[40].mxu0 %v2708_v27 }
  0x87   : > { %659 = vmatprep.mubr.bf16.mxu0 %v3018_v2 }
  0x8e   : > { %660 = vmatmul.mubr.bf16.gmra.mrb[44].mxu0 %v2709_v28 }
  0x8f   : > { %669 = vmatprep.mubr.bf16.mxu0 %v3018_v2 }
  0x96   : > { %670 = vmatmul.mubr.bf16.gmra.mrb[48].mxu0 %v2710_v29 }
  0x97   : > { %679 = vmatprep.mubr.bf16.mxu0 %v3018_v2 }
  0x9e   : > { %680 = vmatmul.mubr.bf16.gmra.mrb[52].mxu0 %v2711_v30 }
  0x9f   : > { %689 = vmatprep.mubr.bf16.mxu0 %v3018_v2 }
  0xa6   : > { %690 = vmatmul.mubr.bf16.gmra.mrb[56].mxu0 %v2712_v31 }
  0xa7   : > { %699 = vmatprep.mubr.bf16.mxu0 %v3018_v2 }
  0xae   : > { %700 = vmatmul.mubr.bf16.gmra.mrb[60].mxu0 %v2713_v32 }
 0x109   : > { %v3196_v33 = vpop.f32.mrb[0].mxu0 }
 0x10a   : > { %v3198_v34 = vpop.f32.mrb[1].mxu0 }
 0x10b   : > { %v3200_v35 = vpop.f32.mrb[2].mxu0 }
 0x10c   : > { %v3202_v37 = vpop.f32.mrb[3].mxu0 }
 0x111   : > { %v3204_v39 = vpop.f32.mrb[4].mxu0 }
 0x112   : > { %v3206_v40 = vpop.f32.mrb[5].mxu0 }
 0x113   : > { %v3208_v41 = vpop.f32.mrb[6].mxu0 }
 0x114   : > { %v3212_v43 = vpop.f32.mrb[7].mxu0 }
 0x119   : > { %v571_v48 = vpop.f32.mrb[8].mxu0 }
 0x11a   : > { %v3226_v49 = vadd.f32 %v571_v48, %v3220_v46  ;;  %v573_v50 = vpop.f32.mrb[9].mxu0 }
 0x11b   : > { %v3229_v51 = vadd.f32 %v573_v50, %v3223_v47  ;;  %v575_v52 = vpop.f32.mrb[10].mxu0 }
 0x11c   : > { %v577_v53 = vpop.f32.mrb[11].mxu0  ;;  %v3232_v54 = vadd.f32 %v575_v52, %v3220_v46 }
 0x11d   : > { %v3235_v55 = vadd.f32 %v577_v53, %v3223_v47  ;;  %v722_v56 = vadd.f32 %v3229_v51, %v3226_v49 }
 0x11f   : > { %723 = vadd.xlane.f32.xlu0 %v722_v56  ;;  %v725_v58 = vadd.f32 %v3235_v55, %v3232_v54 }
 0x121   : > { %v581_v57 = vpop.f32.mrb[12].mxu0 }
 0x122   : > { %v3242_v59 = vadd.f32 %v581_v57, %v3220_v46  ;;  %v583_v60 = vpop.f32.mrb[13].mxu0 }
 0x123   : > { %v3245_v61 = vadd.f32 %v583_v60, %v3223_v47  ;;  %v585_v62 = vpop.f32.mrb[14].mxu0  ;;  %726 = vadd.xlane.f32.xlu0 %v725_v58 }
 0x124   : > { %v587_v63 = vpop.f32.mrb[15].mxu0  ;;  %v3248_v0 = vadd.f32 %v585_v62, %v3220_v46 }
 0x125   : > { %v3251_v1 = vadd.f32 %v587_v63, %v3223_v47  ;;  %v728_v2 = vadd.f32 %v3245_v61, %v3242_v59 }
 0x127   : > { %729 = vadd.xlane.f32.xlu1 %v728_v2  ;;  %v731_v4 = vadd.f32 %v3251_v1, %v3248_v0 }
 0x129   : > { %v591_v3 = vpop.f32.mrb[16].mxu0 }
 0x12a   : > { %v3258_v5 = vadd.f32 %v591_v3, %v3220_v46  ;;  %v593_v6 = vpop.f32.mrb[17].mxu0 }
 0x12b   : > { %v3261_v7 = vadd.f32 %v593_v6, %v3223_v47  ;;  %v595_v8 = vpop.f32.mrb[18].mxu0  ;;  %732 = vadd.xlane.f32.xlu1 %v731_v4 }
 0x12c   : > { %v3264_v9 = vadd.f32 %v595_v8, %v3220_v46  ;;  %v597_v10 = vpop.f32.mrb[19].mxu0 }
 0x12d   : > { %v3267_v11 = vadd.f32 %v597_v10, %v3223_v47  ;;  %v734_v12 = vadd.f32 %v3261_v7, %v3258_v5 }
 0x12f   : > { %735 = vadd.xlane.f32.xlu0 %v734_v12  ;;  %v737_v13 = vadd.f32 %v3267_v11, %v3264_v9 }
 0x131   : > { %v601_v14 = vpop.f32.mrb[20].mxu0  ;;  %738 = vadd.xlane.f32.xlu1 %v737_v13 }
 0x132   : > { %v3274_v15 = vadd.f32 %v601_v14, %v3220_v46  ;;  %v603_v16 = vpop.f32.mrb[21].mxu0 }
 0x133   : > { %v3277_v17 = vadd.f32 %v603_v16, %v3223_v47  ;;  %v605_v18 = vpop.f32.mrb[22].mxu0 }
 0x134   : > { %v3280_v19 = vadd.f32 %v605_v18, %v3220_v46  ;;  %v607_v20 = vpop.f32.mrb[23].mxu0 }
 0x135   : > { %v3283_v21 = vadd.f32 %v607_v20, %v3223_v47  ;;  %v740_v22 = vadd.f32 %v3277_v17, %v3274_v15 }
 0x137   : > { %741 = vadd.xlane.f32.xlu0 %v740_v22  ;;  %v743_v23 = vadd.f32 %v3283_v21, %v3280_v19 }
 0x139   : > { %v611_v24 = vpop.f32.mrb[24].mxu0  ;;  %744 = vadd.xlane.f32.xlu1 %v743_v23 }
 0x13a   : > { %v3290_v25 = vadd.f32 %v611_v24, %v3220_v46  ;;  %v613_v26 = vpop.f32.mrb[25].mxu0 }
 0x13b   : > { %v3293_v27 = vadd.f32 %v613_v26, %v3223_v47  ;;  %v615_v28 = vpop.f32.mrb[26].mxu0  ;;  %v3348_v26 = vadd.f32 %v3196_v33, %v3220_v46 }
 0x13c   : > { %v3296_v29 = vadd.f32 %v615_v28, %v3220_v46  ;;  %v617_v30 = vpop.f32.mrb[27].mxu0  ;;  %v3352_v28 = vadd.f32 %v3198_v34, %v3223_v47 }
 0x13d   : > { %v3299_v31 = vadd.f32 %v617_v30, %v3223_v47  ;;  %v746_v32 = vadd.f32 %v3293_v27, %v3290_v25  ;;  %4916 = vst [vmem:[#allocation7_spill] sm:$0xff] %v3348_v26 }
 0x13e   : > { %4917 = vst [vmem:[#allocation8_spill] sm:$0xff] %v3352_v28 }
 0x13f   : > { %747 = vadd.xlane.f32.xlu0 %v746_v32  ;;  %v749_v36 = vadd.f32 %v3299_v31, %v3296_v29 }
 0x141   : > { %v621_v38 = vpop.f32.mrb[28].mxu0  ;;  %750 = vadd.xlane.f32.xlu1 %v749_v36  ;;  %v3361_v36 = vadd.f32 %v3200_v35, %v3220_v46 }
 0x142   : > { %v3306_v44 = vadd.f32 %v621_v38, %v3220_v46  ;;  %v623_v48 = vpop.f32.mrb[29].mxu0  ;;  %v3365_v38 = vadd.f32 %v3202_v37, %v3223_v47 }
 0x143   : > { %v3309_v50 = vadd.f32 %v623_v48, %v3223_v47  ;;  %v625_v52 = vpop.f32.mrb[30].mxu0  ;;  %4918 = vst [vmem:[#allocation9_spill] sm:$0xff] %v3361_v36  ;;  %v710_v48 = vadd.f32 %v3352_v28, %v3348_v26 }
 0x144   : > { %v3312_v53 = vadd.f32 %v625_v52, %v3220_v46  ;;  %v627_v56 = vpop.f32.mrb[31].mxu0  ;;  %4919 = vst [vmem:[#allocation10_spill] sm:$0xff] %v3365_v38  ;;  %v713_v37 = vadd.f32 %v3365_v38, %v3361_v36 }
 0x145   : > { %v3315_v57 = vadd.f32 %v627_v56, %v3223_v47  ;;  %v752_v58 = vadd.f32 %v3309_v50, %v3306_v44 }
 0x147   : > { %753 = vadd.xlane.f32.xlu0 %v752_v58  ;;  %v755_v60 = vadd.f32 %v3315_v57, %v3312_v53 }
 0x149   : > { %v631_v62 = vpop.f32.mrb[32].mxu0  ;;  %756 = vadd.xlane.f32.xlu1 %v755_v60 }
 0x14a   : > { %v3322_v63 = vadd.f32 %v631_v62, %v3220_v46  ;;  %v633_v2 = vpop.f32.mrb[33].mxu0 }
 0x14b   : > { %v3325_v3 = vadd.f32 %v633_v2, %v3223_v47  ;;  %v635_v4 = vpop.f32.mrb[34].mxu0 }
 0x14c   : > { %v3328_v6 = vadd.f32 %v635_v4, %v3220_v46  ;;  %v637_v8 = vpop.f32.mrb[35].mxu0 }
 0x14d   : > { %v3331_v10 = vadd.f32 %v637_v8, %v3223_v47  ;;  %v758_v12 = vadd.f32 %v3325_v3, %v3322_v63 }
 0x14f   : > { %759 = vadd.xlane.f32.xlu0 %v758_v12  ;;  %v761_v13 = vadd.f32 %v3331_v10, %v3328_v6 }
 0x151   : > { %v641_v14 = vpop.f32.mrb[36].mxu0  ;;  %762 = vadd.xlane.f32.xlu1 %v761_v13 }
 0x152   : > { %v3338_v16 = vadd.f32 %v641_v14, %v3220_v46  ;;  %v643_v18 = vpop.f32.mrb[37].mxu0 }
 0x153   : > { %v3341_v20 = vadd.f32 %v643_v18, %v3223_v47  ;;  %v645_v22 = vpop.f32.mrb[38].mxu0 }
 0x154   : > { %v3344_v23 = vadd.f32 %v645_v22, %v3220_v46  ;;  %v647_v24 = vpop.f32.mrb[39].mxu0 }
 0x155   : > { %v3355_v30 = vadd.f32 %v647_v24, %v3223_v47  ;;  %v764_v32 = vadd.f32 %v3341_v20, %v3338_v16 }
 0x157   : > { %765 = vadd.xlane.f32.xlu0 %v764_v32  ;;  %v767_v33 = vadd.f32 %v3355_v30, %v3344_v23 }
 0x159   : > { %v651_v34 = vpop.f32.mrb[40].mxu0  ;;  %768 = vadd.xlane.f32.xlu1 %v767_v33 }
 0x15a   : > { %v3372_v52 = vadd.f32 %v651_v34, %v3220_v46  ;;  %v653_v56 = vpop.f32.mrb[41].mxu0 }
 0x15b   : > { %v3375_v35 = vadd.f32 %v653_v56, %v3223_v47  ;;  %v655_v58 = vpop.f32.mrb[42].mxu0  ;;  %711 = vadd.xlane.f32.xlu0 %v710_v48 }
 0x15c   : > { %v3380_v60 = vadd.f32 %v655_v58, %v3220_v46  ;;  %v657_v62 = vpop.f32.mrb[43].mxu0 }
 0x15d   : > { %v3383_v2 = vadd.f32 %v657_v62, %v3223_v47  ;;  %714 = vadd.xlane.f32.xlu1 %v713_v37  ;;  %v770_v4 = vadd.f32 %v3375_v35, %v3372_v52 }
 0x15f   : > { %771 = vadd.xlane.f32.xlu0 %v770_v4  ;;  %v773_v8 = vadd.f32 %v3383_v2, %v3380_v60 }
 0x161   : > { %v661_v12 = vpop.f32.mrb[44].mxu0  ;;  %774 = vadd.xlane.f32.xlu1 %v773_v8 }
 0x162   : > { %v3390_v13 = vadd.f32 %v661_v12, %v3220_v46  ;;  %v663_v14 = vpop.f32.mrb[45].mxu0 }
 0x163   : > { %v3393_v18 = vadd.f32 %v663_v14, %v3223_v47  ;;  %v665_v22 = vpop.f32.mrb[46].mxu0 }
 0x164   : > { %v3396_v24 = vadd.f32 %v665_v22, %v3220_v46  ;;  %v667_v32 = vpop.f32.mrb[47].mxu0 }
 0x165   : > { %v3399_v33 = vadd.f32 %v667_v32, %v3223_v47  ;;  %v776_v34 = vadd.f32 %v3393_v18, %v3390_v13 }
 0x167   : > { %4920 = vst [vmem:[#allocation11_spill] sm:$0xff] %v3399_v33  ;;  %777 = vadd.xlane.f32.xlu0 %v776_v34  ;;  %v779_v48 = vadd.f32 %v3399_v33, %v3396_v24 }
 0x169   : > { %v671_v56 = vpop.f32.mrb[48].mxu0  ;;  %780 = vadd.xlane.f32.xlu1 %v779_v48 }
 0x16a   : > { %v3406_v58 = vadd.f32 %v671_v56, %v3220_v46  ;;  %v673_v37 = vpop.f32.mrb[49].mxu0 }
 0x16b   : > { %v3409_v62 = vadd.f32 %v673_v37, %v3223_v47  ;;  %v675_v4 = vpop.f32.mrb[50].mxu0 }
 0x16c   : > { %4921 = vst [vmem:[#allocation12_spill] sm:$0xff] %v3406_v58  ;;  %v3412_v8 = vadd.f32 %v675_v4, %v3220_v46  ;;  %v677_v12 = vpop.f32.mrb[51].mxu0 }
 0x16d   : > { %4922 = vst [vmem:[#allocation13_spill] sm:$0xff] %v3409_v62  ;;  %v3415_v14 = vadd.f32 %v677_v12, %v3223_v47  ;;  %v782_v22 = vadd.f32 %v3409_v62, %v3406_v58 }
 0x16e   : > { %4923 = vst [vmem:[#allocation14_spill] sm:$0xff] %v3412_v8 }
 0x16f   : > { %4924 = vst [vmem:[#allocation15_spill] sm:$0xff] %v3415_v14  ;;  %783 = vadd.xlane.f32.xlu0 %v782_v22  ;;  %v785_v32 = vadd.f32 %v3415_v14, %v3412_v8 }
 0x171   : > { %v681_v34 = vpop.f32.mrb[52].mxu0  ;;  %786 = vadd.xlane.f32.xlu1 %v785_v32 }
 0x172   : > { %v3422_v48 = vadd.f32 %v681_v34, %v3220_v46  ;;  %v683_v56 = vpop.f32.mrb[53].mxu0 }
 0x173   : > { %v3425_v37 = vadd.f32 %v683_v56, %v3223_v47  ;;  %v685_v4 = vpop.f32.mrb[54].mxu0 }
 0x174   : > { %4925 = vst [vmem:[#allocation16_spill] sm:$0xff] %v3422_v48  ;;  %v3428_v12 = vadd.f32 %v685_v4, %v3220_v46  ;;  %v687_v42 = vpop.f32.mrb[55].mxu0 }
 0x175   : > { %4926 = vst [vmem:[#allocation17_spill] sm:$0xff] %v3425_v37  ;;  %v3431_v45 = vadd.f32 %v687_v42, %v3223_v47  ;;  %v788_v22 = vadd.f32 %v3425_v37, %v3422_v48  ;;  %v2720_v37 = vld [vmem:[%s4862_s5 + $0x24] ss:$8 sps:$4 sm:$0xff]   ;;  %v2722_v48 = vld [vmem:[%s4862_s5 + $0x20] ss:$8 sps:$4 sm:$0xff]  }
 0x176   : > { %4927 = vst [vmem:[#allocation18_spill] sm:$0xff] %v3428_v12 }
 0x177   : > { %4928 = vst [vmem:[#allocation19_spill] sm:$0xff] %v3431_v45  ;;  %789 = vadd.xlane.f32.xlu0 %v788_v22  ;;  %v791_v32 = vadd.f32 %v3431_v45, %v3428_v12  ;;  %v2714_v22 = vld [vmem:[%s4862_s5 + $0x4] ss:$8 sps:$4 sm:$0xff]   ;;  %v2717_v45 = vld [vmem:[%s4862_s5 + $0x14] ss:$8 sps:$4 sm:$0xff]  }
 0x178   : > { %2600 = vmatprep.subr.bf16.mxu1 %v2714_v22  ;;  %2187 = vmatprep.subr.bf16.mxu0 %v2714_v22  ;;  %v2719_v12 = vld [vmem:[%s4862_s5 + $0x10] ss:$8 sps:$4 sm:$0xff]  }
 0x179   : > { %792 = vadd.xlane.f32.xlu1 %v791_v32  ;;  %v691_v34 = vpop.f32.mrb[56].mxu0  ;;  %v2716_v32 = vld [vmem:[%s4862_s5] ss:$8 sps:$4 sm:$0xff]  }
 0x17a   : > { %v693_v38 = vpop.f32.mrb[57].mxu0  ;;  %2616 = vmatpush1.bf16.msra.mxu1 %v2716_v32  ;;  %2188 = vmatpush1.bf16.msra.mxu0 %v2716_v32 }
 0x17b   : > { %v695_v56 = vpop.f32.mrb[58].mxu0  ;;  %2601 = vmatprep.subr.bf16.mxu1 %v2717_v45  ;;  %2189 = vmatprep.subr.bf16.mxu0 %v2717_v45  ;;  %v3470_v45 = vadd.f32 %v691_v34, %v3220_v46  ;;  %v3473_v33 = vadd.f32 %v693_v38, %v3223_v47 }
 0x17c   : > { %v697_v36 = vpop.f32.mrb[59].mxu0 }
 0x17e   : > { %2617 = vmatpush1.bf16.msra.mxu1 %v2719_v12  ;;  %2190 = vmatpush1.bf16.msra.mxu0 %v2719_v12 }
 0x17f   : > { %2602 = vmatprep.subr.bf16.mxu1 %v2720_v37  ;;  %2191 = vmatprep.subr.bf16.mxu0 %v2720_v37 }
 0x181   : > { %v3437_v28 = vpop.f32.mrb[60].mxu0 }
 0x182   : > { %v3439_v4 = vpop.f32.mrb[61].mxu0  ;;  %2618 = vmatpush1.bf16.msra.mxu1 %v2722_v48  ;;  %2192 = vmatpush1.bf16.msra.mxu0 %v2722_v48 }
 0x183   : > { %v3441_v26 = vpop.f32.mrb[62].mxu0 }
 0x184   : > { %v3443_v42 = vpop.f32.mrb[63].mxu0 }
 0x1ac   : > { %v724_v22 = vpop.xlane.xlu0 %723 }
 0x1ad   : > { %v811_v14 = vmul.f32 0.00390625, %v724_v22  ;;  %v794_v22 = vadd.f32 %v3473_v33, %v3470_v45 }
 0x1af   : > { %v3464_v32 = vsub.f32 %v3226_v49, %v811_v14  ;;  %v3467_v8 = vsub.f32 %v3229_v51, %v811_v14 }
 0x1b0   : > { %v727_v62 = vpop.xlane.xlu0 %726 }
 0x1b1   : > { %4929 = vst [vmem:[#allocation20_spill] sm:$0xff] %v3464_v32  ;;  %v812_v58 = vmul.f32 0.00390625, %v727_v62  ;;  %v911_v37 = vmul.f32 %v3464_v32, %v3464_v32  ;;  %v912_v48 = vmul.f32 %v3467_v8, %v3467_v8  ;;  %v3492_v32 = vadd.f32 %v695_v56, %v3220_v46 }
 0x1b3   : > { %v3480_v49 = vsub.f32 %v3232_v54, %v812_v58  ;;  %v3483_v51 = vsub.f32 %v3235_v55, %v812_v58  ;;  %v979_v14 = vadd.f32 %v912_v48, %v911_v37  ;;  %v3501_v58 = vadd.f32 %v697_v36, %v3223_v47 }
 0x1b4   : > { %v730_v12 = vpop.xlane.xlu1 %729 }
 0x1b5   : > { %v813_v34 = vmul.f32 0.00390625, %v730_v12  ;;  %980 = vadd.xlane.f32.xlu0 %v979_v14  ;;  %v913_v38 = vmul.f32 %v3480_v49, %v3480_v49  ;;  %v914_v62 = vmul.f32 %v3483_v51, %v3483_v51 }
 0x1b7   : > { %v3495_v54 = vsub.f32 %v3242_v59, %v813_v34  ;;  %v3498_v55 = vsub.f32 %v3245_v61, %v813_v34  ;;  %v982_v37 = vadd.f32 %v914_v62, %v913_v38  ;;  %v3509_v59 = vadd.f32 %v3204_v39, %v3220_v46 }
 0x1b8   : > { %v733_v48 = vpop.xlane.xlu1 %732  ;;  %v3513_v61 = vadd.f32 %v3206_v40, %v3223_v47  ;;  %v797_v38 = vadd.f32 %v3501_v58, %v3492_v32 }
 0x1b9   : > { %v814_v14 = vmul.f32 0.00390625, %v733_v48  ;;  %983 = vadd.xlane.f32.xlu1 %v982_v37  ;;  %795 = vadd.xlane.f32.xlu0 %v794_v22  ;;  %v915_v12 = vmul.f32 %v3495_v54, %v3495_v54  ;;  %v916_v56 = vmul.f32 %v3498_v55, %v3498_v55 }
 0x1bb   : > { %v3516_v36 = vsub.f32 %v3248_v0, %v814_v14  ;;  %v3519_v34 = vsub.f32 %v3251_v1, %v814_v14  ;;  %v985_v62 = vadd.f32 %v916_v56, %v915_v12  ;;  %v3529_v0 = vadd.f32 %v3208_v41, %v3220_v46 }
 0x1bc   : > { %v736_v22 = vpop.xlane.xlu0 %735  ;;  %v3533_v1 = vadd.f32 %v3212_v43, %v3223_v47  ;;  %v716_v14 = vadd.f32 %v3513_v61, %v3509_v59 }
 0x1bd   : > { %v815_v37 = vmul.f32 0.00390625, %v736_v22  ;;  %798 = vadd.xlane.f32.xlu1 %v797_v38  ;;  %986 = vadd.xlane.f32.xlu0 %v985_v62  ;;  %v917_v39 = vmul.f32 %v3516_v36, %v3516_v36  ;;  %v918_v40 = vmul.f32 %v3519_v34, %v3519_v34 }
 0x1be   : > { %v739_v48 = vpop.xlane.xlu1 %738 }
 0x1bf   : > { %v3538_v12 = vsub.f32 %v3258_v5, %v815_v37  ;;  %v3541_v56 = vsub.f32 %v3261_v7, %v815_v37  ;;  %v816_v38 = vmul.f32 0.00390625, %v739_v48  ;;  %v988_v62 = vadd.f32 %v918_v40, %v917_v39 }
 0x1c0   : > { %v3553_v5 = vadd.f32 %v3437_v28, %v3220_v46  ;;  %v3557_v7 = vadd.f32 %v3439_v4, %v3223_v47  ;;  %v2723_v28 = vld [vmem:[%s4862_s5 + $0x34] ss:$8 sps:$4 sm:$0xff]   ;;  %v2725_v4 = vld [vmem:[%s4862_s5 + $0x30] ss:$8 sps:$4 sm:$0xff]  }
 0x1c1   : > { %v3544_v22 = vsub.f32 %v3264_v9, %v816_v38  ;;  %v3547_v41 = vsub.f32 %v3267_v11, %v816_v38  ;;  %989 = vadd.xlane.f32.xlu1 %v988_v62  ;;  %717 = vadd.xlane.f32.xlu0 %v716_v14  ;;  %v919_v43 = vmul.f32 %v3538_v12, %v3538_v12 }
 0x1c2   : > { %v920_v9 = vmul.f32 %v3541_v56, %v3541_v56  ;;  %v719_v11 = vadd.f32 %v3533_v1, %v3529_v0  ;;  %2603 = vmatprep.subr.bf16.mxu1 %v2723_v28  ;;  %v3575_v38 = vadd.f32 %v3441_v26, %v3220_v46  ;;  %v3579_v62 = vadd.f32 %v3443_v42, %v3223_v47  ;;  %v2726_v46 = vld [vmem:[%s4862_s5 + $0x44] ss:$8 sps:$4 sm:$0xff]   ;;  %v2728_v47 = vld [vmem:[%s4862_s5 + $0x40] ss:$8 sps:$4 sm:$0xff]  }
 0x1c3   : > { %4930 = vst [vmem:[#allocation21_spill] sm:$0xff] %v3544_v22  ;;  %4931 = vst [vmem:[#allocation22_spill] sm:$0xff] %v3547_v41  ;;  %v921_v37 = vmul.f32 %v3544_v22, %v3544_v22  ;;  %v922_v39 = vmul.f32 %v3547_v41, %v3547_v41  ;;  %2619 = vmatpush1.bf16.msra.mxu1 %v2725_v4  ;;  %2193 = vmatprep.subr.bf16.mxu0 %v2723_v28  ;;  %v2731_v28 = vld [vmem:[%s4862_s5 + $0x50] ss:$8 sps:$4 sm:$0xff]  }
 0x1c4   : > { %v742_v40 = vpop.xlane.xlu0 %741  ;;  %v991_v48 = vadd.f32 %v920_v9, %v919_v43  ;;  %v800_v43 = vadd.f32 %v3557_v7, %v3553_v5  ;;  %2194 = vmatpush1.bf16.msra.mxu0 %v2725_v4  ;;  %2604 = vmatprep.subr.bf16.mxu1 %v2726_v46 }
 0x1c5   : > { %v817_v14 = vmul.f32 0.00390625, %v742_v40  ;;  %720 = vadd.xlane.f32.xlu1 %v719_v11  ;;  %v994_v22 = vadd.f32 %v922_v39, %v921_v37  ;;  %2195 = vmatprep.subr.bf16.mxu0 %v2726_v46 }
 0x1c6   : > { %992 = vadd.xlane.f32.xlu0 %v991_v48  ;;  %v745_v41 = vpop.xlane.xlu1 %744 }
 0x1c7   : > { %v3584_v9 = vsub.f32 %v3274_v15, %v817_v14  ;;  %v3587_v11 = vsub.f32 %v3277_v17, %v817_v14  ;;  %v818_v40 = vmul.f32 0.00390625, %v745_v41  ;;  %v803_v41 = vadd.f32 %v3579_v62, %v3575_v38  ;;  %2620 = vmatpush1.bf16.msra.mxu1 %v2728_v47 }
 0x1c8   : > { %2196 = vmatpush1.bf16.msra.mxu0 %v2728_v47  ;;  %v2734_v47 = vld [vmem:[%s4862_s5 + $0x60] ss:$8 sps:$4 sm:$0xff]  }
 0x1c9   : > { %v3596_v26 = vsub.f32 %v3280_v19, %v818_v40  ;;  %v3599_v15 = vsub.f32 %v3283_v21, %v818_v40  ;;  %995 = vadd.xlane.f32.xlu1 %v994_v22  ;;  %v923_v17 = vmul.f32 %v3584_v9, %v3584_v9  ;;  %v924_v42 = vmul.f32 %v3587_v11, %v3587_v11  ;;  %v2729_v22 = vld [vmem:[%s4862_s5 + $0x54] ss:$8 sps:$4 sm:$0xff]  }
 0x1ca   : > { %801 = vadd.xlane.f32.xlu0 %v800_v43  ;;  %2605 = vmatprep.subr.bf16.mxu1 %v2729_v22 }
 0x1cb   : > { %v997_v37 = vadd.f32 %v924_v42, %v923_v17  ;;  %v925_v19 = vmul.f32 %v3596_v26, %v3596_v26  ;;  %v926_v21 = vmul.f32 %v3599_v15, %v3599_v15  ;;  %2197 = vmatprep.subr.bf16.mxu0 %v2729_v22  ;;  %2621 = vmatpush1.bf16.msra.mxu1 %v2731_v28  ;;  %v2732_v17 = vld [vmem:[%s4862_s5 + $0x64] ss:$8 sps:$4 sm:$0xff]   ;;  %v2737_v22 = vld [vmem:[%s4862_s5 + $0x70] ss:$8 sps:$4 sm:$0xff]  }
 0x1cc   : > { %v748_v39 = vpop.xlane.xlu0 %747  ;;  %2198 = vmatpush1.bf16.msra.mxu0 %v2731_v28  ;;  %2606 = vmatprep.subr.bf16.mxu1 %v2732_v17 }
 0x1cd   : > { %v819_v48 = vmul.f32 0.00390625, %v748_v39  ;;  %804 = vadd.xlane.f32.xlu1 %v803_v41  ;;  %v1000_v46 = vadd.f32 %v926_v21, %v925_v19  ;;  %2199 = vmatprep.subr.bf16.mxu0 %v2732_v17  ;;  %v2738_v17 = vld [vmem:[%s4862_s5 + $0x84] ss:$8 sps:$4 sm:$0xff]  }
 0x1ce   : > { %998 = vadd.xlane.f32.xlu0 %v997_v37  ;;  %v751_v4 = vpop.xlane.xlu1 %750 }
 0x1cf   : > { %v3618_v14 = vsub.f32 %v3290_v25, %v819_v48  ;;  %v3621_v43 = vsub.f32 %v3293_v27, %v819_v48  ;;  %v820_v40 = vmul.f32 0.00390625, %v751_v4  ;;  %2622 = vmatpush1.bf16.msra.mxu1 %v2734_v47 }
 0x1d0   : > { %2200 = vmatpush1.bf16.msra.mxu0 %v2734_v47 }
 0x1d1   : > { %v3630_v42 = vsub.f32 %v3296_v29, %v820_v40  ;;  %v3633_v25 = vsub.f32 %v3299_v31, %v820_v40  ;;  %1001 = vadd.xlane.f32.xlu1 %v1000_v46  ;;  %v927_v27 = vmul.f32 %v3618_v14, %v3618_v14  ;;  %v928_v41 = vmul.f32 %v3621_v43, %v3621_v43  ;;  %v2735_v31 = vld [vmem:[%s4862_s5 + $0x74] ss:$8 sps:$4 sm:$0xff]  }
 0x1d2   : > { %2607 = vmatprep.subr.bf16.mxu1 %v2735_v31  ;;  %2201 = vmatprep.subr.bf16.mxu0 %v2735_v31 }
 0x1d3   : > { %v1003_v37 = vadd.f32 %v928_v41, %v927_v27  ;;  %v929_v19 = vmul.f32 %v3630_v42, %v3630_v42  ;;  %v930_v29 = vmul.f32 %v3633_v25, %v3633_v25  ;;  %2623 = vmatpush1.bf16.msra.mxu1 %v2737_v22  ;;  %v2740_v41 = vld [vmem:[%s4862_s5 + $0x80] ss:$8 sps:$4 sm:$0xff]  }
 0x1d4   : > { %v754_v21 = vpop.xlane.xlu0 %753  ;;  %2202 = vmatpush1.bf16.msra.mxu0 %v2737_v22  ;;  %2608 = vmatprep.subr.bf16.mxu1 %v2738_v17  ;;  %v2743_v22 = vld [vmem:[%s4862_s5 + $0x90] ss:$8 sps:$4 sm:$0xff]  }
 0x1d5   : > { %v821_v39 = vmul.f32 0.00390625, %v754_v21  ;;  %1004 = vadd.xlane.f32.xlu0 %v1003_v37  ;;  %v1006_v28 = vadd.f32 %v930_v29, %v929_v19  ;;  %2203 = vmatprep.subr.bf16.mxu0 %v2738_v17  ;;  %v2741_v29 = vld [vmem:[%s4862_s5 + $0x94] ss:$8 sps:$4 sm:$0xff]   ;;  %v2744_v17 = vld [vmem:[%s4862_s5 + $0xa4] ss:$8 sps:$4 sm:$0xff]  }
 0x1d6   : > { %v757_v48 = vpop.xlane.xlu1 %756 }
 0x1d7   : > { %v3650_v4 = vsub.f32 %v3306_v44, %v821_v39  ;;  %v3653_v40 = vsub.f32 %v3309_v50, %v821_v39  ;;  %v822_v46 = vmul.f32 0.00390625, %v757_v48  ;;  %1007 = vadd.xlane.f32.xlu1 %v1006_v28  ;;  %2624 = vmatpush1.bf16.msra.mxu1 %v2740_v41 }
 0x1d8   : > { %2204 = vmatpush1.bf16.msra.mxu0 %v2740_v41  ;;  %2609 = vmatprep.subr.bf16.mxu1 %v2741_v29  ;;  %v2746_v41 = vld [vmem:[%s4862_s5 + $0xa0] ss:$8 sps:$4 sm:$0xff]  }
 0x1d9   : > { %v3659_v47 = vsub.f32 %v3312_v53, %v822_v46  ;;  %v3662_v27 = vsub.f32 %v3315_v57, %v822_v46  ;;  %v931_v44 = vmul.f32 %v3650_v4, %v3650_v4  ;;  %v932_v50 = vmul.f32 %v3653_v40, %v3653_v40  ;;  %2205 = vmatprep.subr.bf16.mxu0 %v2741_v29 }
 0x1db   : > { %v1009_v37 = vadd.f32 %v932_v50, %v931_v44  ;;  %v933_v53 = vmul.f32 %v3659_v47, %v3659_v47  ;;  %v934_v57 = vmul.f32 %v3662_v27, %v3662_v27  ;;  %2625 = vmatpush1.bf16.msra.mxu1 %v2743_v22 }
 0x1dc   : > { %v760_v19 = vpop.xlane.xlu0 %759  ;;  %2206 = vmatpush1.bf16.msra.mxu0 %v2743_v22  ;;  %2610 = vmatprep.subr.bf16.mxu1 %v2744_v17 }
 0x1dd   : > { %v823_v31 = vmul.f32 0.00390625, %v760_v19  ;;  %1010 = vadd.xlane.f32.xlu0 %v1009_v37  ;;  %v1012_v21 = vadd.f32 %v934_v57, %v933_v53  ;;  %2207 = vmatprep.subr.bf16.mxu0 %v2744_v17  ;;  %v2747_v57 = vld [vmem:[%s4862_s5 + $0xb4] ss:$8 sps:$4 sm:$0xff]  }
 0x1de   : > { %v763_v39 = vpop.xlane.xlu1 %762 }
 0x1df   : > { %v3682_v28 = vsub.f32 %v3322_v63, %v823_v31  ;;  %v3685_v48 = vsub.f32 %v3325_v3, %v823_v31  ;;  %v824_v46 = vmul.f32 0.00390625, %v763_v39  ;;  %1013 = vadd.xlane.f32.xlu1 %v1012_v21  ;;  %2626 = vmatpush1.bf16.msra.mxu1 %v2746_v41  ;;  %v2749_v31 = vld [vmem:[%s4862_s5 + $0xb0] ss:$8 sps:$4 sm:$0xff]  }
 0x1e0   : > { %2208 = vmatpush1.bf16.msra.mxu0 %v2746_v41  ;;  %2611 = vmatprep.subr.bf16.mxu1 %v2747_v57 }
 0x1e1   : > { %v3691_v44 = vsub.f32 %v3328_v6, %v824_v46  ;;  %v3694_v50 = vsub.f32 %v3331_v10, %v824_v46  ;;  %v935_v63 = vmul.f32 %v3682_v28, %v3682_v28  ;;  %v936_v3 = vmul.f32 %v3685_v48, %v3685_v48  ;;  %2209 = vmatprep.subr.bf16.mxu0 %v2747_v57  ;;  %v2753_v57 = vld [vmem:[%s4862_s5 + $0xd4] ss:$8 sps:$4 sm:$0xff]  }
 0x1e3   : > { %v1015_v37 = vadd.f32 %v936_v3, %v935_v63  ;;  %v937_v6 = vmul.f32 %v3691_v44, %v3691_v44  ;;  %v938_v10 = vmul.f32 %v3694_v50, %v3694_v50  ;;  %2627 = vmatpush1.bf16.msra.mxu1 %v2749_v31  ;;  %v2750_v63 = vld [vmem:[%s4862_s5 + $0xc4] ss:$8 sps:$4 sm:$0xff]  }
 0x1e4   : > { %v766_v53 = vpop.xlane.xlu0 %765  ;;  %2210 = vmatpush1.bf16.msra.mxu0 %v2749_v31  ;;  %2612 = vmatprep.subr.bf16.mxu1 %v2750_v63 }
 0x1e5   : > { %v825_v19 = vmul.f32 0.00390625, %v766_v53  ;;  %1016 = vadd.xlane.f32.xlu0 %v1015_v37  ;;  %v1018_v29 = vadd.f32 %v938_v10, %v937_v6  ;;  %2211 = vmatprep.subr.bf16.mxu0 %v2750_v63 }
 0x1e6   : > { %v769_v21 = vpop.xlane.xlu1 %768 }
 0x1e7   : > { %v3714_v22 = vsub.f32 %v3338_v16, %v825_v19  ;;  %v3717_v39 = vsub.f32 %v3341_v20, %v825_v19  ;;  %v826_v46 = vmul.f32 0.00390625, %v769_v21  ;;  %1019 = vadd.xlane.f32.xlu1 %v1018_v29  ;;  %v2752_v20 = vld [vmem:[%s4862_s5 + $0xc0] ss:$8 sps:$4 sm:$0xff]   ;;  %v2755_v29 = vld [vmem:[%s4862_s5 + $0xd0] ss:$8 sps:$4 sm:$0xff]  }
 0x1e8   : > { %v3719_v17 = vpop.xlane.xlu0 %711  ;;  %2628 = vmatpush1.bf16.msra.mxu1 %v2752_v20  ;;  %2212 = vmatpush1.bf16.msra.mxu0 %v2752_v20  ;;  %v2756_v20 = vld [vmem:[%s4862_s5 + $0xe4] ss:$8 sps:$4 sm:$0xff]  }
 0x1e9   : > { %v3725_v3 = vsub.f32 %v3344_v23, %v826_v46  ;;  %v3728_v41 = vsub.f32 %v3355_v30, %v826_v46  ;;  %v939_v16 = vmul.f32 %v3714_v22, %v3714_v22  ;;  %v940_v6 = vmul.f32 %v3717_v39, %v3717_v39  ;;  %2613 = vmatprep.subr.bf16.mxu1 %v2753_v57 }
 0x1ea   : > { %v3735_v37 = vpop.xlane.xlu1 %714  ;;  %2213 = vmatprep.subr.bf16.mxu0 %v2753_v57  ;;  %v2759_v57 = vld [vmem:[%s4862_s5 + $0xf4] ss:$8 sps:$4 sm:$0xff]  }
 0x1eb   : > { %v941_v23 = vmul.f32 %v3725_v3, %v3725_v3  ;;  %v1021_v10 = vadd.f32 %v940_v6, %v939_v16  ;;  %v942_v53 = vmul.f32 %v3728_v41, %v3728_v41 }
 0x1ec   : > { %v772_v30 = vpop.xlane.xlu0 %771  ;;  %2629 = vmatpush1.bf16.msra.mxu1 %v2755_v29  ;;  %2214 = vmatpush1.bf16.msra.mxu0 %v2755_v29 }
 0x1ed   : > { %v827_v19 = vmul.f32 0.00390625, %v772_v30  ;;  %1022 = vadd.xlane.f32.xlu0 %v1021_v10  ;;  %v1024_v21 = vadd.f32 %v942_v53, %v941_v23  ;;  %v2758_v30 = vld [vmem:[%s4862_s5 + $0xe0] ss:$8 sps:$4 sm:$0xff]   ;;  %2614 = vmatprep.subr.bf16.mxu1 %v2756_v20 }
 0x1ee   : > { %v775_v31 = vpop.xlane.xlu1 %774  ;;  %2215 = vmatprep.subr.bf16.mxu0 %v2756_v20 }
 0x1ef   : > { %v3750_v46 = vsub.f32 %v3372_v52, %v827_v19  ;;  %v3753_v63 = vsub.f32 %v3375_v35, %v827_v19  ;;  %v828_v16 = vmul.f32 0.00390625, %v775_v31  ;;  %1025 = vadd.xlane.f32.xlu1 %v1024_v21  ;;  %v2761_v31 = vld [vmem:[%s4862_s5 + $0xf0] ss:$8 sps:$4 sm:$0xff]  }
 0x1f0   : > { %2630 = vmatpush1.bf16.msra.mxu1 %v2758_v30  ;;  %2216 = vmatpush1.bf16.msra.mxu0 %v2758_v30  ;;  %v4936_v30 = vld [vmem:[#allocation11_spill] sm:$0xff] }
 0x1f1   : > { %v3759_v6 = vsub.f32 %v3380_v60, %v828_v16  ;;  %v3762_v23 = vsub.f32 %v3383_v2, %v828_v16  ;;  %v943_v52 = vmul.f32 %v3750_v46, %v3750_v46  ;;  %v944_v35 = vmul.f32 %v3753_v63, %v3753_v63  ;;  %2615 = vmatprep.subr.bf16.mxu1 %v2759_v57 }
 0x1f2   : > { %2217 = vmatprep.subr.bf16.mxu0 %v2759_v57 }
 0x1f3   : > { %4932 = vst [vmem:[#allocation23_spill] sm:$0xff] %v3762_v23  ;;  %v1027_v10 = vadd.f32 %v944_v35, %v943_v52  ;;  %v945_v60 = vmul.f32 %v3759_v6, %v3759_v6  ;;  %v946_v2 = vmul.f32 %v3762_v23, %v3762_v23 }
 0x1f4   : > { %v778_v53 = vpop.xlane.xlu0 %777  ;;  %2631 = vmatpush1.bf16.msra.mxu1 %v2761_v31  ;;  %2218 = vmatpush1.bf16.msra.mxu0 %v2761_v31  ;;  %v4938_v31 = vld [vmem:[#allocation12_spill] sm:$0xff] }
 0x1f5   : > { %v829_v19 = vmul.f32 0.00390625, %v778_v53  ;;  %1028 = vadd.xlane.f32.xlu0 %v1027_v10  ;;  %v1030_v29 = vadd.f32 %v946_v2, %v945_v60 }
 0x1f6   : > { %v781_v21 = vpop.xlane.xlu1 %780 }
 0x1f7   : > { %v3782_v16 = vsub.f32 %v3390_v13, %v829_v19  ;;  %v3785_v20 = vsub.f32 %v3393_v18, %v829_v19  ;;  %v830_v52 = vmul.f32 0.00390625, %v781_v21  ;;  %1031 = vadd.xlane.f32.xlu1 %v1030_v29 }
 0x1f9   : > { %4933 = vst [vmem:[#allocation24_spill] sm:$0xff] %v3782_v16  ;;  %4934 = vst [vmem:[#allocation25_spill] sm:$0xff] %v3785_v20  ;;  %v3788_v35 = vsub.f32 %v3396_v24, %v830_v52  ;;  %v3791_v10 = vsub.f32 %v4936_v30, %v830_v52  ;;  %v947_v60 = vmul.f32 %v3782_v16, %v3782_v16  ;;  %v4940_v52 = vld [vmem:[#allocation13_spill] sm:$0xff] }
 0x1fa   : > { %v948_v13 = vmul.f32 %v3785_v20, %v3785_v20 }
 0x1fb   : > { %4935 = vst [vmem:[#allocation26_spill] sm:$0xff] %v3788_v35  ;;  %4937 = vst [vmem:[#allocation11_spill] sm:$0xff] %v3791_v10  ;;  %v949_v18 = vmul.f32 %v3788_v35, %v3788_v35  ;;  %v950_v53 = vmul.f32 %v3791_v10, %v3791_v10  ;;  %v4944_v35 = vld [vmem:[#allocation15_spill] sm:$0xff] }
 0x1fc   : > { %v1033_v2 = vadd.f32 %v948_v13, %v947_v60  ;;  %v784_v57 = vpop.xlane.xlu0 %783  ;;  %v4942_v60 = vld [vmem:[#allocation14_spill] sm:$0xff] }
 0x1fd   : > { %v831_v19 = vmul.f32 0.00390625, %v784_v57  ;;  %v1036_v24 = vadd.f32 %v950_v53, %v949_v18  ;;  %v807_v18 = vmul.f32 0.00390625, %v3719_v17  ;;  %v4950_v17 = vld [vmem:[#allocation16_spill] sm:$0xff] }
 0x1fe   : > { %1034 = vadd.xlane.f32.xlu0 %v1033_v2  ;;  %v787_v29 = vpop.xlane.xlu1 %786 }
 0x1ff   : > { %v3802_v21 = vsub.f32 %v4938_v31, %v831_v19  ;;  %v3805_v30 = vsub.f32 %v4940_v52, %v831_v19  ;;  %v832_v16 = vmul.f32 0.00390625, %v787_v29  ;;  %1037 = vadd.xlane.f32.xlu1 %v1036_v24  ;;  %v808_v29 = vmul.f32 0.00390625, %v3735_v37  ;;  %v4946_v52 = vld [vmem:[#allocation7_spill] sm:$0xff]  ;;  %v4952_v37 = vld [vmem:[#allocation9_spill] sm:$0xff] }
 0x201   : > { %4939 = vst [vmem:[#allocation12_spill] sm:$0xff] %v3802_v21  ;;  %4941 = vst [vmem:[#allocation13_spill] sm:$0xff] %v3805_v30  ;;  %v3808_v13 = vsub.f32 %v4942_v60, %v832_v16  ;;  %v3811_v20 = vsub.f32 %v4944_v35, %v832_v16  ;;  %v951_v57 = vmul.f32 %v3802_v21, %v3802_v21 }
 0x202   : > { %v952_v2 = vmul.f32 %v3805_v30, %v3805_v30  ;;  %v3824_v60 = vsub.f32 %v4946_v52, %v807_v18  ;;  %v4948_v30 = vld [vmem:[#allocation8_spill] sm:$0xff]  ;;  %v3836_v23 = vsub.f32 %v4952_v37, %v808_v29  ;;  %v4957_v52 = vld [vmem:[#allocation19_spill] sm:$0xff] }
 0x203   : > { %4943 = vst [vmem:[#allocation14_spill] sm:$0xff] %v3808_v13  ;;  %4945 = vst [vmem:[#allocation15_spill] sm:$0xff] %v3811_v20  ;;  %v953_v19 = vmul.f32 %v3808_v13, %v3808_v13  ;;  %v954_v24 = vmul.f32 %v3811_v20, %v3811_v20  ;;  %v3827_v10 = vsub.f32 %v4948_v30, %v807_v18 }
 0x204   : > { %v1039_v53 = vadd.f32 %v952_v2, %v951_v57  ;;  %v790_v31 = vpop.xlane.xlu0 %789  ;;  %4947 = vst [vmem:[#allocation7_spill] sm:$0xff] %v3824_v60  ;;  %v4951_v2 = vld [vmem:[#allocation17_spill] sm:$0xff]  ;;  %4953 = vst [vmem:[#allocation16_spill] sm:$0xff] %v3836_v23  ;;  %v905_v37 = vmul.f32 %v3836_v23, %v3836_v23 }
 0x205   : > { %v833_v16 = vmul.f32 0.00390625, %v790_v31  ;;  %v1042_v35 = vadd.f32 %v954_v24, %v953_v19  ;;  %4949 = vst [vmem:[#allocation8_spill] sm:$0xff] %v3827_v10  ;;  %v4955_v24 = vld [vmem:[#allocation18_spill] sm:$0xff] }
 0x206   : > { %1040 = vadd.xlane.f32.xlu0 %v1039_v53  ;;  %v793_v21 = vpop.xlane.xlu1 %792  ;;  %v4954_v53 = vld [vmem:[#allocation10_spill] sm:$0xff] }
 0x207   : > { %v3830_v57 = vsub.f32 %v4950_v17, %v833_v16  ;;  %v3833_v13 = vsub.f32 %v4951_v2, %v833_v16  ;;  %v834_v20 = vmul.f32 0.00390625, %v793_v21  ;;  %1043 = vadd.xlane.f32.xlu1 %v1042_v35  ;;  %v3839_v19 = vsub.f32 %v4954_v53, %v808_v29 }
 0x208   : > { %v903_v21 = vmul.f32 %v3824_v60, %v3824_v60 }
 0x209   : > { %v3842_v31 = vsub.f32 %v4955_v24, %v834_v20  ;;  %v3845_v30 = vsub.f32 %v4957_v52, %v834_v20  ;;  %v955_v18 = vmul.f32 %v3830_v57, %v3830_v57  ;;  %v956_v16 = vmul.f32 %v3833_v13, %v3833_v13 }
 0x20a   : > { %v904_v20 = vmul.f32 %v3827_v10, %v3827_v10  ;;  %v906_v53 = vmul.f32 %v3839_v19, %v3839_v19 }
 0x20b   : > { %4956 = vst [vmem:[#allocation17_spill] sm:$0xff] %v3842_v31  ;;  %4958 = vst [vmem:[#allocation9_spill] sm:$0xff] %v3845_v30  ;;  %v1045_v35 = vadd.f32 %v956_v16, %v955_v18  ;;  %v957_v29 = vmul.f32 %v3842_v31, %v3842_v31  ;;  %v958_v17 = vmul.f32 %v3845_v30, %v3845_v30 }
 0x20c   : > { %v967_v24 = vadd.f32 %v904_v20, %v903_v21  ;;  %v970_v52 = vadd.f32 %v906_v53, %v905_v37 }
 0x20d   : > { %1046 = vadd.xlane.f32.xlu0 %v1045_v35  ;;  %v1048_v2 = vadd.f32 %v958_v17, %v957_v29 }
 0x20f   : > { %1049 = vadd.xlane.f32.xlu1 %v1048_v2 }
 0x211   : > { %968 = vadd.xlane.f32.xlu0 %v967_v24 }
 0x213   : > { %971 = vadd.xlane.f32.xlu1 %v970_v52 }
 0x242   : > { %v981_v18 = vpop.xlane.xlu0 %980 }
 0x243   : > { %v1067_v16 = vmul.f32 0.00390625, %v981_v18 }
 0x245   : > { %v1099_v60 = vadd.f32 1e-05, %v1067_v16 }
 0x246   : > { %v984_v30 = vpop.xlane.xlu1 %983  ;;  %v796_v31 = vpop.xlane.xlu0 %795 }
 0x247   : > { %2762 = vrsqrt.f32 %v1099_v60  ;;  %v1068_v10 = vmul.f32 0.00390625, %v984_v30  ;;  %v835_v35 = vmul.f32 0.00390625, %v796_v31 }
 0x249   : > { %v1100_v29 = vadd.f32 1e-05, %v1068_v10  ;;  %v3864_v17 = vsub.f32 %v3470_v45, %v835_v35  ;;  %v3867_v23 = vsub.f32 %v3473_v33, %v835_v35  ;;  %v1223_v33 = vld [vmem:[%s4860_s3] sm:$0x3] }
 0x24a   : > { %v799_v2 = vpop.xlane.xlu1 %798  ;;  %v987_v21 = vpop.xlane.xlu0 %986 }
 0x24b   : > { %4959 = vst [vmem:[#allocation10_spill] sm:$0xff] %v3864_v17  ;;  %4960 = vst [vmem:[#allocation18_spill] sm:$0xff] %v3867_v23  ;;  %2764 = vrsqrt.f32 %v1100_v29  ;;  %v836_v20 = vmul.f32 0.00390625, %v799_v2  ;;  %v1069_v37 = vmul.f32 0.00390625, %v987_v21  ;;  %v959_v53 = vmul.f32 %v3864_v17, %v3864_v17  ;;  %v4963_v29 = vld [vmem:[#allocation6_spill] sm:$0xff] }
 0x24c   : > { %v960_v60 = vmul.f32 %v3867_v23, %v3867_v23  ;;  %v3887_v2 = vrot.slane %v1223_v33, %v4963_v29  ;;  %v1299_v21 = vld [vmem:[%s4861_s4] sm:$0x3] }
 0x24d   : > { %v3874_v31 = vsub.f32 %v3492_v32, %v836_v20  ;;  %v3877_v45 = vsub.f32 %v3501_v58, %v836_v20  ;;  %v1101_v10 = vadd.f32 1e-05, %v1069_v37 }
 0x24e   : > { %v990_v30 = vpop.xlane.xlu1 %989  ;;  %v718_v24 = vpop.xlane.xlu0 %717  ;;  %v1051_v52 = vadd.f32 %v960_v60, %v959_v53 }
 0x24f   : > { %4961 = vst [vmem:[#allocation19_spill] sm:$0xff] %v3874_v31  ;;  %4962 = vst [vmem:[#allocation27_spill] sm:$0xff] %v3877_v45  ;;  %2766 = vrsqrt.f32 %v1101_v10  ;;  %v1070_v18 = vmul.f32 0.00390625, %v990_v30  ;;  %v809_v16 = vmul.f32 0.00390625, %v718_v24  ;;  %v961_v35 = vmul.f32 %v3874_v31, %v3874_v31 }
 0x250   : > { %1052 = vadd.xlane.f32.xlu0 %v1051_v52  ;;  %v962_v32 = vmul.f32 %v3877_v45, %v3877_v45 }
 0x251   : > { %v2763_v58 = vpop.eup %2762  ;;  %v1102_v20 = vadd.f32 1e-05, %v1070_v18  ;;  %v3893_v37 = vsub.f32 %v3509_v59, %v809_v16  ;;  %v3896_v53 = vsub.f32 %v3513_v61, %v809_v16  ;;  %v4966_v18 = vld [vmem:[#allocation5_spill] sm:$0xff]  ;;  %v3907_v59 = vrot.slane %v1299_v21, %v4963_v29 }
 0x252   : > { %v1168_v60 = vmul.f32 %v2763_v58, %v3467_v8  ;;  %v721_v10 = vpop.xlane.xlu1 %720  ;;  %v1054_v30 = vadd.f32 %v962_v32, %v961_v35  ;;  %v3904_v23 = vrot.slane %v1223_v33, %v4966_v18 }
 0x253   : > { %4964 = vst [vmem:[#allocation28_spill] sm:$0xff] %v3893_v37  ;;  %4965 = vst [vmem:[#allocation29_spill] sm:$0xff] %v3896_v53  ;;  %2768 = vrsqrt.f32 %v1102_v20  ;;  %v810_v24 = vmul.f32 0.00390625, %v721_v10  ;;  %v993_v52 = vpop.xlane.xlu0 %992  ;;  %v907_v45 = vmul.f32 %v3893_v37, %v3893_v37  ;;  %v908_v31 = vmul.f32 %v3896_v53, %v3896_v53  ;;  %v4968_v10 = vld [vmem:[#allocation20_spill] sm:$0xff] }
 0x254   : > { %v1071_v61 = vmul.f32 0.00390625, %v993_v52  ;;  %1055 = vadd.xlane.f32.xlu1 %v1054_v30  ;;  %v1244_v16 = vmul.f32 %v3887_v2, %v1168_v60  ;;  %v1167_v53 = vmul.f32 %v2763_v58, %v4968_v10 }
 0x255   : > { %v2765_v8 = vpop.eup %2764  ;;  %v3911_v35 = vsub.f32 %v3529_v0, %v810_v24  ;;  %v3914_v32 = vsub.f32 %v3533_v1, %v810_v24  ;;  %v973_v20 = vadd.f32 %v908_v31, %v907_v45  ;;  %v3926_v24 = vrot.slane %v1299_v21, %v4966_v18 }
 0x256   : > { %v1169_v33 = vmul.f32 %v2765_v8, %v3480_v49  ;;  %v1170_v37 = vmul.f32 %v2765_v8, %v3483_v51  ;;  %v1103_v29 = vadd.f32 1e-05, %v1071_v61  ;;  %v996_v17 = vpop.xlane.xlu1 %995  ;;  %v1320_v51 = vadd.f32 %v3907_v59, %v1244_v16 }
 0x257   : > { %4967 = vst [vmem:[#allocation30_spill] sm:$0xff] %v3914_v32  ;;  %v1072_v52 = vmul.f32 0.00390625, %v996_v17  ;;  %v802_v30 = vpop.xlane.xlu0 %801  ;;  %974 = vadd.xlane.f32.xlu0 %v973_v20  ;;  %v909_v60 = vmul.f32 %v3911_v35, %v3911_v35  ;;  %v910_v0 = vmul.f32 %v3914_v32, %v3914_v32  ;;  %v1243_v17 = vmul.f32 %v3904_v23, %v1167_v53 }
 0x258   : > { %v1246_v1 = vmul.f32 %v3887_v2, %v1170_v37  ;;  %2770 = vrsqrt.f32 %v1103_v29  ;;  %v837_v31 = vmul.f32 0.00390625, %v802_v30  ;;  %v1245_v61 = vmul.f32 %v3904_v23, %v1169_v33 }
 0x259   : > { %v2767_v45 = vpop.eup %2766  ;;  %v1104_v58 = vadd.f32 1e-05, %v1072_v52  ;;  %v976_v49 = vadd.f32 %v910_v0, %v909_v60  ;;  %v1448_v60 = vmul.f32 0.044715, %v1320_v51  ;;  %v3950_v0 = vadd.f32 %v3926_v24, %v1243_v17 }
 0x25a   : > { %v3931_v8 = vsub.f32 %v3553_v5, %v837_v31  ;;  %v805_v20 = vpop.xlane.xlu1 %804  ;;  %v1171_v37 = vmul.f32 %v2767_v45, %v3495_v54  ;;  %v3935_v29 = vsub.f32 %v3557_v7, %v837_v31  ;;  %v1172_v21 = vmul.f32 %v2767_v45, %v3498_v55 }
 0x25b   : > { %2772 = vrsqrt.f32 %v1104_v58  ;;  %v838_v10 = vmul.f32 0.00390625, %v805_v20  ;;  %v999_v52 = vpop.xlane.xlu0 %998  ;;  %977 = vadd.xlane.f32.xlu1 %v976_v49  ;;  %v1322_v33 = vadd.f32 %v3907_v59, %v1246_v1  ;;  %v3953_v55 = vadd.f32 %v3926_v24, %v1245_v61 }
 0x25c   : > { %4969 = vst [vmem:[#allocation20_spill] sm:$0xff] %v3931_v8  ;;  %4970 = vst [vmem:[#allocation31_spill] sm:$0xff] %v3935_v29  ;;  %v1073_v16 = vmul.f32 0.00390625, %v999_v52  ;;  %v963_v53 = vmul.f32 %v3931_v8, %v3931_v8  ;;  %v964_v7 = vmul.f32 %v3935_v29, %v3935_v29  ;;  %v3956_v45 = vmul.f32 0.5, %v1320_v51 }
 0x25d   : > { %v2769_v5 = vpop.eup %2768  ;;  %v3942_v30 = vsub.f32 %v3575_v38, %v838_v10  ;;  %v3945_v54 = vsub.f32 %v3579_v62, %v838_v10  ;;  %v1247_v20 = vmul.f32 %v3904_v23, %v1171_v37  ;;  %v1248_v10 = vmul.f32 %v3887_v2, %v1172_v21 }
 0x25e   : > { %v1174_v31 = vmul.f32 %v2769_v5, %v3519_v34  ;;  %v1002_v1 = vpop.xlane.xlu1 %1001  ;;  %v1105_v38 = vadd.f32 1e-05, %v1073_v16  ;;  %v1057_v49 = vadd.f32 %v964_v7, %v963_v53  ;;  %v1450_v61 = vmul.f32 0.044715, %v1322_v33 }
 0x25f   : > { %4971 = vst [vmem:[#allocation32_spill] sm:$0xff] %v3942_v30  ;;  %4972 = vst [vmem:[#allocation33_spill] sm:$0xff] %v3945_v54  ;;  %v1074_v58 = vmul.f32 0.00390625, %v1002_v1  ;;  %v965_v62 = vmul.f32 %v3942_v30, %v3942_v30  ;;  %v966_v17 = vmul.f32 %v3945_v54, %v3945_v54  ;;  %v1173_v52 = vmul.f32 %v2769_v5, %v3516_v36 }
 0x260   : > { %2774 = vrsqrt.f32 %v1105_v38  ;;  %1058 = vadd.xlane.f32.xlu0 %v1057_v49  ;;  %v1512_v18 = vmul.f32 %v1448_v60, %v1320_v51  ;;  %v1250_v53 = vmul.f32 %v3887_v2, %v1174_v31  ;;  %v3966_v30 = vmul.f32 0.5, %v1322_v33 }
 0x261   : > { %v1106_v34 = vadd.f32 1e-05, %v1074_v58  ;;  %v1060_v1 = vadd.f32 %v966_v17, %v965_v62  ;;  %v1514_v37 = vmul.f32 %v1450_v61, %v1322_v33  ;;  %v3971_v36 = vadd.f32 %v3926_v24, %v1247_v20 }
 0x262   : > { %v2771_v16 = vpop.eup %2770  ;;  %v1005_v7 = vpop.xlane.xlu0 %1004  ;;  %v3974_v5 = vadd.f32 %v3907_v59, %v1248_v10  ;;  %v1576_v31 = vmul.f32 %v1512_v18, %v1320_v51  ;;  %v1249_v49 = vmul.f32 %v3904_v23, %v1173_v52  ;;  %v3981_v10 = vadd.f32 %v3907_v59, %v1250_v53 }
 0x263   : > { %v1175_v21 = vmul.f32 %v2771_v16, %v3538_v12  ;;  %v1176_v8 = vmul.f32 %v2771_v16, %v3541_v56  ;;  %2776 = vrsqrt.f32 %v1106_v34  ;;  %v1075_v54 = vmul.f32 0.00390625, %v1005_v7  ;;  %1061 = vadd.xlane.f32.xlu1 %v1060_v1  ;;  %v4973_v7 = vld [vmem:[#allocation21_spill] sm:$0xff] }
 0x264   : > { %v1008_v60 = vpop.xlane.xlu1 %1007  ;;  %v1578_v38 = vmul.f32 %v1514_v37, %v1322_v33  ;;  %v1447_v12 = vmul.f32 0.044715, %v3950_v0  ;;  %v1640_v20 = vadd.f32 %v1576_v31, %v1320_v51  ;;  %v3984_v18 = vmul.f32 0.5, %v3950_v0 }
 0x265   : > { %v2773_v58 = vpop.eup %2772  ;;  %v1107_v62 = vadd.f32 1e-05, %v1075_v54  ;;  %v1076_v17 = vmul.f32 0.00390625, %v1008_v60  ;;  %v1251_v56 = vmul.f32 %v3904_v23, %v1175_v21  ;;  %v1252_v61 = vmul.f32 %v3887_v2, %v1176_v8  ;;  %v4974_v54 = vld [vmem:[#allocation22_spill] sm:$0xff] }
 0x266   : > { %v1642_v34 = vadd.f32 %v1578_v38, %v1322_v33  ;;  %v1177_v52 = vmul.f32 %v2773_v58, %v4973_v7  ;;  %v1178_v1 = vmul.f32 %v2773_v58, %v4974_v54  ;;  %v1704_v37 = vmul.f32 0.7978846, %v1640_v20 }
 0x267   : > { %2778 = vrsqrt.f32 %v1107_v62  ;;  %v1108_v16 = vadd.f32 1e-05, %v1076_v17  ;;  %v3989_v21 = vadd.f32 %v3926_v24, %v1249_v49  ;;  %v1449_v51 = vmul.f32 0.044715, %v3953_v55 }
 0x268   : > { %v1706_v60 = vmul.f32 0.7978846, %v1642_v34  ;;  %v1511_v8 = vmul.f32 %v1447_v12, %v3950_v0  ;;  %v3994_v33 = vadd.f32 %v3926_v24, %v1251_v56  ;;  %v3997_v53 = vadd.f32 %v3907_v59, %v1252_v61 }
 0x269   : > { %2780 = vrsqrt.f32 %v1108_v16  ;;  %v4000_v38 = vmul.f32 0.5, %v3953_v55  ;;  %v1513_v49 = vmul.f32 %v1449_v51, %v3953_v55  ;;  %v1253_v12 = vmul.f32 %v3904_v23, %v1177_v52 }
 0x26a   : > { %v1011_v31 = vpop.xlane.xlu0 %1010  ;;  %2782 = vtanh.f32 %v1704_v37  ;;  %v2775_v58 = vpop.eup %2774  ;;  %v1575_v17 = vmul.f32 %v1511_v8, %v3950_v0  ;;  %v1254_v56 = vmul.f32 %v3887_v2, %v1178_v1  ;;  %v1452_v61 = vmul.f32 0.044715, %v3974_v5 }
 0x26b   : > { %v1077_v62 = vmul.f32 0.00390625, %v1011_v31  ;;  %2784 = vtanh.f32 %v1706_v60  ;;  %v1454_v34 = vmul.f32 0.044715, %v3981_v10  ;;  %v1577_v37 = vmul.f32 %v1513_v49, %v3953_v55 }
 0x26c   : > { %v1014_v20 = vpop.xlane.xlu1 %1013  ;;  %v1639_v60 = vadd.f32 %v1575_v17, %v3950_v0  ;;  %v1179_v51 = vmul.f32 %v2775_v58, %v3584_v9  ;;  %v1180_v8 = vmul.f32 %v2775_v58, %v3587_v11  ;;  %v4019_v49 = vadd.f32 %v3907_v59, %v1254_v56 }
 0x26d   : > { %v2777_v16 = vpop.eup %2776  ;;  %v1109_v7 = vadd.f32 1e-05, %v1077_v62  ;;  %v1078_v54 = vmul.f32 0.00390625, %v1014_v20  ;;  %v1641_v29 = vadd.f32 %v1577_v37, %v3953_v55  ;;  %v4016_v62 = vadd.f32 %v3926_v24, %v1253_v12 }
 0x26e   : > { %v1181_v52 = vmul.f32 %v2777_v16, %v3596_v26  ;;  %v1182_v1 = vmul.f32 %v2777_v16, %v3599_v15  ;;  %v1703_v32 = vmul.f32 0.7978846, %v1639_v60  ;;  %v4022_v0 = vmul.f32 0.5, %v3974_v5 }
 0x26f   : > { %2786 = vrsqrt.f32 %v1109_v7  ;;  %v1110_v31 = vadd.f32 1e-05, %v1078_v54  ;;  %v4025_v9 = vmul.f32 0.5, %v3981_v10  ;;  %v1705_v26 = vmul.f32 0.7978846, %v1641_v29 }
 0x270   : > { %v1516_v15 = vmul.f32 %v1452_v61, %v3974_v5  ;;  %v1518_v55 = vmul.f32 %v1454_v34, %v3981_v10  ;;  %v1255_v58 = vmul.f32 %v3904_v23, %v1179_v51  ;;  %v1256_v17 = vmul.f32 %v3887_v2, %v1180_v8 }
 0x271   : > { %v2779_v11 = vpop.eup %2778  ;;  %2788 = vrsqrt.f32 %v1110_v31  ;;  %v1257_v7 = vmul.f32 %v3904_v23, %v1181_v52  ;;  %v1258_v54 = vmul.f32 %v3887_v2, %v1182_v1 }
 0x272   : > { %v1183_v12 = vmul.f32 %v2779_v11, %v3618_v14  ;;  %v1184_v56 = vmul.f32 %v2779_v11, %v3621_v43  ;;  %v1017_v20 = vpop.xlane.xlu0 %1016  ;;  %2790 = vtanh.f32 %v1703_v32  ;;  %v1580_v51 = vmul.f32 %v1516_v15, %v3974_v5 }
 0x273   : > { %v2781_v16 = vpop.eup %2780  ;;  %v1079_v37 = vmul.f32 0.00390625, %v1017_v20  ;;  %v1582_v14 = vmul.f32 %v1518_v55, %v3981_v10  ;;  %2792 = vtanh.f32 %v1705_v26  ;;  %v4040_v52 = vadd.f32 %v3926_v24, %v1255_v58 }
 0x274   : > { %v2783_v29 = vpop.eup %2782  ;;  %v1185_v61 = vmul.f32 %v2781_v16, %v3630_v42  ;;  %v1186_v34 = vmul.f32 %v2781_v16, %v3633_v25  ;;  %v1020_v60 = vpop.xlane.xlu1 %1019  ;;  %v4043_v32 = vadd.f32 %v3907_v59, %v1256_v17  ;;  %v1259_v42 = vmul.f32 %v3904_v23, %v1183_v12 }
 0x275   : > { %v2785_v8 = vpop.eup %2784  ;;  %v1111_v43 = vadd.f32 1e-05, %v1079_v37  ;;  %v1080_v31 = vmul.f32 0.00390625, %v1020_v60  ;;  %v1832_v11 = vadd.f32 1.0, %v2783_v29  ;;  %v1260_v25 = vmul.f32 %v3887_v2, %v1184_v56 }
 0x276   : > { %v4048_v1 = vadd.f32 %v3926_v24, %v1257_v7  ;;  %v1834_v55 = vadd.f32 1.0, %v2785_v8  ;;  %v1261_v20 = vmul.f32 %v3904_v23, %v1185_v61  ;;  %v1262_v26 = vmul.f32 %v3887_v2, %v1186_v34 }
 0x277   : > { %2794 = vrsqrt.f32 %v1111_v43  ;;  %v1112_v15 = vadd.f32 1e-05, %v1080_v31  ;;  %v1644_v58 = vadd.f32 %v1580_v51, %v3974_v5  ;;  %v1646_v16 = vadd.f32 %v1582_v14, %v3981_v10 }
 0x278   : > { %v4055_v37 = vadd.f32 %v3907_v59, %v1258_v54  ;;  %v1896_v12 = vmul.f32 %v1832_v11, %v3956_v45  ;;  %v1898_v56 = vmul.f32 %v1834_v55, %v3966_v30  ;;  %v4060_v7 = vadd.f32 %v3926_v24, %v1259_v42 }
 0x279   : > { %v2787_v17 = vpop.eup %2786  ;;  %2796 = vrsqrt.f32 %v1112_v15  ;;  %v4063_v29 = vadd.f32 %v3907_v59, %v1260_v25  ;;  %v1708_v5 = vmul.f32 0.7978846, %v1644_v58  ;;  %v1710_v51 = vmul.f32 0.7978846, %v1646_v16 }
 0x27a   : > { %v1187_v61 = vmul.f32 %v2787_v17, %v3650_v4  ;;  %v1956_v10 = vpack.c.bf16 %v1898_v56, %v1896_v12  ;;  %v1023_v60 = vpop.xlane.xlu0 %1022  ;;  %v1451_v54 = vmul.f32 0.044715, %v3971_v36  ;;  %v1453_v14 = vmul.f32 0.044715, %v3989_v21 }
 0x27b   : > { %v2789_v34 = vpop.eup %2788  ;;  %v4069_v45 = vadd.f32 %v3926_v24, %v1261_v20  ;;  %v4072_v30 = vadd.f32 %v3907_v59, %v1262_v26  ;;  %v1188_v8 = vmul.f32 %v2787_v17, %v3653_v40  ;;  %v1081_v31 = vmul.f32 0.00390625, %v1023_v60 }
 0x27c   : > { %v1189_v43 = vmul.f32 %v2789_v34, %v3659_v47  ;;  %v2791_v4 = vpop.eup %2790  ;;  %2239 = vmatprep.mubr.bf16.mxu1 %v1956_v10  ;;  %v1026_v11 = vpop.xlane.xlu1 %1025  ;;  %2798 = vtanh.f32 %v1708_v5  ;;  %v1515_v42 = vmul.f32 %v1451_v54, %v3971_v36  ;;  %v1517_v25 = vmul.f32 %v1453_v14, %v3989_v21 }
 0x27d   : > { %v1263_v15 = vmul.f32 %v3904_v23, %v1187_v61  ;;  %v1190_v55 = vmul.f32 %v2789_v34, %v3662_v27  ;;  %v4081_v20 = vmul.f32 0.5, %v3971_v36  ;;  %v4084_v40 = vmul.f32 0.5, %v3989_v21  ;;  %v2793_v47 = vpop.eup %2792 }
 0x27e   : > { %v1831_v26 = vadd.f32 1.0, %v2791_v4  ;;  %v1113_v58 = vadd.f32 1e-05, %v1081_v31  ;;  %v1082_v16 = vmul.f32 0.00390625, %v1026_v11  ;;  %2800 = vtanh.f32 %v1710_v51 }
 0x27f   : > { %v1264_v17 = vmul.f32 %v3887_v2, %v1188_v8  ;;  %v1265_v12 = vmul.f32 %v3904_v23, %v1189_v43  ;;  %v1833_v56 = vadd.f32 1.0, %v2793_v47  ;;  %v1579_v61 = vmul.f32 %v1515_v42, %v3971_v36 }
 0x280   : > { %2802 = vrsqrt.f32 %v1113_v58  ;;  %v1114_v27 = vadd.f32 1e-05, %v1082_v16  ;;  %v1581_v34 = vmul.f32 %v1517_v25, %v3989_v21  ;;  %v4091_v10 = vmul.f32 0.5, %v3997_v53 }
 0x281   : > { %v2795_v5 = vpop.eup %2794  ;;  %v1266_v60 = vmul.f32 %v3887_v2, %v1190_v55  ;;  %v1897_v51 = vmul.f32 %v1833_v56, %v4000_v38  ;;  %v1643_v14 = vadd.f32 %v1579_v61, %v3971_v36  ;;  %v1895_v4 = vmul.f32 %v1831_v26, %v3984_v18 }
 0x282   : > { %v1191_v54 = vmul.f32 %v2795_v5, %v3682_v28  ;;  %v1029_v8 = vpop.xlane.xlu0 %1028  ;;  %2804 = vrsqrt.f32 %v1114_v27  ;;  %v1645_v31 = vadd.f32 %v1581_v34, %v3989_v21  ;;  %v4100_v42 = vadd.f32 %v3926_v24, %v1263_v15 }
 0x283   : > { %v2797_v43 = vpop.eup %2796  ;;  %v1083_v11 = vmul.f32 0.00390625, %v1029_v8  ;;  %v4103_v25 = vadd.f32 %v3907_v59, %v1264_v17  ;;  %v4106_v28 = vadd.f32 %v3926_v24, %v1265_v12  ;;  %v1192_v38 = vmul.f32 %v2795_v5, %v3685_v48 }
 0x284   : > { %v1032_v36 = vpop.xlane.xlu1 %1031  ;;  %v1955_v55 = vpack.c.bf16 %v1897_v51, %v1895_v4  ;;  %v1707_v47 = vmul.f32 0.7978846, %v1643_v14  ;;  %v1709_v58 = vmul.f32 0.7978846, %v1645_v31  ;;  %v4110_v26 = vadd.f32 %v3907_v59, %v1266_v60 }
 0x285   : > { %v1115_v18 = vadd.f32 1e-05, %v1083_v11  ;;  %v1267_v21 = vmul.f32 %v3904_v23, %v1191_v54  ;;  %v1193_v15 = vmul.f32 %v2797_v43, %v3691_v44  ;;  %v1194_v16 = vmul.f32 %v2797_v43, %v3694_v50 }
 0x286   : > { %v2799_v17 = vpop.eup %2798  ;;  %2240 = vmatmul.mubr.bf16.vlgmr.msra.gmra.mrb[0].mxu1 %v1955_v55  ;;  %2806 = vtanh.f32 %v1707_v47  ;;  %v1084_v12 = vmul.f32 0.00390625, %v1032_v36  ;;  %v1456_v48 = vmul.f32 0.044715, %v3997_v53  ;;  %v1458_v56 = vmul.f32 0.044715, %v4019_v49 }
 0x287   : > { %v1268_v61 = vmul.f32 %v3887_v2, %v1192_v38  ;;  %v1836_v5 = vadd.f32 1.0, %v2799_v17  ;;  %2808 = vtanh.f32 %v1709_v58  ;;  %v4119_v27 = vmul.f32 0.5, %v4019_v49 }
 0x288   : > { %v2801_v34 = vpop.eup %2800  ;;  %2810 = vrsqrt.f32 %v1115_v18  ;;  %v1116_v44 = vadd.f32 1e-05, %v1084_v12  ;;  %v1520_v50 = vmul.f32 %v1456_v48, %v3997_v53  ;;  %v1522_v60 = vmul.f32 %v1458_v56, %v4019_v49 }
 0x289   : > { %v4124_v54 = vadd.f32 %v3926_v24, %v1267_v21  ;;  %v1269_v51 = vmul.f32 %v3904_v23, %v1193_v15  ;;  %v1270_v14 = vmul.f32 %v3887_v2, %v1194_v16  ;;  %v1838_v8 = vadd.f32 1.0, %v2801_v34 }
 0x28a   : > { %v2803_v4 = vpop.eup %2802  ;;  %2812 = vrsqrt.f32 %v1116_v44  ;;  %v1584_v31 = vmul.f32 %v1520_v50, %v3997_v53  ;;  %v1586_v11 = vmul.f32 %v1522_v60, %v4019_v49  ;;  %v1455_v38 = vmul.f32 0.044715, %v3994_v33 }
 0x28b   : > { %v1035_v43 = vpop.xlane.xlu0 %1034  ;;  %v1195_v36 = vmul.f32 %v2803_v4, %v3714_v22  ;;  %v1900_v55 = vmul.f32 %v1836_v5, %v4022_v0  ;;  %v1902_v47 = vmul.f32 %v1838_v8, %v4025_v9  ;;  %v1457_v58 = vmul.f32 0.044715, %v4016_v62 }
 0x28c   : > { %v2805_v18 = vpop.eup %2804  ;;  %v1648_v21 = vadd.f32 %v1584_v31, %v3997_v53  ;;  %v1650_v15 = vadd.f32 %v1586_v11, %v4019_v49  ;;  %v1519_v16 = vmul.f32 %v1455_v38, %v3994_v33  ;;  %v1085_v17 = vmul.f32 0.00390625, %v1035_v43 }
 0x28d   : > { %v4139_v12 = vadd.f32 %v3907_v59, %v1268_v61  ;;  %v4142_v48 = vadd.f32 %v3926_v24, %v1269_v51  ;;  %v1196_v22 = vmul.f32 %v2803_v4, %v3717_v39  ;;  %v1197_v0 = vmul.f32 %v2805_v18, %v3725_v3  ;;  %v1038_v51 = vpop.xlane.xlu1 %1037 }
 0x28e   : > { %v1958_v9 = vpack.c.bf16 %v1902_v47, %v1900_v55  ;;  %v1712_v56 = vmul.f32 0.7978846, %v1648_v21  ;;  %v1714_v5 = vmul.f32 0.7978846, %v1650_v15  ;;  %v1521_v53 = vmul.f32 %v1457_v58, %v4016_v62 }
 0x28f   : > { %v4148_v49 = vadd.f32 %v3907_v59, %v1270_v14  ;;  %v1271_v34 = vmul.f32 %v3904_v23, %v1195_v36  ;;  %v1198_v61 = vmul.f32 %v2805_v18, %v3728_v41  ;;  %v4153_v44 = vmul.f32 0.5, %v3994_v33 }
 0x290   : > { %v2807_v50 = vpop.eup %2806  ;;  %2249 = vmatprep.mubr.bf16.mxu1 %v1958_v9  ;;  %2814 = vtanh.f32 %v1712_v56  ;;  %v1583_v39 = vmul.f32 %v1519_v16, %v3994_v33  ;;  %v1585_v3 = vmul.f32 %v1521_v53, %v4016_v62  ;;  %v1117_v60 = vadd.f32 1e-05, %v1085_v17  ;;  %v4975_v53 = vld [vmem:[#allocation23_spill] sm:$0xff] }
 0x291   : > { %v2809_v8 = vpop.eup %2808  ;;  %v1272_v14 = vmul.f32 %v3887_v2, %v1196_v22  ;;  %v1273_v43 = vmul.f32 %v3904_v23, %v1197_v0  ;;  %v1835_v4 = vadd.f32 1.0, %v2807_v50  ;;  %2816 = vtanh.f32 %v1714_v5 }
 0x292   : > { %v2811_v41 = vpop.eup %2810  ;;  %v1837_v31 = vadd.f32 1.0, %v2809_v8  ;;  %v1647_v11 = vadd.f32 %v1583_v39, %v3994_v33  ;;  %v1649_v38 = vadd.f32 %v1585_v3, %v4016_v62  ;;  %2818 = vrsqrt.f32 %v1117_v60 }
 0x293   : > { %v1274_v36 = vmul.f32 %v3887_v2, %v1198_v61  ;;  %v1199_v55 = vmul.f32 %v2811_v41, %v3750_v46  ;;  %v1200_v47 = vmul.f32 %v2811_v41, %v3753_v63  ;;  %v1086_v58 = vmul.f32 0.00390625, %v1038_v51 }
 0x294   : > { %v2813_v18 = vpop.eup %2812  ;;  %v1899_v21 = vmul.f32 %v1835_v4, %v4081_v20  ;;  %v1901_v15 = vmul.f32 %v1837_v31, %v4084_v40  ;;  %v1711_v16 = vmul.f32 0.7978846, %v1647_v11  ;;  %v1713_v17 = vmul.f32 0.7978846, %v1649_v38  ;;  %v1041_v4 = vpop.xlane.xlu0 %1040 }
 0x295   : > { %v4167_v22 = vadd.f32 %v3926_v24, %v1271_v34  ;;  %v1275_v33 = vmul.f32 %v3904_v23, %v1199_v55  ;;  %v1276_v0 = vmul.f32 %v3887_v2, %v1200_v47  ;;  %v4172_v9 = vmul.f32 0.5, %v4016_v62 }
 0x296   : > { %v4175_v46 = vadd.f32 %v3907_v59, %v1272_v14  ;;  %v1957_v63 = vpack.c.bf16 %v1901_v15, %v1899_v21  ;;  %2820 = vtanh.f32 %v1711_v16  ;;  %v1118_v20 = vadd.f32 1e-05, %v1086_v58  ;;  %v1044_v15 = vpop.xlane.xlu1 %1043 }
 0x297   : > { %v4178_v40 = vadd.f32 %v3926_v24, %v1273_v43  ;;  %v4181_v56 = vadd.f32 %v3907_v59, %v1274_v36  ;;  %v1201_v5 = vmul.f32 %v2813_v18, %v3759_v6  ;;  %v1202_v34 = vmul.f32 %v2813_v18, %v4975_v53 }
 0x298   : > { %2250 = vmatmul.mubr.bf16.gmra.mrb[4].mxu1 %v1957_v63  ;;  %2822 = vtanh.f32 %v1713_v17  ;;  %v4186_v62 = vmul.f32 0.5, %v4043_v32  ;;  %v1460_v61 = vmul.f32 0.044715, %v4043_v32  ;;  %v1462_v50 = vmul.f32 0.044715, %v4055_v37  ;;  %v4976_v17 = vld [vmem:[#allocation24_spill] sm:$0xff] }
 0x299   : > { %v4191_v39 = vadd.f32 %v3926_v24, %v1275_v33  ;;  %v4194_v3 = vadd.f32 %v3907_v59, %v1276_v0  ;;  %2824 = vrsqrt.f32 %v1118_v20  ;;  %v4197_v6 = vmul.f32 0.5, %v4055_v37 }
 0x29a   : > { %v2815_v60 = vpop.eup %2814  ;;  %v1524_v51 = vmul.f32 %v1460_v61, %v4043_v32  ;;  %v1526_v8 = vmul.f32 %v1462_v50, %v4055_v37  ;;  %v1459_v14 = vmul.f32 0.044715, %v4040_v52  ;;  %v1461_v43 = vmul.f32 0.044715, %v4048_v1  ;;  %v4977_v50 = vld [vmem:[#allocation25_spill] sm:$0xff] }
 0x29b   : > { %v2817_v41 = vpop.eup %2816  ;;  %v1277_v31 = vmul.f32 %v3904_v23, %v1201_v5  ;;  %v1278_v11 = vmul.f32 %v3887_v2, %v1202_v34  ;;  %v1840_v38 = vadd.f32 1.0, %v2815_v60  ;;  %v4206_v36 = vmul.f32 0.5, %v4040_v52 }
 0x29c   : > { %v2819_v55 = vpop.eup %2818  ;;  %v1842_v47 = vadd.f32 1.0, %v2817_v41  ;;  %v1588_v58 = vmul.f32 %v1524_v51, %v4043_v32  ;;  %v1590_v18 = vmul.f32 %v1526_v8, %v4055_v37  ;;  %v1523_v21 = vmul.f32 %v1459_v14, %v4040_v52 }
 0x29d   : > { %v1904_v16 = vmul.f32 %v1840_v38, %v4091_v10  ;;  %v1203_v33 = vmul.f32 %v2819_v55, %v4976_v17  ;;  %v1525_v0 = vmul.f32 %v1461_v43, %v4048_v1  ;;  %v1087_v63 = vmul.f32 0.00390625, %v1041_v4 }
 0x29e   : > { %v1906_v20 = vmul.f32 %v1842_v47, %v4119_v27  ;;  %v1652_v5 = vadd.f32 %v1588_v58, %v4043_v32  ;;  %v1654_v53 = vadd.f32 %v1590_v18, %v4055_v37  ;;  %v1587_v34 = vmul.f32 %v1523_v21, %v4040_v52 }
 0x29f   : > { %v4219_v61 = vadd.f32 %v3926_v24, %v1277_v31  ;;  %v1204_v60 = vmul.f32 %v2819_v55, %v4977_v50  ;;  %v1589_v10 = vmul.f32 %v1525_v0, %v4048_v1  ;;  %v1088_v51 = vmul.f32 0.00390625, %v1044_v15  ;;  %v1050_v50 = vpop.xlane.xlu1 %1049 }
 0x2a0   : > { %v2821_v8 = vpop.eup %2820  ;;  %v1960_v14 = vpack.c.bf16 %v1906_v20, %v1904_v16  ;;  %v1716_v43 = vmul.f32 0.7978846, %v1652_v5  ;;  %v1718_v4 = vmul.f32 0.7978846, %v1654_v53  ;;  %v1651_v27 = vadd.f32 %v1587_v34, %v4040_v52  ;;  %v4978_v20 = vld [vmem:[#allocation26_spill] sm:$0xff]  ;;  %v1047_v34 = vpop.xlane.xlu0 %1046 }
 0x2a1   : > { %v4225_v32 = vadd.f32 %v3907_v59, %v1278_v11  ;;  %v1839_v37 = vadd.f32 1.0, %v2821_v8  ;;  %v4228_v41 = vmul.f32 0.5, %v4048_v1  ;;  %v1653_v31 = vadd.f32 %v1589_v10, %v4048_v1  ;;  %v4979_v10 = vld [vmem:[#allocation11_spill] sm:$0xff] }
 0x2a2   : > { %v2823_v38 = vpop.eup %2822  ;;  %2259 = vmatprep.mubr.bf16.mxu1 %v1960_v14  ;;  %v1279_v55 = vmul.f32 %v3904_v23, %v1203_v33  ;;  %2826 = vtanh.f32 %v1716_v43  ;;  %v1715_v47 = vmul.f32 0.7978846, %v1651_v27  ;;  %v1119_v58 = vadd.f32 1e-05, %v1087_v63 }
 0x2a3   : > { %v2825_v18 = vpop.eup %2824  ;;  %v1841_v21 = vadd.f32 1.0, %v2823_v38  ;;  %2828 = vtanh.f32 %v1718_v4  ;;  %v1717_v52 = vmul.f32 0.7978846, %v1653_v31  ;;  %v1120_v15 = vadd.f32 1e-05, %v1088_v51 }
 0x2a4   : > { %v1280_v11 = vmul.f32 %v3887_v2, %v1204_v60  ;;  %2830 = vtanh.f32 %v1715_v47  ;;  %v4234_v16 = vmul.f32 0.5, %v4063_v29  ;;  %v1464_v1 = vmul.f32 0.044715, %v4063_v29 }
 0x2a5   : > { %v1903_v17 = vmul.f32 %v1839_v37, %v4153_v44  ;;  %v1905_v33 = vmul.f32 %v1841_v21, %v4172_v9  ;;  %2832 = vtanh.f32 %v1717_v52  ;;  %v1466_v0 = vmul.f32 0.044715, %v4072_v30 }
 0x2a6   : > { %v4241_v63 = vadd.f32 %v3926_v24, %v1279_v55  ;;  %v1205_v5 = vmul.f32 %v2825_v18, %v4978_v20  ;;  %2834 = vrsqrt.f32 %v1119_v58  ;;  %v1528_v53 = vmul.f32 %v1464_v1, %v4063_v29 }
 0x2a7   : > { %v1959_v60 = vpack.c.bf16 %v1905_v33, %v1903_v17  ;;  %v1206_v51 = vmul.f32 %v2825_v18, %v4979_v10  ;;  %2836 = vrsqrt.f32 %v1120_v15  ;;  %v1530_v44 = vmul.f32 %v1466_v0, %v4072_v30 }
 0x2a8   : > { %v4248_v9 = vadd.f32 %v3907_v59, %v1280_v11  ;;  %v4251_v8 = vmul.f32 0.5, %v4072_v30  ;;  %v1592_v14 = vmul.f32 %v1528_v53, %v4063_v29  ;;  %v1463_v43 = vmul.f32 0.044715, %v4060_v7 }
 0x2a9   : > { %2260 = vmatmul.mubr.bf16.gmra.mrb[8].mxu1 %v1959_v60  ;;  %v1594_v4 = vmul.f32 %v1530_v44, %v4072_v30  ;;  %v1465_v27 = vmul.f32 0.044715, %v4069_v45  ;;  %v1089_v37 = vmul.f32 0.00390625, %v1047_v34  ;;  %v1090_v31 = vmul.f32 0.00390625, %v1050_v50 }
 0x2aa   : > { %v1281_v38 = vmul.f32 %v3904_v23, %v1205_v5  ;;  %v1656_v55 = vadd.f32 %v1592_v14, %v4063_v29  ;;  %v4260_v47 = vmul.f32 0.5, %v4060_v7  ;;  %v1527_v58 = vmul.f32 %v1463_v43, %v4060_v7 }
 0x2ab   : > { %v1282_v18 = vmul.f32 %v3887_v2, %v1206_v51  ;;  %v1658_v21 = vadd.f32 %v1594_v4, %v4072_v30  ;;  %v1529_v52 = vmul.f32 %v1465_v27, %v4069_v45  ;;  %v1121_v15 = vadd.f32 1e-05, %v1089_v37 }
 0x2ac   : > { %v2827_v11 = vpop.eup %2826  ;;  %v1720_v1 = vmul.f32 0.7978846, %v1656_v55  ;;  %v1591_v17 = vmul.f32 %v1527_v58, %v4060_v7  ;;  %v1122_v33 = vadd.f32 1e-05, %v1090_v31  ;;  %v1468_v0 = vmul.f32 0.044715, %v4103_v25 }
 0x2ad   : > { %v2829_v29 = vpop.eup %2828  ;;  %v1844_v20 = vadd.f32 1.0, %v2827_v11  ;;  %v1722_v5 = vmul.f32 0.7978846, %v1658_v21  ;;  %v1593_v53 = vmul.f32 %v1529_v52, %v4069_v45  ;;  %2838 = vrsqrt.f32 %v1121_v15  ;;  %v4980_v58 = vld [vmem:[#allocation12_spill] sm:$0xff]  ;;  %v4981_v11 = vld [vmem:[#allocation13_spill] sm:$0xff] }
 0x2ae   : > { %v2831_v34 = vpop.eup %2830  ;;  %v1846_v50 = vadd.f32 1.0, %v2829_v29  ;;  %2840 = vtanh.f32 %v1720_v1  ;;  %v1655_v30 = vadd.f32 %v1591_v17, %v4060_v7  ;;  %v1470_v60 = vmul.f32 0.044715, %v4110_v26  ;;  %v4982_v17 = vld [vmem:[#allocation14_spill] sm:$0xff] }
 0x2af   : > { %v2833_v10 = vpop.eup %2832  ;;  %v1908_v51 = vmul.f32 %v1844_v20, %v4186_v62  ;;  %v1843_v44 = vadd.f32 1.0, %v2831_v34  ;;  %2842 = vtanh.f32 %v1722_v5  ;;  %v1657_v14 = vadd.f32 %v1593_v53, %v4069_v45  ;;  %v4983_v20 = vld [vmem:[#allocation15_spill] sm:$0xff]  ;;  %v972_v53 = vpop.xlane.xlu1 %971 }
 0x2b0   : > { %v2835_v43 = vpop.eup %2834  ;;  %v1910_v4 = vmul.f32 %v1846_v50, %v4197_v6  ;;  %v1845_v27 = vadd.f32 1.0, %v2833_v10  ;;  %v1719_v37 = vmul.f32 0.7978846, %v1655_v30  ;;  %2844 = vrsqrt.f32 %v1122_v33  ;;  %v969_v33 = vpop.xlane.xlu0 %968 }
 0x2b1   : > { %v2837_v31 = vpop.eup %2836  ;;  %v1907_v55 = vmul.f32 %v1843_v44, %v4206_v36  ;;  %v1207_v7 = vmul.f32 %v2835_v43, %v4980_v58  ;;  %v1721_v21 = vmul.f32 0.7978846, %v1657_v14  ;;  %v1532_v52 = vmul.f32 %v1468_v0, %v4103_v25 }
 0x2b2   : > { %v1962_v15 = vpack.c.bf16 %v1910_v4, %v1908_v51  ;;  %v1909_v62 = vmul.f32 %v1845_v27, %v4228_v41  ;;  %v1208_v1 = vmul.f32 %v2835_v43, %v4981_v11  ;;  %v1209_v29 = vmul.f32 %v2837_v31, %v4982_v17 }
 0x2b3   : > { %v1210_v6 = vmul.f32 %v2837_v31, %v4983_v20  ;;  %v4282_v5 = vmul.f32 0.5, %v4069_v45  ;;  %2846 = vtanh.f32 %v1719_v37  ;;  %v1534_v36 = vmul.f32 %v1470_v60, %v4110_v26 }
 0x2b4   : > { %v4286_v34 = vadd.f32 %v3926_v24, %v1281_v38  ;;  %v4289_v0 = vadd.f32 %v3907_v59, %v1282_v18  ;;  %2269 = vmatprep.mubr.bf16.mxu1 %v1962_v15  ;;  %v1961_v41 = vpack.c.bf16 %v1909_v62, %v1907_v55  ;;  %2848 = vtanh.f32 %v1721_v21 }
 0x2b5   : > { %v1283_v50 = vmul.f32 %v3904_v23, %v1207_v7  ;;  %v4293_v30 = vmul.f32 0.5, %v4103_v25  ;;  %v1596_v45 = vmul.f32 %v1532_v52, %v4103_v25  ;;  %v1598_v60 = vmul.f32 %v1534_v36, %v4110_v26 }
 0x2b6   : > { %2270 = vmatmul.mubr.bf16.gmra.mrb[12].mxu1 %v1961_v41  ;;  %v1284_v10 = vmul.f32 %v3887_v2, %v1208_v1  ;;  %v1285_v38 = vmul.f32 %v3904_v23, %v1209_v29  ;;  %v1063_v51 = vmul.f32 0.00390625, %v969_v33  ;;  %v1064_v18 = vmul.f32 0.00390625, %v972_v53  ;;  %v4984_v53 = vld [vmem:[#allocation17_spill] sm:$0xff] }
 0x2b7   : > { %v2839_v44 = vpop.eup %2838  ;;  %v1286_v14 = vmul.f32 %v3887_v2, %v1210_v6  ;;  %v4301_v43 = vmul.f32 0.5, %v4110_v26  ;;  %v1660_v4 = vadd.f32 %v1596_v45, %v4103_v25  ;;  %v1662_v27 = vadd.f32 %v1598_v60, %v4110_v26 }
 0x2b8   : > { %v2841_v37 = vpop.eup %2840  ;;  %v1211_v31 = vmul.f32 %v2839_v44, %v3830_v57  ;;  %v1212_v55 = vmul.f32 %v2839_v44, %v3833_v13  ;;  %v1095_v58 = vadd.f32 1e-05, %v1063_v51  ;;  %v1096_v7 = vadd.f32 1e-05, %v1064_v18  ;;  %v4985_v44 = vld [vmem:[#allocation9_spill] sm:$0xff] }
 0x2b9   : > { %v2843_v21 = vpop.eup %2842  ;;  %v4308_v52 = vadd.f32 %v3926_v24, %v1283_v50  ;;  %v1848_v15 = vadd.f32 1.0, %v2841_v37  ;;  %v1724_v62 = vmul.f32 0.7978846, %v1660_v4  ;;  %v1726_v11 = vmul.f32 0.7978846, %v1662_v27 }
 0x2ba   : > { %v2845_v1 = vpop.eup %2844  ;;  %v4311_v17 = vadd.f32 %v3907_v59, %v1284_v10  ;;  %v4314_v25 = vadd.f32 %v3926_v24, %v1285_v38  ;;  %v1850_v26 = vadd.f32 1.0, %v2843_v21  ;;  %2850 = vrsqrt.f32 %v1095_v58 }
 0x2bb   : > { %v4317_v13 = vadd.f32 %v3907_v59, %v1286_v14  ;;  %v1287_v57 = vmul.f32 %v3904_v23, %v1211_v31  ;;  %2852 = vtanh.f32 %v1724_v62  ;;  %v4321_v29 = vmul.f32 0.5, %v4100_v42 }
 0x2bc   : > { %v1912_v20 = vmul.f32 %v1848_v15, %v4234_v16  ;;  %v1914_v6 = vmul.f32 %v1850_v26, %v4251_v8  ;;  %v1288_v36 = vmul.f32 %v3887_v2, %v1212_v55  ;;  %2854 = vtanh.f32 %v1726_v11 }
 0x2bd   : > { %v2847_v33 = vpop.eup %2846  ;;  %v1213_v41 = vmul.f32 %v2845_v1, %v4984_v53  ;;  %2856 = vrsqrt.f32 %v1096_v7  ;;  %v4328_v50 = vmul.f32 0.5, %v4106_v28  ;;  %v1467_v45 = vmul.f32 0.044715, %v4100_v42 }
 0x2be   : > { %v2849_v60 = vpop.eup %2848  ;;  %v1964_v10 = vpack.c.bf16 %v1914_v6, %v1912_v20  ;;  %v1847_v38 = vadd.f32 1.0, %v2847_v33  ;;  %v1469_v51 = vmul.f32 0.044715, %v4106_v28  ;;  %v4333_v16 = vmul.f32 0.5, %v4139_v12 }
 0x2bf   : > { %v1849_v8 = vadd.f32 1.0, %v2849_v60  ;;  %v4336_v18 = vadd.f32 %v3926_v24, %v1287_v57  ;;  %v1214_v14 = vmul.f32 %v2845_v1, %v4985_v44  ;;  %v1531_v4 = vmul.f32 %v1467_v45, %v4100_v42  ;;  %v4986_v60 = vld [vmem:[#allocation7_spill] sm:$0xff] }
 0x2c0   : > { %2279 = vmatprep.mubr.bf16.mxu1 %v1964_v10  ;;  %v4341_v27 = vadd.f32 %v3907_v59, %v1288_v36  ;;  %v1533_v37 = vmul.f32 %v1469_v51, %v4106_v28  ;;  %v1472_v31 = vmul.f32 0.044715, %v4139_v12  ;;  %v1474_v55 = vmul.f32 0.044715, %v4148_v49 }
 0x2c1   : > { %v1911_v58 = vmul.f32 %v1847_v38, %v4260_v47  ;;  %v1913_v7 = vmul.f32 %v1849_v8, %v4282_v5  ;;  %v1289_v21 = vmul.f32 %v3904_v23, %v1213_v41  ;;  %v1595_v15 = vmul.f32 %v1531_v4, %v4100_v42  ;;  %v4987_v38 = vld [vmem:[#allocation8_spill] sm:$0xff] }
 0x2c2   : > { %v1597_v62 = vmul.f32 %v1533_v37, %v4106_v28  ;;  %v1536_v11 = vmul.f32 %v1472_v31, %v4139_v12  ;;  %v1538_v1 = vmul.f32 %v1474_v55, %v4148_v49  ;;  %v1471_v26 = vmul.f32 0.044715, %v4124_v54 }
 0x2c3   : > { %v1963_v57 = vpack.c.bf16 %v1913_v7, %v1911_v58  ;;  %v1290_v20 = vmul.f32 %v3887_v2, %v1214_v14  ;;  %v1659_v6 = vadd.f32 %v1595_v15, %v4100_v42  ;;  %v1473_v47 = vmul.f32 0.044715, %v4142_v48 }
 0x2c4   : > { %v2851_v5 = vpop.eup %2850  ;;  %v1661_v36 = vadd.f32 %v1597_v62, %v4106_v28  ;;  %v4359_v33 = vmul.f32 0.5, %v4148_v49  ;;  %v1600_v53 = vmul.f32 %v1536_v11, %v4139_v12  ;;  %v1602_v41 = vmul.f32 %v1538_v1, %v4148_v49 }
 0x2c5   : > { %v2853_v45 = vpop.eup %2852  ;;  %2280 = vmatmul.mubr.bf16.gmra.mrb[16].mxu1 %v1963_v57  ;;  %v1159_v10 = vmul.f32 %v2851_v5, %v4986_v60  ;;  %v1160_v51 = vmul.f32 %v2851_v5, %v4987_v38  ;;  %v1723_v8 = vmul.f32 0.7978846, %v1659_v6  ;;  %v1535_v42 = vmul.f32 %v1471_v26, %v4124_v54  ;;  %v4988_v26 = vld [vmem:[#allocation16_spill] sm:$0xff] }
 0x2c6   : > { %v2855_v44 = vpop.eup %2854  ;;  %v1852_v14 = vadd.f32 1.0, %v2853_v45  ;;  %v1725_v4 = vmul.f32 0.7978846, %v1661_v36  ;;  %v1664_v28 = vadd.f32 %v1600_v53, %v4139_v12  ;;  %v1666_v37 = vadd.f32 %v1602_v41, %v4148_v49 }
 0x2c7   : > { %v2857_v31 = vpop.eup %2856  ;;  %v4369_v55 = vadd.f32 %v3926_v24, %v1289_v21  ;;  %v1854_v58 = vadd.f32 1.0, %v2855_v44  ;;  %2858 = vtanh.f32 %v1723_v8  ;;  %v1537_v7 = vmul.f32 %v1473_v47, %v4142_v48 }
 0x2c8   : > { %v4373_v15 = vadd.f32 %v3907_v59, %v1290_v20  ;;  %v1235_v62 = vmul.f32 %v3904_v23, %v1159_v10  ;;  %2860 = vtanh.f32 %v1725_v4  ;;  %v4377_v11 = vmul.f32 0.5, %v4124_v54 }
 0x2c9   : > { %v1916_v12 = vmul.f32 %v1852_v14, %v4293_v30  ;;  %v1918_v49 = vmul.f32 %v1854_v58, %v4301_v43  ;;  %v1236_v21 = vmul.f32 %v3887_v2, %v1160_v51  ;;  %v1728_v1 = vmul.f32 0.7978846, %v1664_v28 }
 0x2ca   : > { %v1161_v57 = vmul.f32 %v2857_v31, %v4988_v26  ;;  %v1162_v6 = vmul.f32 %v2857_v31, %v3839_v19  ;;  %v1730_v47 = vmul.f32 0.7978846, %v1666_v37  ;;  %v1599_v20 = vmul.f32 %v1535_v42, %v4124_v54 }
 0x2cb   : > { %v1966_v5 = vpack.c.bf16 %v1918_v49, %v1916_v12  ;;  %2862 = vtanh.f32 %v1728_v1  ;;  %v4386_v36 = vmul.f32 0.5, %v4142_v48  ;;  %v1601_v53 = vmul.f32 %v1537_v7, %v4142_v48 }
 0x2cc   : > { %v4390_v30 = vadd.f32 %v3926_v24, %v1235_v62  ;;  %2864 = vtanh.f32 %v1730_v47  ;;  %v1663_v43 = vadd.f32 %v1599_v20, %v4124_v54  ;;  %v4394_v41 = vmul.f32 0.5, %v4175_v46 }
 0x2cd   : > { %2289 = vmatprep.mubr.bf16.mxu1 %v1966_v5  ;;  %v4397_v19 = vadd.f32 %v3907_v59, %v1236_v21  ;;  %v1665_v45 = vadd.f32 %v1601_v53, %v4142_v48  ;;  %v1476_v60 = vmul.f32 0.044715, %v4175_v46  ;;  %v1478_v10 = vmul.f32 0.044715, %v4181_v56 }
 0x2ce   : > { %v1237_v38 = vmul.f32 %v3904_v23, %v1161_v57  ;;  %v1238_v51 = vmul.f32 %v3887_v2, %v1162_v6  ;;  %v1727_v8 = vmul.f32 0.7978846, %v1663_v43  ;;  %v1475_v54 = vmul.f32 0.044715, %v4167_v22 }
 0x2cf   : > { %v1729_v42 = vmul.f32 0.7978846, %v1665_v45  ;;  %v1540_v44 = vmul.f32 %v1476_v60, %v4175_v46  ;;  %v1542_v14 = vmul.f32 %v1478_v10, %v4181_v56  ;;  %v1477_v4 = vmul.f32 0.044715, %v4178_v40 }
 0x2d0   : > { %2866 = vtanh.f32 %v1727_v8  ;;  %v4409_v48 = vmul.f32 0.5, %v4181_v56  ;;  %v1539_v28 = vmul.f32 %v1475_v54, %v4167_v22  ;;  %v1480_v37 = vmul.f32 0.044715, %v4194_v3 }
 0x2d1   : > { %v2859_v31 = vpop.eup %2858  ;;  %2868 = vtanh.f32 %v1729_v42  ;;  %v1604_v58 = vmul.f32 %v1540_v44, %v4175_v46  ;;  %v1606_v7 = vmul.f32 %v1542_v14, %v4181_v56  ;;  %v1541_v62 = vmul.f32 %v1477_v4, %v4178_v40 }
 0x2d2   : > { %v2861_v12 = vpop.eup %2860  ;;  %v1851_v49 = vadd.f32 1.0, %v2859_v31  ;;  %v1603_v21 = vmul.f32 %v1539_v28, %v4167_v22  ;;  %v1482_v1 = vmul.f32 0.044715, %v4225_v32  ;;  %v1544_v26 = vmul.f32 %v1480_v37, %v4194_v3 }
 0x2d3   : > { %v1853_v57 = vadd.f32 1.0, %v2861_v12  ;;  %v1668_v6 = vadd.f32 %v1604_v58, %v4175_v46  ;;  %v1670_v47 = vadd.f32 %v1606_v7, %v4181_v56  ;;  %v1605_v20 = vmul.f32 %v1541_v62, %v4178_v40 }
 0x2d4   : > { %v1915_v5 = vmul.f32 %v1851_v49, %v4321_v29  ;;  %v1667_v53 = vadd.f32 %v1603_v21, %v4167_v22  ;;  %v1546_v43 = vmul.f32 %v1482_v1, %v4225_v32  ;;  %v1608_v45 = vmul.f32 %v1544_v26, %v4194_v3 }
 0x2d5   : > { %v2863_v60 = vpop.eup %2862  ;;  %v1917_v10 = vmul.f32 %v1853_v57, %v4328_v50  ;;  %v1732_v8 = vmul.f32 0.7978846, %v1668_v6  ;;  %v1734_v54 = vmul.f32 0.7978846, %v1670_v47  ;;  %v1669_v42 = vadd.f32 %v1605_v20, %v4178_v40 }
 0x2d6   : > { %v2865_v46 = vpop.eup %2864  ;;  %v1856_v44 = vadd.f32 1.0, %v2863_v60  ;;  %v1731_v56 = vmul.f32 0.7978846, %v1667_v53  ;;  %v1610_v14 = vmul.f32 %v1546_v43, %v4225_v32  ;;  %v1672_v29 = vadd.f32 %v1608_v45, %v4194_v3 }
 0x2d7   : > { %v1965_v4 = vpack.c.bf16 %v1917_v10, %v1915_v5  ;;  %v1858_v28 = vadd.f32 1.0, %v2865_v46  ;;  %2870 = vtanh.f32 %v1732_v8  ;;  %v1733_v37 = vmul.f32 0.7978846, %v1669_v42 }
 0x2d8   : > { %v4431_v31 = vadd.f32 %v3926_v24, %v1237_v38  ;;  %2872 = vtanh.f32 %v1734_v54  ;;  %v1674_v50 = vadd.f32 %v1610_v14, %v4225_v32  ;;  %v1736_v58 = vmul.f32 0.7978846, %v1672_v29 }
 0x2d9   : > { %v4435_v7 = vadd.f32 %v3907_v59, %v1238_v51  ;;  %2290 = vmatmul.mubr.bf16.gmra.mrb[20].mxu1 %v1965_v4  ;;  %v1920_v62 = vmul.f32 %v1856_v44, %v4333_v16  ;;  %v1922_v12 = vmul.f32 %v1858_v28, %v4359_v33  ;;  %2874 = vtanh.f32 %v1731_v56 }
 0x2da   : > { %v2867_v49 = vpop.eup %2866  ;;  %2876 = vtanh.f32 %v1733_v37  ;;  %v1738_v21 = vmul.f32 0.7978846, %v1674_v50  ;;  %v1479_v1 = vmul.f32 0.044715, %v4191_v39  ;;  %v1481_v38 = vmul.f32 0.044715, %v4219_v61 }
 0x2db   : > { %v2869_v26 = vpop.eup %2868  ;;  %v1968_v57 = vpack.c.bf16 %v1922_v12, %v1920_v62  ;;  %v1855_v6 = vadd.f32 1.0, %v2867_v49  ;;  %v1411_v47 = vmul.f32 0.5, %v4167_v22  ;;  %2878 = vtanh.f32 %v1736_v58 }
 0x2dc   : > { %v1857_v51 = vadd.f32 1.0, %v2869_v26  ;;  %2880 = vtanh.f32 %v1738_v21  ;;  %v1543_v16 = vmul.f32 %v1479_v1, %v4191_v39  ;;  %v1545_v33 = vmul.f32 %v1481_v38, %v4219_v61 }
 0x2dd   : > { %2299 = vmatprep.mubr.bf16.mxu1 %v1968_v57  ;;  %v1413_v20 = vmul.f32 0.5, %v4178_v40  ;;  %v1416_v5 = vmul.f32 0.5, %v4194_v3  ;;  %v1484_v53 = vmul.f32 0.044715, %v4248_v9  ;;  %v1486_v43 = vmul.f32 0.044715, %v4289_v0 }
 0x2de   : > { %v1919_v45 = vmul.f32 %v1855_v6, %v4377_v11  ;;  %v1921_v22 = vmul.f32 %v1857_v51, %v4386_v36  ;;  %v1607_v60 = vmul.f32 %v1543_v16, %v4191_v39  ;;  %v1609_v10 = vmul.f32 %v1545_v33, %v4219_v61 }
 0x2df   : > { %v1418_v8 = vmul.f32 0.5, %v4225_v32  ;;  %v1548_v54 = vmul.f32 %v1484_v53, %v4248_v9  ;;  %v1550_v40 = vmul.f32 %v1486_v43, %v4289_v0  ;;  %v1483_v3 = vmul.f32 0.044715, %v4241_v63 }
 0x2e0   : > { %v1967_v42 = vpack.c.bf16 %v1921_v22, %v1919_v45  ;;  %v1671_v46 = vadd.f32 %v1607_v60, %v4191_v39  ;;  %v1673_v44 = vadd.f32 %v1609_v10, %v4219_v61  ;;  %v1485_v11 = vmul.f32 0.044715, %v4286_v34 }
 0x2e1   : > { %v2871_v36 = vpop.eup %2870  ;;  %v4460_v56 = vmul.f32 0.5, %v4191_v39  ;;  %v1612_v14 = vmul.f32 %v1548_v54, %v4248_v9  ;;  %v1614_v32 = vmul.f32 %v1550_v40, %v4289_v0  ;;  %v1547_v29 = vmul.f32 %v1483_v3, %v4241_v63 }
 0x2e2   : > { %v2873_v4 = vpop.eup %2872  ;;  %2300 = vmatmul.mubr.bf16.gmra.mrb[24].mxu1 %v1967_v42  ;;  %v1860_v28 = vadd.f32 1.0, %v2871_v36  ;;  %v1735_v37 = vmul.f32 0.7978846, %v1671_v46  ;;  %v1737_v50 = vmul.f32 0.7978846, %v1673_v44  ;;  %v1549_v58 = vmul.f32 %v1485_v11, %v4286_v34 }
 0x2e3   : > { %v2875_v62 = vpop.eup %2874  ;;  %v1862_v12 = vadd.f32 1.0, %v2873_v4  ;;  %v1676_v49 = vadd.f32 %v1612_v14, %v4248_v9  ;;  %v1678_v39 = vadd.f32 %v1614_v32, %v4289_v0  ;;  %v1611_v21 = vmul.f32 %v1547_v29, %v4241_v63 }
 0x2e4   : > { %v2877_v1 = vpop.eup %2876  ;;  %v1924_v38 = vmul.f32 %v1860_v28, %v4394_v41  ;;  %v1859_v26 = vadd.f32 1.0, %v2875_v62  ;;  %2882 = vtanh.f32 %v1735_v37  ;;  %v1613_v57 = vmul.f32 %v1549_v58, %v4286_v34 }
 0x2e5   : > { %v2879_v6 = vpop.eup %2878  ;;  %v1926_v51 = vmul.f32 %v1862_v12, %v4409_v48  ;;  %v1861_v16 = vadd.f32 1.0, %v2877_v1  ;;  %2884 = vtanh.f32 %v1737_v50  ;;  %v1740_v33 = vmul.f32 0.7978846, %v1676_v49 }
 0x2e6   : > { %v2881_v53 = vpop.eup %2880  ;;  %v1923_v43 = vmul.f32 %v1859_v26, %v1411_v47  ;;  %v1864_v45 = vadd.f32 1.0, %v2879_v6  ;;  %v1742_v22 = vmul.f32 0.7978846, %v1678_v39  ;;  %v1675_v60 = vadd.f32 %v1611_v21, %v4241_v63 }
 0x2e7   : > { %v1970_v10 = vpack.c.bf16 %v1926_v51, %v1924_v38  ;;  %v1925_v54 = vmul.f32 %v1861_v16, %v1413_v20  ;;  %v1866_v40 = vadd.f32 1.0, %v2881_v53  ;;  %2886 = vtanh.f32 %v1740_v33 }
 0x2e8   : > { %v1417_v41 = vmul.f32 0.5, %v4219_v61  ;;  %2888 = vtanh.f32 %v1742_v22  ;;  %v1677_v3 = vadd.f32 %v1613_v57, %v4286_v34  ;;  %v1739_v42 = vmul.f32 0.7978846, %v1675_v60 }
 0x2e9   : > { %2309 = vmatprep.mubr.bf16.mxu1 %v1970_v10  ;;  %v1969_v48 = vpack.c.bf16 %v1925_v54, %v1923_v43  ;;  %v1928_v46 = vmul.f32 %v1864_v45, %v1416_v5  ;;  %v1930_v44 = vmul.f32 %v1866_v40, %v1418_v8  ;;  %v1488_v47 = vmul.f32 0.044715, %v4311_v17 }
 0x2ea   : > { %v1420_v11 = vmul.f32 0.5, %v4248_v9  ;;  %v1741_v36 = vmul.f32 0.7978846, %v1677_v3  ;;  %2890 = vtanh.f32 %v1739_v42  ;;  %v1490_v20 = vmul.f32 0.044715, %v4317_v13 }
 0x2eb   : > { %2310 = vmatmul.mubr.bf16.gmra.mrb[28].mxu1 %v1969_v48  ;;  %v1972_v14 = vpack.c.bf16 %v1930_v44, %v1928_v46  ;;  %v1422_v61 = vmul.f32 0.5, %v4289_v0  ;;  %v1552_v32 = vmul.f32 %v1488_v47, %v4311_v17  ;;  %v1487_v29 = vmul.f32 0.044715, %v4308_v52 }
 0x2ec   : > { %v1419_v4 = vmul.f32 0.5, %v4241_v63  ;;  %2892 = vtanh.f32 %v1741_v36  ;;  %v1554_v5 = vmul.f32 %v1490_v20, %v4317_v13  ;;  %v1489_v8 = vmul.f32 0.044715, %v4314_v25 }
 0x2ed   : > { %2319 = vmatprep.mubr.bf16.mxu1 %v1972_v14  ;;  %v1421_v9 = vmul.f32 0.5, %v4286_v34  ;;  %v1616_v28 = vmul.f32 %v1552_v32, %v4311_v17  ;;  %v1551_v37 = vmul.f32 %v1487_v29, %v4308_v52  ;;  %v1492_v0 = vmul.f32 0.044715, %v4341_v27 }
 0x2ee   : > { %v2883_v50 = vpop.eup %2882  ;;  %v4489_v58 = vmul.f32 0.5, %v4311_v17  ;;  %v1618_v63 = vmul.f32 %v1554_v5, %v4317_v13  ;;  %v1553_v62 = vmul.f32 %v1489_v8, %v4314_v25  ;;  %v1494_v12 = vmul.f32 0.044715, %v4373_v15 }
 0x2ef   : > { %v2885_v49 = vpop.eup %2884  ;;  %v1863_v39 = vadd.f32 1.0, %v2883_v50  ;;  %v1680_v34 = vadd.f32 %v1616_v28, %v4311_v17  ;;  %v1615_v21 = vmul.f32 %v1551_v37, %v4308_v52  ;;  %v1556_v1 = vmul.f32 %v1492_v0, %v4341_v27 }
 0x2f0   : > { %v1865_v38 = vadd.f32 1.0, %v2885_v49  ;;  %v1682_v26 = vadd.f32 %v1618_v63, %v4317_v13  ;;  %v1617_v57 = vmul.f32 %v1553_v62, %v4314_v25  ;;  %v1558_v6 = vmul.f32 %v1494_v12, %v4373_v15  ;;  %v1053_v49 = vpop.xlane.xlu0 %1052 }
 0x2f1   : > { %v2887_v51 = vpop.eup %2886  ;;  %v1927_v16 = vmul.f32 %v1863_v39, %v4460_v56  ;;  %v1744_v33 = vmul.f32 0.7978846, %v1680_v34  ;;  %v1679_v53 = vadd.f32 %v1615_v21, %v4308_v52  ;;  %v1620_v43 = vmul.f32 %v1556_v1, %v4341_v27 }
 0x2f2   : > { %v2889_v17 = vpop.eup %2888  ;;  %v1929_v45 = vmul.f32 %v1865_v38, %v1417_v41  ;;  %v1868_v22 = vadd.f32 1.0, %v2887_v51  ;;  %v1746_v60 = vmul.f32 0.7978846, %v1682_v26  ;;  %v1681_v10 = vadd.f32 %v1617_v57, %v4314_v25 }
 0x2f3   : > { %v1870_v54 = vadd.f32 1.0, %v2889_v17  ;;  %2894 = vtanh.f32 %v1744_v33  ;;  %v1743_v40 = vmul.f32 0.7978846, %v1679_v53  ;;  %v1622_v3 = vmul.f32 %v1558_v6, %v4373_v15 }
 0x2f4   : > { %v2891_v42 = vpop.eup %2890  ;;  %v1971_v48 = vpack.c.bf16 %v1929_v45, %v1927_v16  ;;  %v1932_v46 = vmul.f32 %v1868_v22, %v1420_v11  ;;  %2896 = vtanh.f32 %v1746_v60  ;;  %v1745_v56 = vmul.f32 0.7978846, %v1681_v10 }
 0x2f5   : > { %v1934_v44 = vmul.f32 %v1870_v54, %v1422_v61  ;;  %v1867_v47 = vadd.f32 1.0, %v2891_v42  ;;  %2898 = vtanh.f32 %v1743_v40  ;;  %v1684_v36 = vadd.f32 %v1620_v43, %v4341_v27 }
 0x2f6   : > { %v2893_v41 = vpop.eup %2892  ;;  %2320 = vmatmul.mubr.bf16.gmra.mrb[32].mxu1 %v1971_v48  ;;  %v1426_v20 = vmul.f32 0.5, %v4317_v13  ;;  %2900 = vtanh.f32 %v1745_v56  ;;  %v1686_v14 = vadd.f32 %v1622_v3, %v4373_v15  ;;  %v1491_v32 = vmul.f32 0.044715, %v4336_v18 }
 0x2f7   : > { %v1974_v29 = vpack.c.bf16 %v1934_v44, %v1932_v46  ;;  %v1869_v5 = vadd.f32 1.0, %v2893_v41  ;;  %v1423_v11 = vmul.f32 0.5, %v4308_v52  ;;  %v1748_v8 = vmul.f32 0.7978846, %v1684_v36  ;;  %v975_v36 = vpop.xlane.xlu0 %974 }
 0x2f8   : > { %v1425_v61 = vmul.f32 0.5, %v4314_v25  ;;  %v1750_v28 = vmul.f32 0.7978846, %v1686_v14  ;;  %v1493_v37 = vmul.f32 0.044715, %v4369_v55  ;;  %v1555_v0 = vmul.f32 %v1491_v32, %v4336_v18  ;;  %v1056_v25 = vpop.xlane.xlu1 %1055 }
 0x2f9   : > { %2329 = vmatprep.mubr.bf16.mxu1 %v1974_v29  ;;  %v1931_v50 = vmul.f32 %v1867_v47, %v1419_v4  ;;  %v1933_v13 = vmul.f32 %v1869_v5, %v1421_v9  ;;  %2902 = vtanh.f32 %v1748_v8  ;;  %v1440_v63 = vmul.f32 0.044715, %v4397_v19 }
 0x2fa   : > { %2904 = vtanh.f32 %v1750_v28  ;;  %v1557_v62 = vmul.f32 %v1493_v37, %v4369_v55  ;;  %v1619_v12 = vmul.f32 %v1555_v0, %v4336_v18  ;;  %v1442_v52 = vmul.f32 0.044715, %v4435_v7 }
 0x2fb   : > { %v1973_v39 = vpack.c.bf16 %v1933_v13, %v1931_v50  ;;  %v1428_v34 = vmul.f32 0.5, %v4341_v27  ;;  %v1430_v21 = vmul.f32 0.5, %v4373_v15  ;;  %v1504_v4 = vmul.f32 %v1440_v63, %v4397_v19 }
 0x2fc   : > { %v1621_v9 = vmul.f32 %v1557_v62, %v4369_v55  ;;  %v1683_v1 = vadd.f32 %v1619_v12, %v4336_v18  ;;  %v1506_v38 = vmul.f32 %v1442_v52, %v4435_v7  ;;  %v1439_v26 = vmul.f32 0.044715, %v4390_v30  ;;  %v978_v41 = vpop.xlane.xlu1 %977  ;;  %v1059_v12 = vpop.xlane.xlu0 %1058 }
 0x2fd   : > { %v2895_v57 = vpop.eup %2894  ;;  %v1568_v6 = vmul.f32 %v1504_v4, %v4397_v19  ;;  %v1441_v51 = vmul.f32 0.044715, %v4431_v31  ;;  %v1091_v16 = vmul.f32 0.00390625, %v1053_v49  ;;  %v1092_v33 = vmul.f32 0.00390625, %v1056_v25 }
 0x2fe   : > { %v2897_v27 = vpop.eup %2896  ;;  %2330 = vmatmul.mubr.bf16.gmra.mrb[36].mxu1 %v1973_v39  ;;  %v1872_v15 = vadd.f32 1.0, %v2895_v57  ;;  %v1685_v53 = vadd.f32 %v1621_v9, %v4369_v55  ;;  %v1747_v43 = vmul.f32 0.7978846, %v1683_v1  ;;  %v1570_v17 = vmul.f32 %v1506_v38, %v4435_v7 }
 0x2ff   : > { %v2899_v45 = vpop.eup %2898  ;;  %v1874_v22 = vadd.f32 1.0, %v2897_v27  ;;  %v1632_v60 = vadd.f32 %v1568_v6, %v4397_v19  ;;  %v1503_v10 = vmul.f32 %v1439_v26, %v4390_v30  ;;  %v1505_v54 = vmul.f32 %v1441_v51, %v4431_v31 }
 0x300   : > { %v2901_v40 = vpop.eup %2900  ;;  %v1936_v3 = vmul.f32 %v1872_v15, %v4489_v58  ;;  %v1871_v42 = vadd.f32 1.0, %v2899_v45  ;;  %v1749_v48 = vmul.f32 0.7978846, %v1685_v53  ;;  %2906 = vtanh.f32 %v1747_v43  ;;  %v1062_v52 = vpop.xlane.xlu1 %1061 }
 0x301   : > { %v1938_v46 = vmul.f32 %v1874_v22, %v1426_v20  ;;  %v1873_v56 = vadd.f32 1.0, %v2901_v40  ;;  %v1634_v44 = vadd.f32 %v1570_v17, %v4435_v7  ;;  %v1696_v47 = vmul.f32 0.7978846, %v1632_v60 }
 0x302   : > { %v1935_v14 = vmul.f32 %v1871_v42, %v1423_v11  ;;  %2908 = vtanh.f32 %v1749_v48  ;;  %v1567_v32 = vmul.f32 %v1503_v10, %v4390_v30  ;;  %v1569_v29 = vmul.f32 %v1505_v54, %v4431_v31 }
 0x303   : > { %v2903_v5 = vpop.eup %2902  ;;  %v1976_v8 = vpack.c.bf16 %v1938_v46, %v1936_v3  ;;  %v1937_v28 = vmul.f32 %v1873_v56, %v1425_v61  ;;  %v1698_v58 = vmul.f32 0.7978846, %v1634_v44  ;;  %2910 = vtanh.f32 %v1696_v47  ;;  %v4989_v46 = vld [vmem:[#allocation10_spill] sm:$0xff] }
 0x304   : > { %v2905_v37 = vpop.eup %2904  ;;  %v1876_v0 = vadd.f32 1.0, %v2903_v5  ;;  %v1631_v20 = vadd.f32 %v1567_v32, %v4390_v30  ;;  %v1633_v50 = vadd.f32 %v1569_v29, %v4431_v31  ;;  %v1123_v13 = vadd.f32 1e-05, %v1091_v16  ;;  %v4992_v32 = vld [vmem:[#allocation27_spill] sm:$0xff] }
 0x305   : > { %2339 = vmatprep.mubr.bf16.mxu1 %v1976_v8  ;;  %v1975_v63 = vpack.c.bf16 %v1937_v28, %v1935_v14  ;;  %v1878_v11 = vadd.f32 1.0, %v2905_v37  ;;  %2912 = vtanh.f32 %v1698_v58  ;;  %v1124_v62 = vadd.f32 1e-05, %v1092_v33 }
 0x306   : > { %v1940_v49 = vmul.f32 %v1876_v0, %v1428_v34  ;;  %v1695_v25 = vmul.f32 0.7978846, %v1631_v20  ;;  %v1697_v39 = vmul.f32 0.7978846, %v1633_v50  ;;  %2914 = vrsqrt.f32 %v1123_v13 }
 0x307   : > { %2340 = vmatmul.mubr.bf16.gmra.mrb[40].mxu1 %v1975_v63  ;;  %v1942_v61 = vmul.f32 %v1878_v11, %v1430_v21  ;;  %2916 = vrsqrt.f32 %v1124_v62  ;;  %v1065_v4 = vmul.f32 0.00390625, %v975_v36  ;;  %v1066_v9 = vmul.f32 0.00390625, %v978_v41  ;;  %v4991_v41 = vld [vmem:[#allocation19_spill] sm:$0xff] }
 0x308   : > { %2918 = vtanh.f32 %v1695_v25  ;;  %v1093_v1 = vmul.f32 0.00390625, %v1059_v12  ;;  %v1094_v38 = vmul.f32 0.00390625, %v1062_v52  ;;  %v1427_v21 = vmul.f32 0.5, %v4336_v18  ;;  %v4990_v18 = vld [vmem:[#allocation18_spill] sm:$0xff]  ;;  %v4993_v12 = vld [vmem:[#allocation28_spill] sm:$0xff] }
 0x309   : > { %v1978_v26 = vpack.c.bf16 %v1942_v61, %v1940_v49  ;;  %2920 = vtanh.f32 %v1697_v39  ;;  %v1097_v57 = vadd.f32 1e-05, %v1065_v4  ;;  %v1098_v6 = vadd.f32 1e-05, %v1066_v9  ;;  %v4995_v39 = vld [vmem:[#allocation30_spill] sm:$0xff] }
 0x30a   : > { %v2907_v51 = vpop.eup %2906  ;;  %v1125_v16 = vadd.f32 1e-05, %v1093_v1  ;;  %v1126_v33 = vadd.f32 1e-05, %v1094_v38  ;;  %v1429_v53 = vmul.f32 0.5, %v4369_v55  ;;  %v1376_v54 = vmul.f32 0.5, %v4397_v19 }
 0x30b   : > { %2349 = vmatprep.mubr.bf16.mxu1 %v1978_v26  ;;  %v1875_v34 = vadd.f32 1.0, %v2907_v51  ;;  %2922 = vrsqrt.f32 %v1097_v57  ;;  %v1378_v40 = vmul.f32 0.5, %v4435_v7  ;;  %v1375_v19 = vmul.f32 0.5, %v4390_v30  ;;  %v4996_v51 = vld [vmem:[#allocation31_spill] sm:$0xff] }
 0x30c   : > { %v2909_v27 = vpop.eup %2908  ;;  %2924 = vrsqrt.f32 %v1098_v6  ;;  %v1377_v7 = vmul.f32 0.5, %v4431_v31  ;;  %v4994_v31 = vld [vmem:[#allocation29_spill] sm:$0xff] }
 0x30d   : > { %v2911_v15 = vpop.eup %2910  ;;  %v1877_v43 = vadd.f32 1.0, %v2909_v27  ;;  %2926 = vrsqrt.f32 %v1125_v16  ;;  %v1939_v22 = vmul.f32 %v1875_v34, %v1427_v21  ;;  %v4997_v34 = vld [vmem:[#allocation20_spill] sm:$0xff] }
 0x30e   : > { %v1824_v17 = vadd.f32 1.0, %v2911_v15  ;;  %2928 = vrsqrt.f32 %v1126_v33  ;;  %v4998_v15 = vld [vmem:[#allocation33_spill] sm:$0xff] }
 0x30f   : > { %v2913_v45 = vpop.eup %2912  ;;  %v1941_v60 = vmul.f32 %v1877_v43, %v1429_v53  ;;  %v4999_v43 = vld [vmem:[#allocation32_spill] sm:$0xff] }
 0x310   : > { %v2915_v10 = vpop.eup %2914  ;;  %v1826_v3 = vadd.f32 1.0, %v2913_v45  ;;  %v1888_v47 = vmul.f32 %v1824_v17, %v1376_v54 }
 0x311   : > { %v2917_v42 = vpop.eup %2916  ;;  %v1977_v48 = vpack.c.bf16 %v1941_v60, %v1939_v22  ;;  %v1215_v56 = vmul.f32 %v2915_v10, %v4989_v46  ;;  %v1216_v44 = vmul.f32 %v2915_v10, %v4990_v18 }
 0x312   : > { %v2919_v55 = vpop.eup %2918  ;;  %v1890_v36 = vmul.f32 %v1826_v3, %v1378_v40  ;;  %v1217_v14 = vmul.f32 %v2917_v42, %v4991_v41  ;;  %v1218_v29 = vmul.f32 %v2917_v42, %v4992_v32 }
 0x313   : > { %v2921_v5 = vpop.eup %2920  ;;  %2350 = vmatmul.mubr.bf16.gmra.mrb[44].mxu1 %v1977_v48  ;;  %v1823_v8 = vadd.f32 1.0, %v2919_v55  ;;  %v1291_v37 = vmul.f32 %v3904_v23, %v1215_v56  ;;  %v1292_v0 = vmul.f32 %v3887_v2, %v1216_v44 }
 0x314   : > { %v1952_v28 = vpack.c.bf16 %v1890_v36, %v1888_v47  ;;  %v1825_v58 = vadd.f32 1.0, %v2921_v5  ;;  %v1294_v50 = vmul.f32 %v3887_v2, %v1218_v29  ;;  %v1293_v62 = vmul.f32 %v3904_v23, %v1217_v14 }
 0x315   : > { %v2923_v20 = vpop.eup %2922  ;;  %v1887_v63 = vmul.f32 %v1823_v8, %v1375_v19  ;;  %v4556_v1 = vadd.f32 %v3926_v24, %v1291_v37  ;;  %v4559_v38 = vadd.f32 %v3907_v59, %v1292_v0 }
 0x316   : > { %v2925_v13 = vpop.eup %2924  ;;  %2219 = vmatprep.mubr.bf16.mxu0 %v1952_v28  ;;  %v1889_v11 = vmul.f32 %v1825_v58, %v1377_v7  ;;  %v1163_v30 = vmul.f32 %v2923_v20, %v4993_v12  ;;  %v1164_v49 = vmul.f32 %v2923_v20, %v4994_v31  ;;  %v4562_v26 = vadd.f32 %v3907_v59, %v1294_v50 }
 0x317   : > { %v2927_v52 = vpop.eup %2926  ;;  %v1165_v25 = vmul.f32 %v2925_v13, %v3911_v35  ;;  %v1166_v61 = vmul.f32 %v2925_v13, %v4995_v39  ;;  %v4568_v35 = vadd.f32 %v3926_v24, %v1293_v62  ;;  %v1496_v54 = vmul.f32 0.044715, %v4559_v38 }
 0x318   : > { %v2929_v4 = vpop.eup %2928  ;;  %v1951_v9 = vpack.c.bf16 %v1889_v11, %v1887_v63  ;;  %v1240_v57 = vmul.f32 %v3887_v2, %v1164_v49  ;;  %v1220_v16 = vmul.f32 %v2927_v52, %v4996_v51  ;;  %v1239_v33 = vmul.f32 %v3904_v23, %v1163_v30 }
 0x319   : > { %v1242_v6 = vmul.f32 %v3887_v2, %v1166_v61  ;;  %v1219_v27 = vmul.f32 %v2927_v52, %v4997_v34  ;;  %v1222_v21 = vmul.f32 %v2929_v4, %v4998_v15  ;;  %v1241_v53 = vmul.f32 %v3904_v23, %v1165_v25 }
 0x31a   : > { %2220 = vmatmul.mubr.bf16.vlgmr.msra.gmra.mrb[64].mxu0 %v1951_v9  ;;  %v1221_v17 = vmul.f32 %v2929_v4, %v4999_v43  ;;  %v4576_v45 = vadd.f32 %v3907_v59, %v1240_v57  ;;  %v1296_v60 = vmul.f32 %v3887_v2, %v1220_v16  ;;  %v1498_v40 = vmul.f32 0.044715, %v4562_v26 }
 0x31b   : > { %v4579_v22 = vadd.f32 %v3907_v59, %v1242_v6  ;;  %v1298_v10 = vmul.f32 %v3887_v2, %v1222_v21  ;;  %v4586_v3 = vadd.f32 %v3926_v24, %v1239_v33  ;;  %v1295_v42 = vmul.f32 %v3904_v23, %v1219_v27 }
 0x31c   : > { %v1495_v48 = vmul.f32 0.044715, %v4556_v1  ;;  %v1497_v46 = vmul.f32 0.044715, %v4568_v35  ;;  %v4592_v56 = vadd.f32 %v3926_v24, %v1241_v53  ;;  %v1297_v18 = vmul.f32 %v3904_v23, %v1221_v17 }
 0x31d   : > { %v1560_v2 = vmul.f32 %v1496_v54, %v4559_v38  ;;  %v1562_v44 = vmul.f32 %v1498_v40, %v4562_v26  ;;  %v1444_v36 = vmul.f32 0.044715, %v4576_v45  ;;  %v1446_v41 = vmul.f32 0.044715, %v4579_v22 }
 0x31e   : > { %v1559_v55 = vmul.f32 %v1495_v48, %v4556_v1  ;;  %v1561_v47 = vmul.f32 %v1497_v46, %v4568_v35  ;;  %v4602_v14 = vadd.f32 %v3907_v59, %v1296_v60  ;;  %v4605_v32 = vadd.f32 %v3907_v59, %v1298_v10 }
 0x31f   : > { %v1624_v23 = vmul.f32 %v1560_v2, %v4559_v38  ;;  %v1626_v29 = vmul.f32 %v1562_v44, %v4562_v26  ;;  %v1508_v7 = vmul.f32 %v1444_v36, %v4576_v45  ;;  %v1510_v8 = vmul.f32 %v1446_v41, %v4579_v22 }
 0x320   : > { %v1623_v5 = vmul.f32 %v1559_v55, %v4556_v1  ;;  %v1625_v19 = vmul.f32 %v1561_v47, %v4568_v35  ;;  %v1443_v37 = vmul.f32 0.044715, %v4586_v3  ;;  %v1445_v59 = vmul.f32 0.044715, %v4592_v56 }
 0x321   : > { %v1688_v28 = vadd.f32 %v1624_v23, %v4559_v38  ;;  %v1690_v58 = vadd.f32 %v1626_v29, %v4562_v26  ;;  %v1572_v50 = vmul.f32 %v1508_v7, %v4576_v45  ;;  %v1574_v13 = vmul.f32 %v1510_v8, %v4579_v22 }
 0x322   : > { %v1687_v0 = vadd.f32 %v1623_v5, %v4556_v1  ;;  %v1689_v20 = vadd.f32 %v1625_v19, %v4568_v35  ;;  %v1507_v62 = vmul.f32 %v1443_v37, %v4586_v3  ;;  %v1509_v12 = vmul.f32 %v1445_v59, %v4592_v56 }
 0x323   : > { %v1752_v63 = vmul.f32 0.7978846, %v1688_v28  ;;  %v1754_v11 = vmul.f32 0.7978846, %v1690_v58  ;;  %v1636_v31 = vadd.f32 %v1572_v50, %v4576_v45  ;;  %v1638_v49 = vadd.f32 %v1574_v13, %v4579_v22 }
 0x324   : > { %v1751_v30 = vmul.f32 0.7978846, %v1687_v0  ;;  %v1753_v52 = vmul.f32 0.7978846, %v1689_v20  ;;  %v4626_v25 = vadd.f32 %v3926_v24, %v1295_v42  ;;  %v1571_v39 = vmul.f32 %v1507_v62, %v4586_v3 }
 0x325   : > { %2930 = vtanh.f32 %v1752_v63  ;;  %v1573_v61 = vmul.f32 %v1509_v12, %v4592_v56  ;;  %v4631_v4 = vadd.f32 %v3926_v24, %v1297_v18  ;;  %v1700_v9 = vmul.f32 0.7978846, %v1636_v31 }
 0x326   : > { %2932 = vtanh.f32 %v1754_v11  ;;  %v1702_v57 = vmul.f32 0.7978846, %v1638_v49  ;;  %v1635_v6 = vadd.f32 %v1571_v39, %v4586_v3  ;;  %v1500_v16 = vmul.f32 0.044715, %v4602_v14 }
 0x327   : > { %2934 = vtanh.f32 %v1751_v30  ;;  %v1637_v51 = vadd.f32 %v1573_v61, %v4592_v56  ;;  %v1502_v33 = vmul.f32 0.044715, %v4605_v32  ;;  %v1499_v21 = vmul.f32 0.044715, %v4626_v25 }
 0x328   : > { %2936 = vtanh.f32 %v1753_v52  ;;  %v1699_v34 = vmul.f32 0.7978846, %v1635_v6  ;;  %v1564_v15 = vmul.f32 %v1500_v16, %v4602_v14  ;;  %v1501_v53 = vmul.f32 0.044715, %v4631_v4 }
 0x329   : > { %2938 = vtanh.f32 %v1700_v9  ;;  %v1701_v27 = vmul.f32 0.7978846, %v1637_v51  ;;  %v1566_v24 = vmul.f32 %v1502_v33, %v4605_v32  ;;  %v1563_v60 = vmul.f32 %v1499_v21, %v4626_v25 }
 0x32a   : > { %2940 = vtanh.f32 %v1702_v57  ;;  %v1628_v43 = vmul.f32 %v1564_v15, %v4602_v14  ;;  %v1565_v10 = vmul.f32 %v1501_v53, %v4631_v4  ;;  %v1432_v18 = vmul.f32 0.5, %v4559_v38 }
 0x32b   : > { %2942 = vtanh.f32 %v1699_v34  ;;  %v1630_v17 = vmul.f32 %v1566_v24, %v4605_v32  ;;  %v1627_v42 = vmul.f32 %v1563_v60, %v4626_v25  ;;  %v1434_v2 = vmul.f32 0.5, %v4562_v26 }
 0x32c   : > { %2944 = vtanh.f32 %v1701_v27  ;;  %v1692_v54 = vadd.f32 %v1628_v43, %v4602_v14  ;;  %v1629_v48 = vmul.f32 %v1565_v10, %v4631_v4  ;;  %v1431_v19 = vmul.f32 0.5, %v4556_v1 }
 0x32d   : > { %v1694_v40 = vadd.f32 %v1630_v17, %v4605_v32  ;;  %v1691_v41 = vadd.f32 %v1627_v42, %v4626_v25  ;;  %v1433_v7 = vmul.f32 0.5, %v4568_v35  ;;  %v1380_v38 = vmul.f32 0.5, %v4576_v45 }
 0x32e   : > { %v1756_v44 = vmul.f32 0.7978846, %v1692_v54  ;;  %v1693_v23 = vadd.f32 %v1629_v48, %v4631_v4  ;;  %v1382_v63 = vmul.f32 0.5, %v4579_v22  ;;  %v1379_v45 = vmul.f32 0.5, %v4586_v3  ;;  %v5000_v48 = vld [vmem:[#allocation5_spill] sm:$0xff] }
 0x32f   : > { %v2931_v46 = vpop.eup %2930  ;;  %v1758_v36 = vmul.f32 0.7978846, %v1694_v40  ;;  %v1755_v26 = vmul.f32 0.7978846, %v1691_v41  ;;  %v1381_v52 = vmul.f32 0.5, %v4592_v56  ;;  %v1436_v3 = vmul.f32 0.5, %v4602_v14 }
 0x330   : > { %v2933_v55 = vpop.eup %2932  ;;  %v1880_v47 = vadd.f32 1.0, %v2931_v46  ;;  %2946 = vtanh.f32 %v1756_v44  ;;  %v1757_v20 = vmul.f32 0.7978846, %v1693_v23  ;;  %v1438_v56 = vmul.f32 0.5, %v4605_v32  ;;  %v2015_v32 = vld [vmem:[%s4863_s6] sm:$0x3] }
 0x331   : > { %v2935_v29 = vpop.eup %2934  ;;  %v1882_v5 = vadd.f32 1.0, %v2933_v55  ;;  %2948 = vtanh.f32 %v1758_v36  ;;  %v1435_v17 = vmul.f32 0.5, %v4626_v25  ;;  %v1437_v60 = vmul.f32 0.5, %v4631_v4  ;;  %v5001_v25 = vld [vmem:[#allocation6_spill] sm:$0xff] }
 0x332   : > { %v2937_v8 = vpop.eup %2936  ;;  %v1879_v28 = vadd.f32 1.0, %v2935_v29  ;;  %v1944_v37 = vmul.f32 %v1880_v47, %v1432_v18  ;;  %2950 = vtanh.f32 %v1755_v26  ;;  %v4670_v46 = vrot.slane %v2015_v32, %v5000_v48 }
 0x333   : > { %v2939_v58 = vpop.eup %2938  ;;  %v1946_v59 = vmul.f32 %v1882_v5, %v1434_v2  ;;  %v1881_v0 = vadd.f32 1.0, %v2937_v8  ;;  %2952 = vtanh.f32 %v1757_v20  ;;  %v4673_v18 = vrot.slane %v2015_v32, %v5001_v25 }
 0x334   : > { %v2941_v50 = vpop.eup %2940  ;;  %v1943_v13 = vmul.f32 %v1879_v28, %v1431_v19  ;;  %v1828_v11 = vadd.f32 1.0, %v2939_v58 }
 0x335   : > { %v2943_v1 = vpop.eup %2942  ;;  %v1980_v35 = vpack.c.bf16 %v1946_v59, %v1944_v37  ;;  %v1945_v62 = vmul.f32 %v1881_v0, %v1433_v7  ;;  %v1830_v12 = vadd.f32 1.0, %v2941_v50 }
 0x336   : > { %v2945_v30 = vpop.eup %2944  ;;  %v1827_v31 = vadd.f32 1.0, %v2943_v1  ;;  %v1892_v39 = vmul.f32 %v1828_v11, %v1380_v38 }
 0x337   : > { %2359 = vmatprep.mubr.bf16.mxu1 %v1980_v35  ;;  %v1979_v49 = vpack.c.bf16 %v1945_v62, %v1943_v13  ;;  %v1894_v61 = vmul.f32 %v1830_v12, %v1382_v63  ;;  %v1829_v9 = vadd.f32 1.0, %v2945_v30 }
 0x338   : > { %v1891_v57 = vmul.f32 %v1827_v31, %v1379_v45 }
 0x339   : > { %2360 = vmatmul.mubr.bf16.gmra.mrb[48].mxu1 %v1979_v49  ;;  %v1954_v22 = vpack.c.bf16 %v1894_v61, %v1892_v39  ;;  %v1893_v6 = vmul.f32 %v1829_v9, %v1381_v52 }
 0x33a   : > { %v2947_v51 = vpop.eup %2946 }
 0x33b   : > { %2229 = vmatprep.mubr.bf16.mxu0 %v1954_v22  ;;  %v1953_v16 = vpack.c.bf16 %v1893_v6, %v1891_v57  ;;  %v2949_v33 = vpop.eup %2948  ;;  %v1884_v34 = vadd.f32 1.0, %v2947_v51 }
 0x33c   : > { %v1886_v27 = vadd.f32 1.0, %v2949_v33  ;;  %v2951_v15 = vpop.eup %2950 }
 0x33d   : > { %2230 = vmatmul.mubr.bf16.gmra.mrb[68].mxu0 %v1953_v16  ;;  %v2953_v24 = vpop.eup %2952  ;;  %v1948_v21 = vmul.f32 %v1884_v34, %v1436_v3  ;;  %v1883_v43 = vadd.f32 1.0, %v2951_v15 }
 0x33e   : > { %v1950_v53 = vmul.f32 %v1886_v27, %v1438_v56  ;;  %v1885_v10 = vadd.f32 1.0, %v2953_v24 }
 0x33f   : > { %v1947_v40 = vmul.f32 %v1883_v43, %v1435_v17 }
 0x340   : > { %v1982_v54 = vpack.c.bf16 %v1950_v53, %v1948_v21  ;;  %v1949_v42 = vmul.f32 %v1885_v10, %v1437_v60 }
 0x342   : > { %2369 = vmatprep.mubr.bf16.mxu1 %v1982_v54  ;;  %v1981_v14 = vpack.c.bf16 %v1949_v42, %v1947_v40 }
 0x344   : > { %2370 = vmatmul.mubr.bf16.gmra.mrb[52].mxu1 %v1981_v14 }
 0x359   : > { %v2241_v4 = vpop.f32.mrb[0].mxu1 }
 0x35a   : > { %v2242_v2 = vadd.f32 %v2241_v4, %v4670_v46  ;;  %v2243_v44 = vpop.f32.mrb[1].mxu1 }
 0x35b   : > { %v2244_v55 = vadd.f32 %v2243_v44, %v4673_v18  ;;  %v2245_v47 = vpop.f32.mrb[2].mxu1 }
 0x35c   : > { %2388 = vst [vmem:[%s4677_s9 + $0x40] sm:$0xff] %v2242_v2  ;;  %v2246_v36 = vadd.f32 %v2245_v47, %v4670_v46  ;;  %v2247_v41 = vpop.f32.mrb[3].mxu1 }
 0x35d   : > { %2389 = vst [vmem:[%s4677_s9 + $0x48] sm:$0xff] %v2244_v55  ;;  %v2248_v23 = vadd.f32 %v2247_v41, %v4673_v18 }
 0x35e   : > { %2390 = vst [vmem:[%s4677_s9 + $0x50] sm:$0xff] %v2246_v36 }
 0x35f   : > { %2391 = vst [vmem:[%s4677_s9 + $0x58] sm:$0xff] %v2248_v23 }
 0x36b   : > { %v2251_v29 = vpop.f32.mrb[4].mxu1 }
 0x36c   : > { %v2252_v5 = vadd.f32 %v2251_v29, %v4670_v46  ;;  %v2253_v19 = vpop.f32.mrb[5].mxu1 }
 0x36d   : > { %v2254_v7 = vadd.f32 %v2253_v19, %v4673_v18  ;;  %v2255_v8 = vpop.f32.mrb[6].mxu1 }
 0x36e   : > { %2392 = vst [vmem:[%s4677_s9 + $0x60] sm:$0xff] %v2252_v5  ;;  %v2256_v28 = vadd.f32 %v2255_v8, %v4670_v46  ;;  %v2257_v38 = vpop.f32.mrb[7].mxu1 }
 0x36f   : > { %2393 = vst [vmem:[%s4677_s9 + $0x68] sm:$0xff] %v2254_v7  ;;  %v2258_v26 = vadd.f32 %v2257_v38, %v4673_v18 }
 0x370   : > { %2394 = vst [vmem:[%s4677_s9 + $0x70] sm:$0xff] %v2256_v28 }
 0x371   : > { %2395 = vst [vmem:[%s4677_s9 + $0x78] sm:$0xff] %v2258_v26 }
 0x37c   : > { %v2261_v58 = vpop.f32.mrb[8].mxu1 }
 0x37d   : > { %v2262_v37 = vadd.f32 %v2261_v58, %v4670_v46  ;;  %v2263_v59 = vpop.f32.mrb[9].mxu1 }
 0x37e   : > { %v2264_v0 = vadd.f32 %v2263_v59, %v4673_v18  ;;  %v2265_v20 = vpop.f32.mrb[10].mxu1 }
 0x37f   : > { %2396 = vst [vmem:[%s4677_s9 + $0x80] sm:$0xff] %v2262_v37  ;;  %v2266_v50 = vadd.f32 %v2265_v20, %v4670_v46  ;;  %v2267_v13 = vpop.f32.mrb[11].mxu1 }
 0x380   : > { %2397 = vst [vmem:[%s4677_s9 + $0x88] sm:$0xff] %v2264_v0  ;;  %v2268_v63 = vadd.f32 %v2267_v13, %v4673_v18 }
 0x381   : > { %2398 = vst [vmem:[%s4677_s9 + $0x90] sm:$0xff] %v2266_v50 }
 0x382   : > { %2399 = vst [vmem:[%s4677_s9 + $0x98] sm:$0xff] %v2268_v63 }
 0x389   : > { %v2271_v11 = vpop.f32.mrb[12].mxu1 }
 0x38a   : > { %v2272_v1 = vadd.f32 %v2271_v11, %v4670_v46  ;;  %v2273_v35 = vpop.f32.mrb[13].mxu1 }
 0x38b   : > { %v2274_v62 = vadd.f32 %v2273_v35, %v4673_v18  ;;  %v2275_v12 = vpop.f32.mrb[14].mxu1 }
 0x38c   : > { %2400 = vst [vmem:[%s4677_s9 + $0xa0] sm:$0xff] %v2272_v1  ;;  %v2276_v30 = vadd.f32 %v2275_v12, %v4670_v46  ;;  %v2277_v45 = vpop.f32.mrb[15].mxu1 }
 0x38d   : > { %2401 = vst [vmem:[%s4677_s9 + $0xa8] sm:$0xff] %v2274_v62  ;;  %v2278_v52 = vadd.f32 %v2277_v45, %v4673_v18 }
 0x38e   : > { %2402 = vst [vmem:[%s4677_s9 + $0xb0] sm:$0xff] %v2276_v30 }
 0x38f   : > { %2403 = vst [vmem:[%s4677_s9 + $0xb8] sm:$0xff] %v2278_v52 }
 0x398   : > { %v2281_v31 = vpop.f32.mrb[16].mxu1 }
 0x399   : > { %v2282_v49 = vadd.f32 %v2281_v31, %v4670_v46  ;;  %v2283_v39 = vpop.f32.mrb[17].mxu1 }
 0x39a   : > { %v2284_v61 = vadd.f32 %v2283_v39, %v4673_v18  ;;  %v2285_v9 = vpop.f32.mrb[18].mxu1 }
 0x39b   : > { %2404 = vst [vmem:[%s4677_s9 + $0xc0] sm:$0xff] %v2282_v49  ;;  %v2286_v22 = vadd.f32 %v2285_v9, %v4670_v46  ;;  %v2287_v57 = vpop.f32.mrb[19].mxu1 }
 0x39c   : > { %2405 = vst [vmem:[%s4677_s9 + $0xc8] sm:$0xff] %v2284_v61  ;;  %v2288_v6 = vadd.f32 %v2287_v57, %v4673_v18 }
 0x39d   : > { %2406 = vst [vmem:[%s4677_s9 + $0xd0] sm:$0xff] %v2286_v22 }
 0x39e   : > { %2407 = vst [vmem:[%s4677_s9 + $0xd8] sm:$0xff] %v2288_v6 }
 0x3ac   : > { %v2291_v51 = vpop.f32.mrb[20].mxu1 }
 0x3ad   : > { %v2292_v16 = vadd.f32 %v2291_v51, %v4670_v46  ;;  %v2293_v33 = vpop.f32.mrb[21].mxu1 }
 0x3ae   : > { %v2294_v34 = vadd.f32 %v2293_v33, %v4673_v18  ;;  %v2295_v3 = vpop.f32.mrb[22].mxu1 }
 0x3af   : > { %2408 = vst [vmem:[%s4677_s9 + $0xe0] sm:$0xff] %v2292_v16  ;;  %v2296_v56 = vadd.f32 %v2295_v3, %v4670_v46  ;;  %v2297_v27 = vpop.f32.mrb[23].mxu1 }
 0x3b0   : > { %2409 = vst [vmem:[%s4677_s9 + $0xe8] sm:$0xff] %v2294_v34  ;;  %v2298_v15 = vadd.f32 %v2297_v27, %v4673_v18 }
 0x3b1   : > { %2410 = vst [vmem:[%s4677_s9 + $0xf0] sm:$0xff] %v2296_v56 }
 0x3b2   : > { %2411 = vst [vmem:[%s4677_s9 + $0xf8] sm:$0xff] %v2298_v15 }
 0x3b5   : > { %v2301_v24 = vpop.f32.mrb[24].mxu1 }
 0x3b6   : > { %v2302_v21 = vadd.f32 %v2301_v24, %v4670_v46  ;;  %v2303_v53 = vpop.f32.mrb[25].mxu1 }
 0x3b7   : > { %v2304_v43 = vadd.f32 %v2303_v53, %v4673_v18  ;;  %v2305_v17 = vpop.f32.mrb[26].mxu1 }
 0x3b8   : > { %2412 = vst [vmem:[%s4677_s9 + $0x100] sm:$0xff] %v2302_v21  ;;  %v2306_v60 = vadd.f32 %v2305_v17, %v4670_v46  ;;  %v2307_v10 = vpop.f32.mrb[27].mxu1 }
 0x3b9   : > { %2413 = vst [vmem:[%s4677_s9 + $0x108] sm:$0xff] %v2304_v43  ;;  %v2308_v54 = vadd.f32 %v2307_v10, %v4673_v18 }
 0x3ba   : > { %2414 = vst [vmem:[%s4677_s9 + $0x110] sm:$0xff] %v2306_v60 }
 0x3bb   : > { %2415 = vst [vmem:[%s4677_s9 + $0x118] sm:$0xff] %v2308_v54 }
 0x3be   : > { %v2311_v40 = vpop.f32.mrb[28].mxu1 }
 0x3bf   : > { %v2312_v42 = vadd.f32 %v2311_v40, %v4670_v46  ;;  %v2313_v14 = vpop.f32.mrb[29].mxu1 }
 0x3c0   : > { %v2314_v32 = vadd.f32 %v2313_v14, %v4673_v18  ;;  %v2315_v48 = vpop.f32.mrb[30].mxu1 }
 0x3c1   : > { %2416 = vst [vmem:[%s4677_s9 + $0x120] sm:$0xff] %v2312_v42  ;;  %v2316_v25 = vadd.f32 %v2315_v48, %v4670_v46  ;;  %v2317_v4 = vpop.f32.mrb[31].mxu1 }
 0x3c2   : > { %2417 = vst [vmem:[%s4677_s9 + $0x128] sm:$0xff] %v2314_v32  ;;  %v2318_v2 = vadd.f32 %v2317_v4, %v4673_v18 }
 0x3c3   : > { %2418 = vst [vmem:[%s4677_s9 + $0x130] sm:$0xff] %v2316_v25 }
 0x3c4   : > { %2419 = vst [vmem:[%s4677_s9 + $0x138] sm:$0xff] %v2318_v2 }
 0x3c9   : > { %v2321_v44 = vpop.f32.mrb[32].mxu1 }
 0x3ca   : > { %v2322_v55 = vadd.f32 %v2321_v44, %v4670_v46  ;;  %v2323_v47 = vpop.f32.mrb[33].mxu1 }
 0x3cb   : > { %v2324_v36 = vadd.f32 %v2323_v47, %v4673_v18  ;;  %v2325_v41 = vpop.f32.mrb[34].mxu1 }
 0x3cc   : > { %2420 = vst [vmem:[%s4677_s9 + $0x140] sm:$0xff] %v2322_v55  ;;  %v2326_v23 = vadd.f32 %v2325_v41, %v4670_v46  ;;  %v2327_v29 = vpop.f32.mrb[35].mxu1 }
 0x3cd   : > { %2421 = vst [vmem:[%s4677_s9 + $0x148] sm:$0xff] %v2324_v36  ;;  %v2328_v5 = vadd.f32 %v2327_v29, %v4673_v18 }
 0x3ce   : > { %2422 = vst [vmem:[%s4677_s9 + $0x150] sm:$0xff] %v2326_v23 }
 0x3cf   : > { %2423 = vst [vmem:[%s4677_s9 + $0x158] sm:$0xff] %v2328_v5 }
 0x3d1   : > { %v2331_v19 = vpop.f32.mrb[36].mxu1 }
 0x3d2   : > { %v2332_v7 = vadd.f32 %v2331_v19, %v4670_v46  ;;  %v2333_v8 = vpop.f32.mrb[37].mxu1 }
 0x3d3   : > { %v2334_v28 = vadd.f32 %v2333_v8, %v4673_v18  ;;  %v2335_v38 = vpop.f32.mrb[38].mxu1 }
 0x3d4   : > { %2424 = vst [vmem:[%s4677_s9 + $0x160] sm:$0xff] %v2332_v7  ;;  %v2336_v26 = vadd.f32 %v2335_v38, %v4670_v46  ;;  %v2337_v58 = vpop.f32.mrb[39].mxu1 }
 0x3d5   : > { %2425 = vst [vmem:[%s4677_s9 + $0x168] sm:$0xff] %v2334_v28  ;;  %v2338_v37 = vadd.f32 %v2337_v58, %v4673_v18 }
 0x3d6   : > { %2426 = vst [vmem:[%s4677_s9 + $0x170] sm:$0xff] %v2336_v26 }
 0x3d7   : > { %2427 = vst [vmem:[%s4677_s9 + $0x178] sm:$0xff] %v2338_v37 }
 0x3da   : > { %v2341_v59 = vpop.f32.mrb[40].mxu1 }
 0x3db   : > { %v2342_v0 = vadd.f32 %v2341_v59, %v4670_v46  ;;  %v2343_v20 = vpop.f32.mrb[41].mxu1 }
 0x3dc   : > { %v2344_v50 = vadd.f32 %v2343_v20, %v4673_v18  ;;  %v2345_v13 = vpop.f32.mrb[42].mxu1 }
 0x3dd   : > { %2428 = vst [vmem:[%s4677_s9 + $0x180] sm:$0xff] %v2342_v0  ;;  %v2346_v63 = vadd.f32 %v2345_v13, %v4670_v46  ;;  %v2347_v11 = vpop.f32.mrb[43].mxu1 }
 0x3de   : > { %2429 = vst [vmem:[%s4677_s9 + $0x188] sm:$0xff] %v2344_v50  ;;  %v2348_v1 = vadd.f32 %v2347_v11, %v4673_v18 }
 0x3df   : > { %2430 = vst [vmem:[%s4677_s9 + $0x190] sm:$0xff] %v2346_v63 }
 0x3e0   : > { %2431 = vst [vmem:[%s4677_s9 + $0x198] sm:$0xff] %v2348_v1 }
 0x3e6   : > { %v2351_v35 = vpop.f32.mrb[44].mxu1 }
 0x3e7   : > { %v2352_v62 = vadd.f32 %v2351_v35, %v4670_v46  ;;  %v2353_v12 = vpop.f32.mrb[45].mxu1 }
 0x3e8   : > { %v2354_v30 = vadd.f32 %v2353_v12, %v4673_v18  ;;  %v2355_v45 = vpop.f32.mrb[46].mxu1 }
 0x3e9   : > { %2432 = vst [vmem:[%s4677_s9 + $0x1a0] sm:$0xff] %v2352_v62  ;;  %v2356_v52 = vadd.f32 %v2355_v45, %v4670_v46  ;;  %v2357_v31 = vpop.f32.mrb[47].mxu1 }
 0x3ea   : > { %2433 = vst [vmem:[%s4677_s9 + $0x1a8] sm:$0xff] %v2354_v30  ;;  %v2358_v49 = vadd.f32 %v2357_v31, %v4673_v18 }
 0x3eb   : > { %2434 = vst [vmem:[%s4677_s9 + $0x1b0] sm:$0xff] %v2356_v52 }
 0x3ec   : > { %2435 = vst [vmem:[%s4677_s9 + $0x1b8] sm:$0xff] %v2358_v49 }
 0x3ed   : > { %v2221_v39 = vpop.f32.mrb[64].mxu0 }
 0x3ee   : > { %v2222_v61 = vadd.f32 %v2221_v39, %v4670_v46  ;;  %v2223_v9 = vpop.f32.mrb[65].mxu0 }
 0x3ef   : > { %v2224_v22 = vadd.f32 %v2223_v9, %v4673_v18  ;;  %v2225_v57 = vpop.f32.mrb[66].mxu0 }
 0x3f0   : > { %2380 = vst [vmem:[%s4677_s9] sm:$0xff] %v2222_v61  ;;  %v2226_v6 = vadd.f32 %v2225_v57, %v4670_v46  ;;  %v2227_v51 = vpop.f32.mrb[67].mxu0 }
 0x3f1   : > { %2381 = vst [vmem:[%s4677_s9 + $0x8] sm:$0xff] %v2224_v22  ;;  %v2228_v16 = vadd.f32 %v2227_v51, %v4673_v18 }
 0x3f2   : > { %2382 = vst [vmem:[%s4677_s9 + $0x10] sm:$0xff] %v2226_v6 }
 0x3f3   : > { %2383 = vst [vmem:[%s4677_s9 + $0x18] sm:$0xff] %v2228_v16 }
 0x40c   : > { %v2361_v33 = vpop.f32.mrb[48].mxu1 }
 0x40d   : > { %v2362_v34 = vadd.f32 %v2361_v33, %v4670_v46  ;;  %v2363_v3 = vpop.f32.mrb[49].mxu1 }
 0x40e   : > { %v2364_v56 = vadd.f32 %v2363_v3, %v4673_v18  ;;  %v2365_v27 = vpop.f32.mrb[50].mxu1 }
 0x40f   : > { %2436 = vst [vmem:[%s4677_s9 + $0x1c0] sm:$0xff] %v2362_v34  ;;  %v2366_v15 = vadd.f32 %v2365_v27, %v4670_v46  ;;  %v2367_v24 = vpop.f32.mrb[51].mxu1 }
 0x410   : > { %2437 = vst [vmem:[%s4677_s9 + $0x1c8] sm:$0xff] %v2364_v56  ;;  %v2368_v21 = vadd.f32 %v2367_v24, %v4673_v18  ;;  %v2231_v53 = vpop.f32.mrb[68].mxu0 }
 0x411   : > { %2438 = vst [vmem:[%s4677_s9 + $0x1d0] sm:$0xff] %v2366_v15  ;;  %v2232_v43 = vadd.f32 %v2231_v53, %v4670_v46  ;;  %v2233_v17 = vpop.f32.mrb[69].mxu0 }
 0x412   : > { %2439 = vst [vmem:[%s4677_s9 + $0x1d8] sm:$0xff] %v2368_v21  ;;  %v2234_v60 = vadd.f32 %v2233_v17, %v4673_v18  ;;  %v2235_v10 = vpop.f32.mrb[70].mxu0 }
 0x413   : > { %2384 = vst [vmem:[%s4677_s9 + $0x20] sm:$0xff] %v2232_v43  ;;  %v2236_v54 = vadd.f32 %v2235_v10, %v4670_v46  ;;  %v2237_v40 = vpop.f32.mrb[71].mxu0 }
 0x414   : > { %2385 = vst [vmem:[%s4677_s9 + $0x28] sm:$0xff] %v2234_v60  ;;  %v2238_v42 = vadd.f32 %v2237_v40, %v4673_v18 }
 0x415   : > { %2386 = vst [vmem:[%s4677_s9 + $0x30] sm:$0xff] %v2236_v54 }
 0x416   : > { %2387 = vst [vmem:[%s4677_s9 + $0x38] sm:$0xff] %v2238_v42 }
 0x417   : > { %v2371_v14 = vpop.f32.mrb[52].mxu1 }
 0x418   : > { %v2372_v32 = vadd.f32 %v2371_v14, %v4670_v46  ;;  %v2373_v48 = vpop.f32.mrb[53].mxu1 }
 0x419   : > { %v2374_v25 = vadd.f32 %v2373_v48, %v4673_v18  ;;  %v2375_v4 = vpop.f32.mrb[54].mxu1 }
 0x41a   : > { %2440 = vst [vmem:[%s4677_s9 + $0x1e0] sm:$0xff] %v2372_v32  ;;  %v2376_v2 = vadd.f32 %v2375_v4, %v4670_v46  ;;  %v2377_v44 = vpop.f32.mrb[55].mxu1 }
 0x41b   : > { %2441 = vst [vmem:[%s4677_s9 + $0x1e8] sm:$0xff] %v2374_v25  ;;  %v2378_v55 = vadd.f32 %v2377_v44, %v4673_v18 }
 0x41c   : > { %2442 = vst [vmem:[%s4677_s9 + $0x1f0] sm:$0xff] %v2376_v2 }
 0x41d   : > { %2443 = vst [vmem:[%s4677_s9 + $0x1f8] sm:$0xff] %v2378_v55 }
 0x41e   : > { %2967 = shalt.err (!%p2964_p3)
}
 0x41f   : > { %s2968_s18 = scalar_lea.hbm %s4806_s19, 8192  ;;  %s2972_s29 = scalar_lea.hbm %s4864_s7, 16384 }
 0x420   : > { %p2969_p4 = scmp.ne.s32.totalorder %s4806_s19, %s2968_s18  ;;  %p2973_p9 = scmp.lt.u32.totalorder %s4806_s19, %s4864_s7 }
 0x421   : > { %p2974_p10 = scmp.lt.u32.totalorder %s2972_s29, %s2968_s18  ;;  %p2976_p12 = scmp.lt.u32.totalorder %s2968_s18, %s4806_s19 }
 0x422   : > { %p2970_p7 = pnand %p2969_p4, %p3100_p5 }
 0x423   : > { %p2975_p11 = por %p2974_p10, %p2973_p9 }
 0x424   : > { %p2971_p8 = pneg %p2970_p7 }
 0x425   : > { %p2977_p13 = por %p2976_p12, %p2975_p11 }
 0x427   : > { %p2978_p0 = pnand %p2977_p13, %p2971_p8 }
 0x429   : > { %2981 = shalt.err (!%p2978_p0)
}
 0x42a   : > { %s3020_s16 = smov 256   ;;  %s3021_s17 = smov 16  }
 0x42b   : > { %2632 = dma.vmem_to_hbm [thread:$0]  (%p3100_p5), %s4808_s14, 8192, %s4806_s19, %s4816_s28, %s3020_s16, %s3020_s16, %s3021_s17  }
 0x42c PF: > { %p2638_p1 = scmp.ge.s32.totalorder %s3016_s27, 2  ;;  %s2474_s20 = sand.u32 1, %s3004_s24  }
 0x42d   : > { %s2475_s15 = scalar_lea.sflag [#allocation3], %s2474_s20 }
 0x42e   : > { %p2635_p2 = pnand %p2638_p1, %p3104_p6 }
 0x430   : > { %2999 = dma.done.wait (!%p2635_p2), %s2475_s15, 8192  }
 0x431   : > { %3001 = vsyncadd (!%p2635_p2), %s2475_s15, 4294959104  ;;  %p17_p3 = scmp.ge.s32.totalorder %s3087_s30, 4   ;;  %s5002_s24 = smov %s3008_s25 }
 0x432   : > { %s5003_s25 = smov %s3012_s26  ;;  %s5004_s26 = smov %s3098_s10 }
 0x433   : > { %s5005_s27 = smov %s3087_s30  ;;  %19 = sbr.rel (!%p17_p3) target bundleno = 3 (0x3), region = 83 }
 0x43a   :  { %2480 = vsyncpa [#allocation3], 1 }
 0x43b   :  { %2482 = vsyncpa [#allocation3 + $0x1], 1 }

</bundles_post_ra>
